<compile_context>
chip_gen: v5e
topology: v5e:2x2
jax: 0.10.0
libtpu: 0.0.40
codegen_flags: <defaults>
</compile_context>

<pallas_src>
import math
import functools

import jax
import jax.numpy as jnp
from jax.experimental import pallas as pl
from jax.experimental.pallas import tpu as pltpu


# ----------------------------- Model constants ------------------------------

N_LEADS = 12
STEPS_CONCAT = 2
MODEL_SIZE = 32
NHEAD = 4
DIM_FF = 64
NUM_LAYERS = 2
OUTPUT_SIZE = 5
LN_EPS = 1e-5


# ----------------------------- Fused Pallas kernel ------------------------------

def _layer_norm(y, g, b, eps):
    mu = jnp.mean(y, axis=-1, keepdims=True)
    var = jnp.mean(jnp.square(y - mu), axis=-1, keepdims=True)
    return (y - mu) * jax.lax.rsqrt(var + eps) * g + b


def fused_transformer_kernel(
        x_ref, pe_ref, enc_w_ref, enc_b_ref,
        wqkv_ref, bqkv_ref, wo_ref, bo_ref,
        w1_ref, b1_ref, w2_ref, b2_ref,
        g1_ref, be1_ref, g2_ref, be2_ref,
        dec_w_ref, dec_b_ref, o_ref,
        *, nhead, num_layers, block_batch, seq_per_batch, eps):
    D = g1_ref.shape[-1]
    dh = D // nhead
    Sp = seq_per_batch

    x = x_ref[...]                                               # (BB*Sp, F)

    # Encoder linear (+sqrt(N_LEADS) folded into weights) + positional encoding.
    h = (jnp.dot(x, enc_w_ref[...], preferred_element_type=jnp.float32)
         + enc_b_ref[...] + pe_ref[...])                         # (BB*Sp, D)

    for l in range(num_layers):                                  # static unroll
        # QKV for all BB*Sp tokens at once (1/sqrt(dh) folded into Q weights).
        qkv = (jnp.dot(h, wqkv_ref[l], preferred_element_type=jnp.float32)
               + bqkv_ref[l])                                    # (BB*Sp, 3D)

        # Attention is per batch element; score/softmax/context loop only here.
        ctx_rows = []
        for i in range(block_batch):                             # static unroll
            qkv_i = qkv[i * Sp:(i + 1) * Sp]                     # (Sp, 3D)
            heads = []
            for hh in range(nhead):                              # static unroll
                q = qkv_i[:, hh * dh:(hh + 1) * dh]
                k = qkv_i[:, D + hh * dh:D + (hh + 1) * dh]
                v = qkv_i[:, 2 * D + hh * dh:2 * D + (hh + 1) * dh]
                # q @ k^T without in-kernel transpose (scale already folded).
                s = jax.lax.dot_general(q, k, (((1,), (1,)), ((), ())),
                                        preferred_element_type=jnp.float32)
                s = s - jnp.max(s, axis=-1, keepdims=True)
                p = jnp.exp(s)
                p = p * pl.reciprocal(jnp.sum(p, axis=-1, keepdims=True),
                                      approx=True)
                heads.append(jnp.dot(p, v, preferred_element_type=jnp.float32))
            # TODO(synk): batch the per-head dots over a head axis to avoid the
            # 8-lane slices once dh is large enough to matter.
            ctx_rows.append(jnp.concatenate(heads, axis=-1))     # (Sp, D)
        ctx = ctx_rows[0] if block_batch == 1 else jnp.concatenate(ctx_rows, axis=0)

        # Single K=D output projection for the whole (BB*Sp, D) slab.
        attn = (jnp.dot(ctx, wo_ref[l], preferred_element_type=jnp.float32)
                + bo_ref[l])
        h = _layer_norm(h + attn, g1_ref[l], be1_ref[l], eps)

        ffn = jnp.dot(
            jnp.maximum(
                jnp.dot(h, w1_ref[l], preferred_element_type=jnp.float32)
                + b1_ref[l], 0.0),
            w2_ref[l], preferred_element_type=jnp.float32) + b2_ref[l]
        h = _layer_norm(h + ffn, g2_ref[l], be2_ref[l], eps)

    # Transposed decoder: (Dout, D) contracted with (BB*Sp, D) -> (Dout, BB*Sp).
    # Token axis is the lane axis of the stored block (lane-dense as rows grow).
    dec_t = jax.lax.dot_general(dec_w_ref[...], h, (((1,), (1,)), ((), ())),
                                preferred_element_type=jnp.float32)
    o_ref[0] = dec_t + dec_b_ref[...]                            # (Dout, BB*Sp)


# ----------------------------- Wrapper ------------------------------

def _const_spec(shape):
    zeros = (0,) * len(shape)
    # Weights/PE: same block every grid step (VMEM-resident).
    return pl.BlockSpec(shape, lambda g, _z=zeros: _z)
    # NOTE: single-buffering these (pl.Buffered(1)) is negligible at D=32; see
    # review item 10 — revisit when model_size grows.


def _pick_block_batch(B, Sp, target_rows=256):
    """Largest divisor of B s.t. BB*Sp rows are 8-aligned, ~target_rows, and the
    grid keeps >= 2 steps when B >= 2 (v7x megacore)."""
    max_bb = max(1, target_rows // max(Sp, 1))
    if B >= 2:
        max_bb = min(max_bb, B // 2)
    best = None
    for d in range(1, B + 1):
        if B % d == 0 and d <= max_bb and (d * Sp) % 8 == 0:
            best = d
    return best if best is not None else B   # fallback: full-extent block


def sinusoidal_pe(max_len, d_model):
    position = jnp.arange(max_len, dtype=jnp.float32)[:, None]
    div_term = jnp.exp(jnp.arange(0, d_model, 2, dtype=jnp.float32)
                       * (-math.log(10000.0) / d_model))
    pe = jnp.zeros((max_len, d_model), jnp.float32)
    pe = pe.at[:, 0::2].set(jnp.sin(position * div_term))
    pe = pe.at[:, 1::2].set(jnp.cos(position * div_term))
    return pe


@jax.jit
def forward_pallas(params, src):
    # src: (B, N_LEADS, L)
    B, n_feat, L = src.shape
    assert L % STEPS_CONCAT == 0
    Sp = L // STEPS_CONCAT
    F = n_feat * STEPS_CONCAT
    D = MODEL_SIZE
    Dff = DIM_FF
    Dout = OUTPUT_SIZE * STEPS_CONCAT

    BB = _pick_block_batch(B, Sp)
    G = B // BB
    rows = BB * Sp

    # Concat-steps view of the input, flattened to (B*Sp, F) token rows.
    # TODO(synk): fold this HBM transpose pass into the kernel (on-chip XLU
    # transpose of (12, L) blocks) to save one read+write pass over src.
    x = jnp.transpose(src, (0, 2, 1)).reshape(B * Sp, F)

    # Positional encoding, tiled over the BB elements of one grid step.
    pe = jnp.tile(sinusoidal_pe(Sp, D), (BB, 1))                 # (rows, D)

    # --- trace-time weight prep: pre-transpose, stack, fold scales ---
    enc_scale = math.sqrt(N_LEADS)
    enc_w = params["enc_w"].T * enc_scale                        # (F, D)
    enc_b = (params["enc_b"] * enc_scale).reshape(1, D)
    dec_w = params["dec_w"]                                      # (Dout, D) original
    dec_b = params["dec_b"].reshape(Dout, 1)

    qscale = 1.0 / math.sqrt(D // NHEAD)
    col_scale = jnp.concatenate([jnp.full((D,), qscale, jnp.float32),
                                 jnp.ones((2 * D,), jnp.float32)])   # scale Q only

    lyr = params["layers"]
    wqkv = jnp.stack([lp["wqkv"].T * col_scale for lp in lyr])   # (NL, D, 3D)
    bqkv = jnp.stack([(lp["bqkv"] * col_scale).reshape(1, 3 * D) for lp in lyr])
    wo = jnp.stack([lp["wo"].T for lp in lyr])                   # (NL, D, D)
    bo = jnp.stack([lp["bo"].reshape(1, D) for lp in lyr])
    w1 = jnp.stack([lp["w1"].T for lp in lyr])                   # (NL, D, Dff)
    b1 = jnp.stack([lp["b1"].reshape(1, Dff) for lp in lyr])
    w2 = jnp.stack([lp["w2"].T for lp in lyr])                   # (NL, Dff, D)
    b2 = jnp.stack([lp["b2"].reshape(1, D) for lp in lyr])
    g1 = jnp.stack([lp["g1"].reshape(1, D) for lp in lyr])
    be1 = jnp.stack([lp["be1"].reshape(1, D) for lp in lyr])
    g2 = jnp.stack([lp["g2"].reshape(1, D) for lp in lyr])
    be2 = jnp.stack([lp["be2"].reshape(1, D) for lp in lyr])

    kernel = functools.partial(
        fused_transformer_kernel,
        nhead=NHEAD, num_layers=NUM_LAYERS,
        block_batch=BB, seq_per_batch=Sp, eps=LN_EPS)

    in_specs = [
        pl.BlockSpec((rows, F), lambda g: (g, 0)),               # token rows
        _const_spec((rows, D)),                                  # positional enc
        _const_spec((F, D)), _const_spec((1, D)),                # encoder linear
        _const_spec((NUM_LAYERS, D, 3 * D)), _const_spec((NUM_LAYERS, 1, 3 * D)),
        _const_spec((NUM_LAYERS, D, D)), _const_spec((NUM_LAYERS, 1, D)),
        _const_spec((NUM_LAYERS, D, Dff)), _const_spec((NUM_LAYERS, 1, Dff)),
        _const_spec((NUM_LAYERS, Dff, D)), _const_spec((NUM_LAYERS, 1, D)),
        _const_spec((NUM_LAYERS, 1, D)), _const_spec((NUM_LAYERS, 1, D)),
        _const_spec((NUM_LAYERS, 1, D)), _const_spec((NUM_LAYERS, 1, D)),
        _const_spec((Dout, D)), _const_spec((Dout, 1)),          # decoder linear
    ]

    dec_k = pl.pallas_call(
        kernel,
        out_shape=jax.ShapeDtypeStruct((G, Dout, rows), jnp.float32),
        grid=(G,),
        in_specs=in_specs,
        out_specs=pl.BlockSpec((1, Dout, rows), lambda g: (g, 0, 0)),
        compiler_params=pltpu.CompilerParams(
            dimension_semantics=("parallel",),
            vmem_limit_bytes=32 * 1024 * 1024),
    )(x, pe, enc_w, enc_b, wqkv, bqkv, wo, bo, w1, b1, w2, b2,
      g1, be1, g2, be2, dec_w, dec_b)

    # Un-concat steps from the transposed kernel output:
    # dec_k[g, st*OUT+o, i*Sp+sp]  ->  out[g*BB+i, o, sp*STEPS+st]
    out = dec_k.reshape(G, STEPS_CONCAT, OUTPUT_SIZE, BB, Sp)
    out = jnp.transpose(out, (0, 3, 2, 4, 1)).reshape(B, OUTPUT_SIZE, L)
    return out


# ----------------------------- Parameters ------------------------------

def init_params(key):
    def lin(k, dout, din, s=0.05):
        k1, k2 = jax.random.split(k)
        return (jax.random.normal(k1, (dout, din), jnp.float32) * s,
                jax.random.normal(k2, (dout,), jnp.float32) * s)

    keys = jax.random.split(key, 2 + 4 * NUM_LAYERS)
    p = {}
    p["enc_w"], p["enc_b"] = lin(keys[0], MODEL_SIZE, N_LEADS * STEPS_CONCAT)
    p["dec_w"], p["dec_b"] = lin(keys[1], OUTPUT_SIZE * STEPS_CONCAT, MODEL_SIZE)
    p["layers"] = []
    for l in range(NUM_LAYERS):
        kq, ko, k1, k2 = keys[2 + 4 * l:2 + 4 * (l + 1)]
        wqkv, bqkv = lin(kq, 3 * MODEL_SIZE, MODEL_SIZE)
        wo, bo = lin(ko, MODEL_SIZE, MODEL_SIZE)
        w1, b1 = lin(k1, DIM_FF, MODEL_SIZE)
        w2, b2 = lin(k2, MODEL_SIZE, DIM_FF)
        p["layers"].append(dict(
            wqkv=wqkv, bqkv=bqkv, wo=wo, bo=bo,
            w1=w1, b1=b1, w2=w2, b2=b2,
            g1=jnp.ones((MODEL_SIZE,), jnp.float32), be1=jnp.zeros((MODEL_SIZE,), jnp.float32),
            g2=jnp.ones((MODEL_SIZE,), jnp.float32), be2=jnp.zeros((MODEL_SIZE,), jnp.float32)))
    return p


# ----------------------------- Pure-JAX reference ------------------------------

def forward_reference(params, src):
    B, n_feat, L = src.shape
    Sp = L // STEPS_CONCAT
    D = MODEL_SIZE
    x = jnp.transpose(src, (0, 2, 1)).reshape(B, Sp, n_feat * STEPS_CONCAT)
    h = (x @ params["enc_w"].T + params["enc_b"]) * math.sqrt(N_LEADS)
    h = h + sinusoidal_pe(Sp, D)[None]
    for lp in params["layers"]:
        qkv = h @ lp["wqkv"].T + lp["bqkv"]
        q, k, v = jnp.split(qkv, 3, axis=-1)
        dh = D // NHEAD
        q = q.reshape(B, Sp, NHEAD, dh).transpose(0, 2, 1, 3)
        k = k.reshape(B, Sp, NHEAD, dh).transpose(0, 2, 1, 3)
        v = v.reshape(B, Sp, NHEAD, dh).transpose(0, 2, 1, 3)
        s = jnp.einsum("bhqd,bhkd->bhqk", q, k) / math.sqrt(dh)
        p = jax.nn.softmax(s, axis=-1)
        a = jnp.einsum("bhqk,bhkd->bhqd", p, v).transpose(0, 2, 1, 3).reshape(B, Sp, D)
        a = a @ lp["wo"].T + lp["bo"]

        def ln(y, g, b):
            mu = y.mean(-1, keepdims=True)
            var = ((y - mu) ** 2).mean(-1, keepdims=True)
            return (y - mu) * jax.lax.rsqrt(var + LN_EPS) * g + b

        h = ln(h + a, lp["g1"], lp["be1"])
        ff = jnp.maximum(h @ lp["w1"].T + lp["b1"], 0.0) @ lp["w2"].T + lp["b2"]
        h = ln(h + ff, lp["g2"], lp["be2"])
    dec = h @ params["dec_w"].T + params["dec_b"]
    out = dec.reshape(B, L, OUTPUT_SIZE)
    return jnp.transpose(out, (0, 2, 1))


# ----------------------------- Main ------------------------------

if __name__ == "__main__":
    key = jax.random.PRNGKey(0)
    kp, kx = jax.random.split(key)
    params = init_params(kp)

    batch, seq_len = 8, 16          # small shapes; exercises BB=4 per grid step
    src = jax.random.normal(kx, (batch, N_LEADS, seq_len), jnp.float32)

    out = forward_pallas(params, src)
    out = jax.block_until_ready(out)
    assert out.shape == (batch, OUTPUT_SIZE, seq_len), out.shape

    ref = forward_reference(params, src)
    # relaxed tolerance: softmax denominator uses the EUP approximate
    # reciprocal (pl.reciprocal(approx=True)) inside the kernel.
    assert jnp.allclose(out, ref, atol=2e-3, rtol=2e-3), \
        f"max err {jnp.max(jnp.abs(out - ref))}"

    print("KERNEL_OK")
</pallas_src>

<mosaic_0001>
module attributes {stable_mosaic.version = 11 : i64} {
  func.func @fused_transformer_kernel(%arg0: i32, %arg1: memref<32x24xf32, #tpu.memory_space<vmem>>, %arg2: memref<32x32xf32, #tpu.memory_space<vmem>>, %arg3: memref<24x32xf32, #tpu.memory_space<vmem>>, %arg4: memref<1x32xf32, #tpu.memory_space<vmem>>, %arg5: memref<2x32x96xf32, #tpu.memory_space<vmem>>, %arg6: memref<2x1x96xf32, #tpu.memory_space<vmem>>, %arg7: memref<2x32x32xf32, #tpu.memory_space<vmem>>, %arg8: memref<2x1x32xf32, #tpu.memory_space<vmem>>, %arg9: memref<2x32x64xf32, #tpu.memory_space<vmem>>, %arg10: memref<2x1x64xf32, #tpu.memory_space<vmem>>, %arg11: memref<2x64x32xf32, #tpu.memory_space<vmem>>, %arg12: memref<2x1x32xf32, #tpu.memory_space<vmem>>, %arg13: memref<2x1x32xf32, #tpu.memory_space<vmem>>, %arg14: memref<2x1x32xf32, #tpu.memory_space<vmem>>, %arg15: memref<2x1x32xf32, #tpu.memory_space<vmem>>, %arg16: memref<2x1x32xf32, #tpu.memory_space<vmem>>, %arg17: memref<10x32xf32, #tpu.memory_space<vmem>>, %arg18: memref<10x1xf32, #tpu.memory_space<vmem>>, %arg19: memref<1x10x32xf32, #tpu.memory_space<vmem>>) attributes {dimension_semantics = [#tpu.dimension_semantics<parallel>], iteration_bounds = array<i64: 2>, scalar_prefetch = 0 : i64, scratch_operands = 0 : i64, tpu.core_type = #tpu.core_type<tc>, window_params = [{transform_indices = @transform_0, window_bounds = array<i64: 32, 24>}, {pipeline_mode = #tpu.pipeline_mode<synchronous>, transform_indices = @transform_1, window_bounds = array<i64: 32, 32>}, {pipeline_mode = #tpu.pipeline_mode<synchronous>, transform_indices = @transform_2, window_bounds = array<i64: 24, 32>}, {pipeline_mode = #tpu.pipeline_mode<synchronous>, transform_indices = @transform_3, window_bounds = array<i64: 1, 32>}, {pipeline_mode = #tpu.pipeline_mode<synchronous>, transform_indices = @transform_4, window_bounds = array<i64: 2, 32, 96>}, {pipeline_mode = #tpu.pipeline_mode<synchronous>, transform_indices = @transform_5, window_bounds = array<i64: 2, 1, 96>}, {pipeline_mode = #tpu.pipeline_mode<synchronous>, transform_indices = @transform_6, window_bounds = array<i64: 2, 32, 32>}, {pipeline_mode = #tpu.pipeline_mode<synchronous>, transform_indices = @transform_7, window_bounds = array<i64: 2, 1, 32>}, {pipeline_mode = #tpu.pipeline_mode<synchronous>, transform_indices = @transform_8, window_bounds = array<i64: 2, 32, 64>}, {pipeline_mode = #tpu.pipeline_mode<synchronous>, transform_indices = @transform_9, window_bounds = array<i64: 2, 1, 64>}, {pipeline_mode = #tpu.pipeline_mode<synchronous>, transform_indices = @transform_10, window_bounds = array<i64: 2, 64, 32>}, {pipeline_mode = #tpu.pipeline_mode<synchronous>, transform_indices = @transform_11, window_bounds = array<i64: 2, 1, 32>}, {pipeline_mode = #tpu.pipeline_mode<synchronous>, transform_indices = @transform_12, window_bounds = array<i64: 2, 1, 32>}, {pipeline_mode = #tpu.pipeline_mode<synchronous>, transform_indices = @transform_13, window_bounds = array<i64: 2, 1, 32>}, {pipeline_mode = #tpu.pipeline_mode<synchronous>, transform_indices = @transform_14, window_bounds = array<i64: 2, 1, 32>}, {pipeline_mode = #tpu.pipeline_mode<synchronous>, transform_indices = @transform_15, window_bounds = array<i64: 2, 1, 32>}, {pipeline_mode = #tpu.pipeline_mode<synchronous>, transform_indices = @transform_16, window_bounds = array<i64: 10, 32>}, {pipeline_mode = #tpu.pipeline_mode<synchronous>, transform_indices = @transform_17, window_bounds = array<i64: 10, 1>}, {transform_indices = @transform_18, window_bounds = array<i64: 1, 10, 32>}]} {
    %c0 = arith.constant 0 : index
    %c0_0 = arith.constant 0 : index
    %0 = vector.load %arg1[%c0, %c0_0] : memref<32x24xf32, #tpu.memory_space<vmem>>, vector<32x24xf32>
    %c0_1 = arith.constant 0 : index
    %c0_2 = arith.constant 0 : index
    %1 = vector.load %arg3[%c0_1, %c0_2] : memref<24x32xf32, #tpu.memory_space<vmem>>, vector<24x32xf32>
    %cst = arith.constant dense<0.000000e+00> : vector<32x32xf32>
    %2 = tpu.matmul %0, %1, %cst {dimension_numbers = #tpu.dot_dimension_numbers<[1], [0], [0], [1], [0, 0, 1, 1], [], []>} : vector<32x24xf32>, vector<24x32xf32>, vector<32x32xf32> -> vector<32x32xf32>
    %c0_3 = arith.constant 0 : index
    %c0_4 = arith.constant 0 : index
    %3 = vector.load %arg4[%c0_3, %c0_4] : memref<1x32xf32, #tpu.memory_space<vmem>>, vector<1x32xf32>
    %4 = vector.broadcast %3 : vector<1x32xf32> to vector<32x32xf32>
    %5 = arith.addf %2, %4 : vector<32x32xf32>
    %c0_5 = arith.constant 0 : index
    %c0_6 = arith.constant 0 : index
    %6 = vector.load %arg2[%c0_5, %c0_6] : memref<32x32xf32, #tpu.memory_space<vmem>>, vector<32x32xf32>
    %7 = arith.addf %5, %6 : vector<32x32xf32>
    %c0_7 = arith.constant 0 : index
    %c0_8 = arith.constant 0 : index
    %c0_9 = arith.constant 0 : index
    %8 = vector.load %arg5[%c0_7, %c0_8, %c0_9] : memref<2x32x96xf32, #tpu.memory_space<vmem>>, vector<1x32x96xf32>
    %9 = vector.shape_cast %8 : vector<1x32x96xf32> to vector<32x96xf32>
    %cst_10 = arith.constant dense<0.000000e+00> : vector<32x96xf32>
    %10 = tpu.matmul %7, %9, %cst_10 {dimension_numbers = #tpu.dot_dimension_numbers<[1], [0], [0], [1], [0, 0, 1, 1], [], []>} : vector<32x32xf32>, vector<32x96xf32>, vector<32x96xf32> -> vector<32x96xf32>
    %c0_11 = arith.constant 0 : index
    %c0_12 = arith.constant 0 : index
    %c0_13 = arith.constant 0 : index
    %11 = vector.load %arg6[%c0_11, %c0_12, %c0_13] : memref<2x1x96xf32, #tpu.memory_space<vmem>>, vector<1x1x96xf32>
    %12 = vector.shape_cast %11 : vector<1x1x96xf32> to vector<1x96xf32>
    %13 = vector.broadcast %12 : vector<1x96xf32> to vector<32x96xf32>
    %14 = arith.addf %10, %13 : vector<32x96xf32>
    %15 = vector.extract_strided_slice %14 {offsets = [0, 0], sizes = [8, 96], strides = [1, 1]} : vector<32x96xf32> to vector<8x96xf32>
    %16 = vector.extract_strided_slice %15 {offsets = [0, 0], sizes = [8, 8], strides = [1, 1]} : vector<8x96xf32> to vector<8x8xf32>
    %17 = vector.extract_strided_slice %15 {offsets = [0, 32], sizes = [8, 8], strides = [1, 1]} : vector<8x96xf32> to vector<8x8xf32>
    %18 = vector.extract_strided_slice %15 {offsets = [0, 64], sizes = [8, 8], strides = [1, 1]} : vector<8x96xf32> to vector<8x8xf32>
    %cst_14 = arith.constant dense<0.000000e+00> : vector<8x8xf32>
    %19 = tpu.matmul %16, %17, %cst_14 {dimension_numbers = #tpu.dot_dimension_numbers<[1], [1], [0], [0], [0, 0, 1, 0], [], []>} : vector<8x8xf32>, vector<8x8xf32>, vector<8x8xf32> -> vector<8x8xf32>
    %cst_15 = arith.constant dense<0xFF800000> : vector<8xf32>
    %20 = vector.multi_reduction <maximumf>, %19, %cst_15 [1] : vector<8x8xf32> to vector<8xf32>
    %21 = vector.shape_cast %20 : vector<8xf32> to vector<8x1xf32>
    %22 = vector.broadcast %21 : vector<8x1xf32> to vector<8x8xf32>
    %23 = arith.subf %19, %22 : vector<8x8xf32>
    %24 = math.exp %23 : vector<8x8xf32>
    %cst_16 = arith.constant dense<0.000000e+00> : vector<8xf32>
    %25 = vector.multi_reduction <add>, %24, %cst_16 [1] : vector<8x8xf32> to vector<8xf32>
    %26 = vector.shape_cast %25 : vector<8xf32> to vector<8x1xf32>
    %27 = tpu.reciprocal %26 {approx = true} : vector<8x1xf32> -> vector<8x1xf32>
    %28 = vector.broadcast %27 : vector<8x1xf32> to vector<8x8xf32>
    %29 = arith.mulf %24, %28 : vector<8x8xf32>
    %cst_17 = arith.constant dense<0.000000e+00> : vector<8x8xf32>
    %30 = tpu.matmul %29, %18, %cst_17 {dimension_numbers = #tpu.dot_dimension_numbers<[1], [0], [0], [1], [0, 0, 1, 1], [], []>} : vector<8x8xf32>, vector<8x8xf32>, vector<8x8xf32> -> vector<8x8xf32>
    %31 = vector.extract_strided_slice %15 {offsets = [0, 8], sizes = [8, 8], strides = [1, 1]} : vector<8x96xf32> to vector<8x8xf32>
    %32 = vector.extract_strided_slice %15 {offsets = [0, 40], sizes = [8, 8], strides = [1, 1]} : vector<8x96xf32> to vector<8x8xf32>
    %33 = vector.extract_strided_slice %15 {offsets = [0, 72], sizes = [8, 8], strides = [1, 1]} : vector<8x96xf32> to vector<8x8xf32>
    %cst_18 = arith.constant dense<0.000000e+00> : vector<8x8xf32>
    %34 = tpu.matmul %31, %32, %cst_18 {dimension_numbers = #tpu.dot_dimension_numbers<[1], [1], [0], [0], [0, 0, 1, 0], [], []>} : vector<8x8xf32>, vector<8x8xf32>, vector<8x8xf32> -> vector<8x8xf32>
    %cst_19 = arith.constant dense<0xFF800000> : vector<8xf32>
    %35 = vector.multi_reduction <maximumf>, %34, %cst_19 [1] : vector<8x8xf32> to vector<8xf32>
    %36 = vector.shape_cast %35 : vector<8xf32> to vector<8x1xf32>
    %37 = vector.broadcast %36 : vector<8x1xf32> to vector<8x8xf32>
    %38 = arith.subf %34, %37 : vector<8x8xf32>
    %39 = math.exp %38 : vector<8x8xf32>
    %cst_20 = arith.constant dense<0.000000e+00> : vector<8xf32>
    %40 = vector.multi_reduction <add>, %39, %cst_20 [1] : vector<8x8xf32> to vector<8xf32>
    %41 = vector.shape_cast %40 : vector<8xf32> to vector<8x1xf32>
    %42 = tpu.reciprocal %41 {approx = true} : vector<8x1xf32> -> vector<8x1xf32>
    %43 = vector.broadcast %42 : vector<8x1xf32> to vector<8x8xf32>
    %44 = arith.mulf %39, %43 : vector<8x8xf32>
    %cst_21 = arith.constant dense<0.000000e+00> : vector<8x8xf32>
    %45 = tpu.matmul %44, %33, %cst_21 {dimension_numbers = #tpu.dot_dimension_numbers<[1], [0], [0], [1], [0, 0, 1, 1], [], []>} : vector<8x8xf32>, vector<8x8xf32>, vector<8x8xf32> -> vector<8x8xf32>
    %46 = vector.extract_strided_slice %15 {offsets = [0, 16], sizes = [8, 8], strides = [1, 1]} : vector<8x96xf32> to vector<8x8xf32>
    %47 = vector.extract_strided_slice %15 {offsets = [0, 48], sizes = [8, 8], strides = [1, 1]} : vector<8x96xf32> to vector<8x8xf32>
    %48 = vector.extract_strided_slice %15 {offsets = [0, 80], sizes = [8, 8], strides = [1, 1]} : vector<8x96xf32> to vector<8x8xf32>
    %cst_22 = arith.constant dense<0.000000e+00> : vector<8x8xf32>
    %49 = tpu.matmul %46, %47, %cst_22 {dimension_numbers = #tpu.dot_dimension_numbers<[1], [1], [0], [0], [0, 0, 1, 0], [], []>} : vector<8x8xf32>, vector<8x8xf32>, vector<8x8xf32> -> vector<8x8xf32>
    %cst_23 = arith.constant dense<0xFF800000> : vector<8xf32>
    %50 = vector.multi_reduction <maximumf>, %49, %cst_23 [1] : vector<8x8xf32> to vector<8xf32>
    %51 = vector.shape_cast %50 : vector<8xf32> to vector<8x1xf32>
    %52 = vector.broadcast %51 : vector<8x1xf32> to vector<8x8xf32>
    %53 = arith.subf %49, %52 : vector<8x8xf32>
    %54 = math.exp %53 : vector<8x8xf32>
    %cst_24 = arith.constant dense<0.000000e+00> : vector<8xf32>
    %55 = vector.multi_reduction <add>, %54, %cst_24 [1] : vector<8x8xf32> to vector<8xf32>
    %56 = vector.shape_cast %55 : vector<8xf32> to vector<8x1xf32>
    %57 = tpu.reciprocal %56 {approx = true} : vector<8x1xf32> -> vector<8x1xf32>
    %58 = vector.broadcast %57 : vector<8x1xf32> to vector<8x8xf32>
    %59 = arith.mulf %54, %58 : vector<8x8xf32>
    %cst_25 = arith.constant dense<0.000000e+00> : vector<8x8xf32>
    %60 = tpu.matmul %59, %48, %cst_25 {dimension_numbers = #tpu.dot_dimension_numbers<[1], [0], [0], [1], [0, 0, 1, 1], [], []>} : vector<8x8xf32>, vector<8x8xf32>, vector<8x8xf32> -> vector<8x8xf32>
    %61 = vector.extract_strided_slice %15 {offsets = [0, 24], sizes = [8, 8], strides = [1, 1]} : vector<8x96xf32> to vector<8x8xf32>
    %62 = vector.extract_strided_slice %15 {offsets = [0, 56], sizes = [8, 8], strides = [1, 1]} : vector<8x96xf32> to vector<8x8xf32>
    %63 = vector.extract_strided_slice %15 {offsets = [0, 88], sizes = [8, 8], strides = [1, 1]} : vector<8x96xf32> to vector<8x8xf32>
    %cst_26 = arith.constant dense<0.000000e+00> : vector<8x8xf32>
    %64 = tpu.matmul %61, %62, %cst_26 {dimension_numbers = #tpu.dot_dimension_numbers<[1], [1], [0], [0], [0, 0, 1, 0], [], []>} : vector<8x8xf32>, vector<8x8xf32>, vector<8x8xf32> -> vector<8x8xf32>
    %cst_27 = arith.constant dense<0xFF800000> : vector<8xf32>
    %65 = vector.multi_reduction <maximumf>, %64, %cst_27 [1] : vector<8x8xf32> to vector<8xf32>
    %66 = vector.shape_cast %65 : vector<8xf32> to vector<8x1xf32>
    %67 = vector.broadcast %66 : vector<8x1xf32> to vector<8x8xf32>
    %68 = arith.subf %64, %67 : vector<8x8xf32>
    %69 = math.exp %68 : vector<8x8xf32>
    %cst_28 = arith.constant dense<0.000000e+00> : vector<8xf32>
    %70 = vector.multi_reduction <add>, %69, %cst_28 [1] : vector<8x8xf32> to vector<8xf32>
    %71 = vector.shape_cast %70 : vector<8xf32> to vector<8x1xf32>
    %72 = tpu.reciprocal %71 {approx = true} : vector<8x1xf32> -> vector<8x1xf32>
    %73 = vector.broadcast %72 : vector<8x1xf32> to vector<8x8xf32>
    %74 = arith.mulf %69, %73 : vector<8x8xf32>
    %cst_29 = arith.constant dense<0.000000e+00> : vector<8x8xf32>
    %75 = tpu.matmul %74, %63, %cst_29 {dimension_numbers = #tpu.dot_dimension_numbers<[1], [0], [0], [1], [0, 0, 1, 1], [], []>} : vector<8x8xf32>, vector<8x8xf32>, vector<8x8xf32> -> vector<8x8xf32>
    %76 = tpu.concatenate %30, %45, %60, %75 in 1 : vector<8x8xf32>, vector<8x8xf32>, vector<8x8xf32>, vector<8x8xf32> -> vector<8x32xf32>
    %77 = vector.extract_strided_slice %14 {offsets = [8, 0], sizes = [8, 96], strides = [1, 1]} : vector<32x96xf32> to vector<8x96xf32>
    %78 = vector.extract_strided_slice %77 {offsets = [0, 0], sizes = [8, 8], strides = [1, 1]} : vector<8x96xf32> to vector<8x8xf32>
    %79 = vector.extract_strided_slice %77 {offsets = [0, 32], sizes = [8, 8], strides = [1, 1]} : vector<8x96xf32> to vector<8x8xf32>
    %80 = vector.extract_strided_slice %77 {offsets = [0, 64], sizes = [8, 8], strides = [1, 1]} : vector<8x96xf32> to vector<8x8xf32>
    %cst_30 = arith.constant dense<0.000000e+00> : vector<8x8xf32>
    %81 = tpu.matmul %78, %79, %cst_30 {dimension_numbers = #tpu.dot_dimension_numbers<[1], [1], [0], [0], [0, 0, 1, 0], [], []>} : vector<8x8xf32>, vector<8x8xf32>, vector<8x8xf32> -> vector<8x8xf32>
    %cst_31 = arith.constant dense<0xFF800000> : vector<8xf32>
    %82 = vector.multi_reduction <maximumf>, %81, %cst_31 [1] : vector<8x8xf32> to vector<8xf32>
    %83 = vector.shape_cast %82 : vector<8xf32> to vector<8x1xf32>
    %84 = vector.broadcast %83 : vector<8x1xf32> to vector<8x8xf32>
    %85 = arith.subf %81, %84 : vector<8x8xf32>
    %86 = math.exp %85 : vector<8x8xf32>
    %cst_32 = arith.constant dense<0.000000e+00> : vector<8xf32>
    %87 = vector.multi_reduction <add>, %86, %cst_32 [1] : vector<8x8xf32> to vector<8xf32>
    %88 = vector.shape_cast %87 : vector<8xf32> to vector<8x1xf32>
    %89 = tpu.reciprocal %88 {approx = true} : vector<8x1xf32> -> vector<8x1xf32>
    %90 = vector.broadcast %89 : vector<8x1xf32> to vector<8x8xf32>
    %91 = arith.mulf %86, %90 : vector<8x8xf32>
    %cst_33 = arith.constant dense<0.000000e+00> : vector<8x8xf32>
    %92 = tpu.matmul %91, %80, %cst_33 {dimension_numbers = #tpu.dot_dimension_numbers<[1], [0], [0], [1], [0, 0, 1, 1], [], []>} : vector<8x8xf32>, vector<8x8xf32>, vector<8x8xf32> -> vector<8x8xf32>
    %93 = vector.extract_strided_slice %77 {offsets = [0, 8], sizes = [8, 8], strides = [1, 1]} : vector<8x96xf32> to vector<8x8xf32>
    %94 = vector.extract_strided_slice %77 {offsets = [0, 40], sizes = [8, 8], strides = [1, 1]} : vector<8x96xf32> to vector<8x8xf32>
    %95 = vector.extract_strided_slice %77 {offsets = [0, 72], sizes = [8, 8], strides = [1, 1]} : vector<8x96xf32> to vector<8x8xf32>
    %cst_34 = arith.constant dense<0.000000e+00> : vector<8x8xf32>
    %96 = tpu.matmul %93, %94, %cst_34 {dimension_numbers = #tpu.dot_dimension_numbers<[1], [1], [0], [0], [0, 0, 1, 0], [], []>} : vector<8x8xf32>, vector<8x8xf32>, vector<8x8xf32> -> vector<8x8xf32>
    %cst_35 = arith.constant dense<0xFF800000> : vector<8xf32>
    %97 = vector.multi_reduction <maximumf>, %96, %cst_35 [1] : vector<8x8xf32> to vector<8xf32>
    %98 = vector.shape_cast %97 : vector<8xf32> to vector<8x1xf32>
    %99 = vector.broadcast %98 : vector<8x1xf32> to vector<8x8xf32>
    %100 = arith.subf %96, %99 : vector<8x8xf32>
    %101 = math.exp %100 : vector<8x8xf32>
    %cst_36 = arith.constant dense<0.000000e+00> : vector<8xf32>
    %102 = vector.multi_reduction <add>, %101, %cst_36 [1] : vector<8x8xf32> to vector<8xf32>
    %103 = vector.shape_cast %102 : vector<8xf32> to vector<8x1xf32>
    %104 = tpu.reciprocal %103 {approx = true} : vector<8x1xf32> -> vector<8x1xf32>
    %105 = vector.broadcast %104 : vector<8x1xf32> to vector<8x8xf32>
    %106 = arith.mulf %101, %105 : vector<8x8xf32>
    %cst_37 = arith.constant dense<0.000000e+00> : vector<8x8xf32>
    %107 = tpu.matmul %106, %95, %cst_37 {dimension_numbers = #tpu.dot_dimension_numbers<[1], [0], [0], [1], [0, 0, 1, 1], [], []>} : vector<8x8xf32>, vector<8x8xf32>, vector<8x8xf32> -> vector<8x8xf32>
    %108 = vector.extract_strided_slice %77 {offsets = [0, 16], sizes = [8, 8], strides = [1, 1]} : vector<8x96xf32> to vector<8x8xf32>
    %109 = vector.extract_strided_slice %77 {offsets = [0, 48], sizes = [8, 8], strides = [1, 1]} : vector<8x96xf32> to vector<8x8xf32>
    %110 = vector.extract_strided_slice %77 {offsets = [0, 80], sizes = [8, 8], strides = [1, 1]} : vector<8x96xf32> to vector<8x8xf32>
    %cst_38 = arith.constant dense<0.000000e+00> : vector<8x8xf32>
    %111 = tpu.matmul %108, %109, %cst_38 {dimension_numbers = #tpu.dot_dimension_numbers<[1], [1], [0], [0], [0, 0, 1, 0], [], []>} : vector<8x8xf32>, vector<8x8xf32>, vector<8x8xf32> -> vector<8x8xf32>
    %cst_39 = arith.constant dense<0xFF800000> : vector<8xf32>
    %112 = vector.multi_reduction <maximumf>, %111, %cst_39 [1] : vector<8x8xf32> to vector<8xf32>
    %113 = vector.shape_cast %112 : vector<8xf32> to vector<8x1xf32>
    %114 = vector.broadcast %113 : vector<8x1xf32> to vector<8x8xf32>
    %115 = arith.subf %111, %114 : vector<8x8xf32>
    %116 = math.exp %115 : vector<8x8xf32>
    %cst_40 = arith.constant dense<0.000000e+00> : vector<8xf32>
    %117 = vector.multi_reduction <add>, %116, %cst_40 [1] : vector<8x8xf32> to vector<8xf32>
    %118 = vector.shape_cast %117 : vector<8xf32> to vector<8x1xf32>
    %119 = tpu.reciprocal %118 {approx = true} : vector<8x1xf32> -> vector<8x1xf32>
    %120 = vector.broadcast %119 : vector<8x1xf32> to vector<8x8xf32>
    %121 = arith.mulf %116, %120 : vector<8x8xf32>
    %cst_41 = arith.constant dense<0.000000e+00> : vector<8x8xf32>
    %122 = tpu.matmul %121, %110, %cst_41 {dimension_numbers = #tpu.dot_dimension_numbers<[1], [0], [0], [1], [0, 0, 1, 1], [], []>} : vector<8x8xf32>, vector<8x8xf32>, vector<8x8xf32> -> vector<8x8xf32>
    %123 = vector.extract_strided_slice %77 {offsets = [0, 24], sizes = [8, 8], strides = [1, 1]} : vector<8x96xf32> to vector<8x8xf32>
    %124 = vector.extract_strided_slice %77 {offsets = [0, 56], sizes = [8, 8], strides = [1, 1]} : vector<8x96xf32> to vector<8x8xf32>
    %125 = vector.extract_strided_slice %77 {offsets = [0, 88], sizes = [8, 8], strides = [1, 1]} : vector<8x96xf32> to vector<8x8xf32>
    %cst_42 = arith.constant dense<0.000000e+00> : vector<8x8xf32>
    %126 = tpu.matmul %123, %124, %cst_42 {dimension_numbers = #tpu.dot_dimension_numbers<[1], [1], [0], [0], [0, 0, 1, 0], [], []>} : vector<8x8xf32>, vector<8x8xf32>, vector<8x8xf32> -> vector<8x8xf32>
    %cst_43 = arith.constant dense<0xFF800000> : vector<8xf32>
    %127 = vector.multi_reduction <maximumf>, %126, %cst_43 [1] : vector<8x8xf32> to vector<8xf32>
    %128 = vector.shape_cast %127 : vector<8xf32> to vector<8x1xf32>
    %129 = vector.broadcast %128 : vector<8x1xf32> to vector<8x8xf32>
    %130 = arith.subf %126, %129 : vector<8x8xf32>
    %131 = math.exp %130 : vector<8x8xf32>
    %cst_44 = arith.constant dense<0.000000e+00> : vector<8xf32>
    %132 = vector.multi_reduction <add>, %131, %cst_44 [1] : vector<8x8xf32> to vector<8xf32>
    %133 = vector.shape_cast %132 : vector<8xf32> to vector<8x1xf32>
    %134 = tpu.reciprocal %133 {approx = true} : vector<8x1xf32> -> vector<8x1xf32>
    %135 = vector.broadcast %134 : vector<8x1xf32> to vector<8x8xf32>
    %136 = arith.mulf %131, %135 : vector<8x8xf32>
    %cst_45 = arith.constant dense<0.000000e+00> : vector<8x8xf32>
    %137 = tpu.matmul %136, %125, %cst_45 {dimension_numbers = #tpu.dot_dimension_numbers<[1], [0], [0], [1], [0, 0, 1, 1], [], []>} : vector<8x8xf32>, vector<8x8xf32>, vector<8x8xf32> -> vector<8x8xf32>
    %138 = tpu.concatenate %92, %107, %122, %137 in 1 : vector<8x8xf32>, vector<8x8xf32>, vector<8x8xf32>, vector<8x8xf32> -> vector<8x32xf32>
    %139 = vector.extract_strided_slice %14 {offsets = [16, 0], sizes = [8, 96], strides = [1, 1]} : vector<32x96xf32> to vector<8x96xf32>
    %140 = vector.extract_strided_slice %139 {offsets = [0, 0], sizes = [8, 8], strides = [1, 1]} : vector<8x96xf32> to vector<8x8xf32>
    %141 = vector.extract_strided_slice %139 {offsets = [0, 32], sizes = [8, 8], strides = [1, 1]} : vector<8x96xf32> to vector<8x8xf32>
    %142 = vector.extract_strided_slice %139 {offsets = [0, 64], sizes = [8, 8], strides = [1, 1]} : vector<8x96xf32> to vector<8x8xf32>
    %cst_46 = arith.constant dense<0.000000e+00> : vector<8x8xf32>
    %143 = tpu.matmul %140, %141, %cst_46 {dimension_numbers = #tpu.dot_dimension_numbers<[1], [1], [0], [0], [0, 0, 1, 0], [], []>} : vector<8x8xf32>, vector<8x8xf32>, vector<8x8xf32> -> vector<8x8xf32>
    %cst_47 = arith.constant dense<0xFF800000> : vector<8xf32>
    %144 = vector.multi_reduction <maximumf>, %143, %cst_47 [1] : vector<8x8xf32> to vector<8xf32>
    %145 = vector.shape_cast %144 : vector<8xf32> to vector<8x1xf32>
    %146 = vector.broadcast %145 : vector<8x1xf32> to vector<8x8xf32>
    %147 = arith.subf %143, %146 : vector<8x8xf32>
    %148 = math.exp %147 : vector<8x8xf32>
    %cst_48 = arith.constant dense<0.000000e+00> : vector<8xf32>
    %149 = vector.multi_reduction <add>, %148, %cst_48 [1] : vector<8x8xf32> to vector<8xf32>
    %150 = vector.shape_cast %149 : vector<8xf32> to vector<8x1xf32>
    %151 = tpu.reciprocal %150 {approx = true} : vector<8x1xf32> -> vector<8x1xf32>
    %152 = vector.broadcast %151 : vector<8x1xf32> to vector<8x8xf32>
    %153 = arith.mulf %148, %152 : vector<8x8xf32>
    %cst_49 = arith.constant dense<0.000000e+00> : vector<8x8xf32>
    %154 = tpu.matmul %153, %142, %cst_49 {dimension_numbers = #tpu.dot_dimension_numbers<[1], [0], [0], [1], [0, 0, 1, 1], [], []>} : vector<8x8xf32>, vector<8x8xf32>, vector<8x8xf32> -> vector<8x8xf32>
    %155 = vector.extract_strided_slice %139 {offsets = [0, 8], sizes = [8, 8], strides = [1, 1]} : vector<8x96xf32> to vector<8x8xf32>
    %156 = vector.extract_strided_slice %139 {offsets = [0, 40], sizes = [8, 8], strides = [1, 1]} : vector<8x96xf32> to vector<8x8xf32>
    %157 = vector.extract_strided_slice %139 {offsets = [0, 72], sizes = [8, 8], strides = [1, 1]} : vector<8x96xf32> to vector<8x8xf32>
    %cst_50 = arith.constant dense<0.000000e+00> : vector<8x8xf32>
    %158 = tpu.matmul %155, %156, %cst_50 {dimension_numbers = #tpu.dot_dimension_numbers<[1], [1], [0], [0], [0, 0, 1, 0], [], []>} : vector<8x8xf32>, vector<8x8xf32>, vector<8x8xf32> -> vector<8x8xf32>
    %cst_51 = arith.constant dense<0xFF800000> : vector<8xf32>
    %159 = vector.multi_reduction <maximumf>, %158, %cst_51 [1] : vector<8x8xf32> to vector<8xf32>
    %160 = vector.shape_cast %159 : vector<8xf32> to vector<8x1xf32>
    %161 = vector.broadcast %160 : vector<8x1xf32> to vector<8x8xf32>
    %162 = arith.subf %158, %161 : vector<8x8xf32>
    %163 = math.exp %162 : vector<8x8xf32>
    %cst_52 = arith.constant dense<0.000000e+00> : vector<8xf32>
    %164 = vector.multi_reduction <add>, %163, %cst_52 [1] : vector<8x8xf32> to vector<8xf32>
    %165 = vector.shape_cast %164 : vector<8xf32> to vector<8x1xf32>
    %166 = tpu.reciprocal %165 {approx = true} : vector<8x1xf32> -> vector<8x1xf32>
    %167 = vector.broadcast %166 : vector<8x1xf32> to vector<8x8xf32>
    %168 = arith.mulf %163, %167 : vector<8x8xf32>
    %cst_53 = arith.constant dense<0.000000e+00> : vector<8x8xf32>
    %169 = tpu.matmul %168, %157, %cst_53 {dimension_numbers = #tpu.dot_dimension_numbers<[1], [0], [0], [1], [0, 0, 1, 1], [], []>} : vector<8x8xf32>, vector<8x8xf32>, vector<8x8xf32> -> vector<8x8xf32>
    %170 = vector.extract_strided_slice %139 {offsets = [0, 16], sizes = [8, 8], strides = [1, 1]} : vector<8x96xf32> to vector<8x8xf32>
    %171 = vector.extract_strided_slice %139 {offsets = [0, 48], sizes = [8, 8], strides = [1, 1]} : vector<8x96xf32> to vector<8x8xf32>
    %172 = vector.extract_strided_slice %139 {offsets = [0, 80], sizes = [8, 8], strides = [1, 1]} : vector<8x96xf32> to vector<8x8xf32>
    %cst_54 = arith.constant dense<0.000000e+00> : vector<8x8xf32>
    %173 = tpu.matmul %170, %171, %cst_54 {dimension_numbers = #tpu.dot_dimension_numbers<[1], [1], [0], [0], [0, 0, 1, 0], [], []>} : vector<8x8xf32>, vector<8x8xf32>, vector<8x8xf32> -> vector<8x8xf32>
    %cst_55 = arith.constant dense<0xFF800000> : vector<8xf32>
    %174 = vector.multi_reduction <maximumf>, %173, %cst_55 [1] : vector<8x8xf32> to vector<8xf32>
    %175 = vector.shape_cast %174 : vector<8xf32> to vector<8x1xf32>
    %176 = vector.broadcast %175 : vector<8x1xf32> to vector<8x8xf32>
    %177 = arith.subf %173, %176 : vector<8x8xf32>
    %178 = math.exp %177 : vector<8x8xf32>
    %cst_56 = arith.constant dense<0.000000e+00> : vector<8xf32>
    %179 = vector.multi_reduction <add>, %178, %cst_56 [1] : vector<8x8xf32> to vector<8xf32>
    %180 = vector.shape_cast %179 : vector<8xf32> to vector<8x1xf32>
    %181 = tpu.reciprocal %180 {approx = true} : vector<8x1xf32> -> vector<8x1xf32>
    %182 = vector.broadcast %181 : vector<8x1xf32> to vector<8x8xf32>
    %183 = arith.mulf %178, %182 : vector<8x8xf32>
    %cst_57 = arith.constant dense<0.000000e+00> : vector<8x8xf32>
    %184 = tpu.matmul %183, %172, %cst_57 {dimension_numbers = #tpu.dot_dimension_numbers<[1], [0], [0], [1], [0, 0, 1, 1], [], []>} : vector<8x8xf32>, vector<8x8xf32>, vector<8x8xf32> -> vector<8x8xf32>
    %185 = vector.extract_strided_slice %139 {offsets = [0, 24], sizes = [8, 8], strides = [1, 1]} : vector<8x96xf32> to vector<8x8xf32>
    %186 = vector.extract_strided_slice %139 {offsets = [0, 56], sizes = [8, 8], strides = [1, 1]} : vector<8x96xf32> to vector<8x8xf32>
    %187 = vector.extract_strided_slice %139 {offsets = [0, 88], sizes = [8, 8], strides = [1, 1]} : vector<8x96xf32> to vector<8x8xf32>
    %cst_58 = arith.constant dense<0.000000e+00> : vector<8x8xf32>
    %188 = tpu.matmul %185, %186, %cst_58 {dimension_numbers = #tpu.dot_dimension_numbers<[1], [1], [0], [0], [0, 0, 1, 0], [], []>} : vector<8x8xf32>, vector<8x8xf32>, vector<8x8xf32> -> vector<8x8xf32>
    %cst_59 = arith.constant dense<0xFF800000> : vector<8xf32>
    %189 = vector.multi_reduction <maximumf>, %188, %cst_59 [1] : vector<8x8xf32> to vector<8xf32>
    %190 = vector.shape_cast %189 : vector<8xf32> to vector<8x1xf32>
    %191 = vector.broadcast %190 : vector<8x1xf32> to vector<8x8xf32>
    %192 = arith.subf %188, %191 : vector<8x8xf32>
    %193 = math.exp %192 : vector<8x8xf32>
    %cst_60 = arith.constant dense<0.000000e+00> : vector<8xf32>
    %194 = vector.multi_reduction <add>, %193, %cst_60 [1] : vector<8x8xf32> to vector<8xf32>
    %195 = vector.shape_cast %194 : vector<8xf32> to vector<8x1xf32>
    %196 = tpu.reciprocal %195 {approx = true} : vector<8x1xf32> -> vector<8x1xf32>
    %197 = vector.broadcast %196 : vector<8x1xf32> to vector<8x8xf32>
    %198 = arith.mulf %193, %197 : vector<8x8xf32>
    %cst_61 = arith.constant dense<0.000000e+00> : vector<8x8xf32>
    %199 = tpu.matmul %198, %187, %cst_61 {dimension_numbers = #tpu.dot_dimension_numbers<[1], [0], [0], [1], [0, 0, 1, 1], [], []>} : vector<8x8xf32>, vector<8x8xf32>, vector<8x8xf32> -> vector<8x8xf32>
    %200 = tpu.concatenate %154, %169, %184, %199 in 1 : vector<8x8xf32>, vector<8x8xf32>, vector<8x8xf32>, vector<8x8xf32> -> vector<8x32xf32>
    %201 = vector.extract_strided_slice %14 {offsets = [24, 0], sizes = [8, 96], strides = [1, 1]} : vector<32x96xf32> to vector<8x96xf32>
    %202 = vector.extract_strided_slice %201 {offsets = [0, 0], sizes = [8, 8], strides = [1, 1]} : vector<8x96xf32> to vector<8x8xf32>
    %203 = vector.extract_strided_slice %201 {offsets = [0, 32], sizes = [8, 8], strides = [1, 1]} : vector<8x96xf32> to vector<8x8xf32>
    %204 = vector.extract_strided_slice %201 {offsets = [0, 64], sizes = [8, 8], strides = [1, 1]} : vector<8x96xf32> to vector<8x8xf32>
    %cst_62 = arith.constant dense<0.000000e+00> : vector<8x8xf32>
    %205 = tpu.matmul %202, %203, %cst_62 {dimension_numbers = #tpu.dot_dimension_numbers<[1], [1], [0], [0], [0, 0, 1, 0], [], []>} : vector<8x8xf32>, vector<8x8xf32>, vector<8x8xf32> -> vector<8x8xf32>
    %cst_63 = arith.constant dense<0xFF800000> : vector<8xf32>
    %206 = vector.multi_reduction <maximumf>, %205, %cst_63 [1] : vector<8x8xf32> to vector<8xf32>
    %207 = vector.shape_cast %206 : vector<8xf32> to vector<8x1xf32>
    %208 = vector.broadcast %207 : vector<8x1xf32> to vector<8x8xf32>
    %209 = arith.subf %205, %208 : vector<8x8xf32>
    %210 = math.exp %209 : vector<8x8xf32>
    %cst_64 = arith.constant dense<0.000000e+00> : vector<8xf32>
    %211 = vector.multi_reduction <add>, %210, %cst_64 [1] : vector<8x8xf32> to vector<8xf32>
    %212 = vector.shape_cast %211 : vector<8xf32> to vector<8x1xf32>
    %213 = tpu.reciprocal %212 {approx = true} : vector<8x1xf32> -> vector<8x1xf32>
    %214 = vector.broadcast %213 : vector<8x1xf32> to vector<8x8xf32>
    %215 = arith.mulf %210, %214 : vector<8x8xf32>
    %cst_65 = arith.constant dense<0.000000e+00> : vector<8x8xf32>
    %216 = tpu.matmul %215, %204, %cst_65 {dimension_numbers = #tpu.dot_dimension_numbers<[1], [0], [0], [1], [0, 0, 1, 1], [], []>} : vector<8x8xf32>, vector<8x8xf32>, vector<8x8xf32> -> vector<8x8xf32>
    %217 = vector.extract_strided_slice %201 {offsets = [0, 8], sizes = [8, 8], strides = [1, 1]} : vector<8x96xf32> to vector<8x8xf32>
    %218 = vector.extract_strided_slice %201 {offsets = [0, 40], sizes = [8, 8], strides = [1, 1]} : vector<8x96xf32> to vector<8x8xf32>
    %219 = vector.extract_strided_slice %201 {offsets = [0, 72], sizes = [8, 8], strides = [1, 1]} : vector<8x96xf32> to vector<8x8xf32>
    %cst_66 = arith.constant dense<0.000000e+00> : vector<8x8xf32>
    %220 = tpu.matmul %217, %218, %cst_66 {dimension_numbers = #tpu.dot_dimension_numbers<[1], [1], [0], [0], [0, 0, 1, 0], [], []>} : vector<8x8xf32>, vector<8x8xf32>, vector<8x8xf32> -> vector<8x8xf32>
    %cst_67 = arith.constant dense<0xFF800000> : vector<8xf32>
    %221 = vector.multi_reduction <maximumf>, %220, %cst_67 [1] : vector<8x8xf32> to vector<8xf32>
    %222 = vector.shape_cast %221 : vector<8xf32> to vector<8x1xf32>
    %223 = vector.broadcast %222 : vector<8x1xf32> to vector<8x8xf32>
    %224 = arith.subf %220, %223 : vector<8x8xf32>
    %225 = math.exp %224 : vector<8x8xf32>
    %cst_68 = arith.constant dense<0.000000e+00> : vector<8xf32>
    %226 = vector.multi_reduction <add>, %225, %cst_68 [1] : vector<8x8xf32> to vector<8xf32>
    %227 = vector.shape_cast %226 : vector<8xf32> to vector<8x1xf32>
    %228 = tpu.reciprocal %227 {approx = true} : vector<8x1xf32> -> vector<8x1xf32>
    %229 = vector.broadcast %228 : vector<8x1xf32> to vector<8x8xf32>
    %230 = arith.mulf %225, %229 : vector<8x8xf32>
    %cst_69 = arith.constant dense<0.000000e+00> : vector<8x8xf32>
    %231 = tpu.matmul %230, %219, %cst_69 {dimension_numbers = #tpu.dot_dimension_numbers<[1], [0], [0], [1], [0, 0, 1, 1], [], []>} : vector<8x8xf32>, vector<8x8xf32>, vector<8x8xf32> -> vector<8x8xf32>
    %232 = vector.extract_strided_slice %201 {offsets = [0, 16], sizes = [8, 8], strides = [1, 1]} : vector<8x96xf32> to vector<8x8xf32>
    %233 = vector.extract_strided_slice %201 {offsets = [0, 48], sizes = [8, 8], strides = [1, 1]} : vector<8x96xf32> to vector<8x8xf32>
    %234 = vector.extract_strided_slice %201 {offsets = [0, 80], sizes = [8, 8], strides = [1, 1]} : vector<8x96xf32> to vector<8x8xf32>
    %cst_70 = arith.constant dense<0.000000e+00> : vector<8x8xf32>
    %235 = tpu.matmul %232, %233, %cst_70 {dimension_numbers = #tpu.dot_dimension_numbers<[1], [1], [0], [0], [0, 0, 1, 0], [], []>} : vector<8x8xf32>, vector<8x8xf32>, vector<8x8xf32> -> vector<8x8xf32>
    %cst_71 = arith.constant dense<0xFF800000> : vector<8xf32>
    %236 = vector.multi_reduction <maximumf>, %235, %cst_71 [1] : vector<8x8xf32> to vector<8xf32>
    %237 = vector.shape_cast %236 : vector<8xf32> to vector<8x1xf32>
    %238 = vector.broadcast %237 : vector<8x1xf32> to vector<8x8xf32>
    %239 = arith.subf %235, %238 : vector<8x8xf32>
    %240 = math.exp %239 : vector<8x8xf32>
    %cst_72 = arith.constant dense<0.000000e+00> : vector<8xf32>
    %241 = vector.multi_reduction <add>, %240, %cst_72 [1] : vector<8x8xf32> to vector<8xf32>
    %242 = vector.shape_cast %241 : vector<8xf32> to vector<8x1xf32>
    %243 = tpu.reciprocal %242 {approx = true} : vector<8x1xf32> -> vector<8x1xf32>
    %244 = vector.broadcast %243 : vector<8x1xf32> to vector<8x8xf32>
    %245 = arith.mulf %240, %244 : vector<8x8xf32>
    %cst_73 = arith.constant dense<0.000000e+00> : vector<8x8xf32>
    %246 = tpu.matmul %245, %234, %cst_73 {dimension_numbers = #tpu.dot_dimension_numbers<[1], [0], [0], [1], [0, 0, 1, 1], [], []>} : vector<8x8xf32>, vector<8x8xf32>, vector<8x8xf32> -> vector<8x8xf32>
    %247 = vector.extract_strided_slice %201 {offsets = [0, 24], sizes = [8, 8], strides = [1, 1]} : vector<8x96xf32> to vector<8x8xf32>
    %248 = vector.extract_strided_slice %201 {offsets = [0, 56], sizes = [8, 8], strides = [1, 1]} : vector<8x96xf32> to vector<8x8xf32>
    %249 = vector.extract_strided_slice %201 {offsets = [0, 88], sizes = [8, 8], strides = [1, 1]} : vector<8x96xf32> to vector<8x8xf32>
    %cst_74 = arith.constant dense<0.000000e+00> : vector<8x8xf32>
    %250 = tpu.matmul %247, %248, %cst_74 {dimension_numbers = #tpu.dot_dimension_numbers<[1], [1], [0], [0], [0, 0, 1, 0], [], []>} : vector<8x8xf32>, vector<8x8xf32>, vector<8x8xf32> -> vector<8x8xf32>
    %cst_75 = arith.constant dense<0xFF800000> : vector<8xf32>
    %251 = vector.multi_reduction <maximumf>, %250, %cst_75 [1] : vector<8x8xf32> to vector<8xf32>
    %252 = vector.shape_cast %251 : vector<8xf32> to vector<8x1xf32>
    %253 = vector.broadcast %252 : vector<8x1xf32> to vector<8x8xf32>
    %254 = arith.subf %250, %253 : vector<8x8xf32>
    %255 = math.exp %254 : vector<8x8xf32>
    %cst_76 = arith.constant dense<0.000000e+00> : vector<8xf32>
    %256 = vector.multi_reduction <add>, %255, %cst_76 [1] : vector<8x8xf32> to vector<8xf32>
    %257 = vector.shape_cast %256 : vector<8xf32> to vector<8x1xf32>
    %258 = tpu.reciprocal %257 {approx = true} : vector<8x1xf32> -> vector<8x1xf32>
    %259 = vector.broadcast %258 : vector<8x1xf32> to vector<8x8xf32>
    %260 = arith.mulf %255, %259 : vector<8x8xf32>
    %cst_77 = arith.constant dense<0.000000e+00> : vector<8x8xf32>
    %261 = tpu.matmul %260, %249, %cst_77 {dimension_numbers = #tpu.dot_dimension_numbers<[1], [0], [0], [1], [0, 0, 1, 1], [], []>} : vector<8x8xf32>, vector<8x8xf32>, vector<8x8xf32> -> vector<8x8xf32>
    %262 = tpu.concatenate %216, %231, %246, %261 in 1 : vector<8x8xf32>, vector<8x8xf32>, vector<8x8xf32>, vector<8x8xf32> -> vector<8x32xf32>
    %263 = tpu.concatenate %76, %138, %200, %262 in 0 : vector<8x32xf32>, vector<8x32xf32>, vector<8x32xf32>, vector<8x32xf32> -> vector<32x32xf32>
    %c0_78 = arith.constant 0 : index
    %c0_79 = arith.constant 0 : index
    %c0_80 = arith.constant 0 : index
    %264 = vector.load %arg7[%c0_78, %c0_79, %c0_80] : memref<2x32x32xf32, #tpu.memory_space<vmem>>, vector<1x32x32xf32>
    %265 = vector.shape_cast %264 : vector<1x32x32xf32> to vector<32x32xf32>
    %cst_81 = arith.constant dense<0.000000e+00> : vector<32x32xf32>
    %266 = tpu.matmul %263, %265, %cst_81 {dimension_numbers = #tpu.dot_dimension_numbers<[1], [0], [0], [1], [0, 0, 1, 1], [], []>} : vector<32x32xf32>, vector<32x32xf32>, vector<32x32xf32> -> vector<32x32xf32>
    %c0_82 = arith.constant 0 : index
    %c0_83 = arith.constant 0 : index
    %c0_84 = arith.constant 0 : index
    %267 = vector.load %arg8[%c0_82, %c0_83, %c0_84] : memref<2x1x32xf32, #tpu.memory_space<vmem>>, vector<1x1x32xf32>
    %268 = vector.shape_cast %267 : vector<1x1x32xf32> to vector<1x32xf32>
    %269 = vector.broadcast %268 : vector<1x32xf32> to vector<32x32xf32>
    %270 = arith.addf %266, %269 : vector<32x32xf32>
    %271 = arith.addf %7, %270 : vector<32x32xf32>
    %c0_85 = arith.constant 0 : index
    %c0_86 = arith.constant 0 : index
    %c0_87 = arith.constant 0 : index
    %272 = vector.load %arg13[%c0_85, %c0_86, %c0_87] : memref<2x1x32xf32, #tpu.memory_space<vmem>>, vector<1x1x32xf32>
    %273 = vector.shape_cast %272 : vector<1x1x32xf32> to vector<1x32xf32>
    %c0_88 = arith.constant 0 : index
    %c0_89 = arith.constant 0 : index
    %c0_90 = arith.constant 0 : index
    %274 = vector.load %arg14[%c0_88, %c0_89, %c0_90] : memref<2x1x32xf32, #tpu.memory_space<vmem>>, vector<1x1x32xf32>
    %275 = vector.shape_cast %274 : vector<1x1x32xf32> to vector<1x32xf32>
    %cst_91 = arith.constant dense<0.000000e+00> : vector<32xf32>
    %276 = vector.multi_reduction <add>, %271, %cst_91 [1] : vector<32x32xf32> to vector<32xf32>
    %277 = vector.shape_cast %276 : vector<32xf32> to vector<32x1xf32>
    %cst_92 = arith.constant 3.200000e+01 : f32
    %278 = vector.broadcast %cst_92 : f32 to vector<32x1xf32>
    %279 = arith.divf %277, %278 : vector<32x1xf32>
    %280 = vector.broadcast %279 : vector<32x1xf32> to vector<32x32xf32>
    %281 = arith.subf %271, %280 : vector<32x32xf32>
    %282 = arith.mulf %281, %281 : vector<32x32xf32>
    %cst_93 = arith.constant dense<0.000000e+00> : vector<32xf32>
    %283 = vector.multi_reduction <add>, %282, %cst_93 [1] : vector<32x32xf32> to vector<32xf32>
    %284 = vector.shape_cast %283 : vector<32xf32> to vector<32x1xf32>
    %cst_94 = arith.constant 3.200000e+01 : f32
    %285 = vector.broadcast %cst_94 : f32 to vector<32x1xf32>
    %286 = arith.divf %284, %285 : vector<32x1xf32>
    %287 = vector.broadcast %279 : vector<32x1xf32> to vector<32x32xf32>
    %288 = arith.subf %271, %287 : vector<32x32xf32>
    %cst_95 = arith.constant 9.99999974E-6 : f32
    %289 = vector.broadcast %cst_95 : f32 to vector<32x1xf32>
    %290 = arith.addf %286, %289 : vector<32x1xf32>
    %291 = math.rsqrt %290 : vector<32x1xf32>
    %292 = vector.broadcast %291 : vector<32x1xf32> to vector<32x32xf32>
    %293 = arith.mulf %288, %292 : vector<32x32xf32>
    %294 = vector.broadcast %273 : vector<1x32xf32> to vector<32x32xf32>
    %295 = arith.mulf %293, %294 : vector<32x32xf32>
    %296 = vector.broadcast %275 : vector<1x32xf32> to vector<32x32xf32>
    %297 = arith.addf %295, %296 : vector<32x32xf32>
    %c0_96 = arith.constant 0 : index
    %c0_97 = arith.constant 0 : index
    %c0_98 = arith.constant 0 : index
    %298 = vector.load %arg9[%c0_96, %c0_97, %c0_98] : memref<2x32x64xf32, #tpu.memory_space<vmem>>, vector<1x32x64xf32>
    %299 = vector.shape_cast %298 : vector<1x32x64xf32> to vector<32x64xf32>
    %cst_99 = arith.constant dense<0.000000e+00> : vector<32x64xf32>
    %300 = tpu.matmul %297, %299, %cst_99 {dimension_numbers = #tpu.dot_dimension_numbers<[1], [0], [0], [1], [0, 0, 1, 1], [], []>} : vector<32x32xf32>, vector<32x64xf32>, vector<32x64xf32> -> vector<32x64xf32>
    %c0_100 = arith.constant 0 : index
    %c0_101 = arith.constant 0 : index
    %c0_102 = arith.constant 0 : index
    %301 = vector.load %arg10[%c0_100, %c0_101, %c0_102] : memref<2x1x64xf32, #tpu.memory_space<vmem>>, vector<1x1x64xf32>
    %302 = vector.shape_cast %301 : vector<1x1x64xf32> to vector<1x64xf32>
    %303 = vector.broadcast %302 : vector<1x64xf32> to vector<32x64xf32>
    %304 = arith.addf %300, %303 : vector<32x64xf32>
    %cst_103 = arith.constant 0.000000e+00 : f32
    %305 = vector.broadcast %cst_103 : f32 to vector<32x64xf32>
    %306 = arith.maximumf %304, %305 : vector<32x64xf32>
    %c0_104 = arith.constant 0 : index
    %c0_105 = arith.constant 0 : index
    %c0_106 = arith.constant 0 : index
    %307 = vector.load %arg11[%c0_104, %c0_105, %c0_106] : memref<2x64x32xf32, #tpu.memory_space<vmem>>, vector<1x64x32xf32>
    %308 = vector.shape_cast %307 : vector<1x64x32xf32> to vector<64x32xf32>
    %cst_107 = arith.constant dense<0.000000e+00> : vector<32x32xf32>
    %309 = tpu.matmul %306, %308, %cst_107 {dimension_numbers = #tpu.dot_dimension_numbers<[1], [0], [0], [1], [0, 0, 1, 1], [], []>} : vector<32x64xf32>, vector<64x32xf32>, vector<32x32xf32> -> vector<32x32xf32>
    %c0_108 = arith.constant 0 : index
    %c0_109 = arith.constant 0 : index
    %c0_110 = arith.constant 0 : index
    %310 = vector.load %arg12[%c0_108, %c0_109, %c0_110] : memref<2x1x32xf32, #tpu.memory_space<vmem>>, vector<1x1x32xf32>
    %311 = vector.shape_cast %310 : vector<1x1x32xf32> to vector<1x32xf32>
    %312 = vector.broadcast %311 : vector<1x32xf32> to vector<32x32xf32>
    %313 = arith.addf %309, %312 : vector<32x32xf32>
    %314 = arith.addf %297, %313 : vector<32x32xf32>
    %c0_111 = arith.constant 0 : index
    %c0_112 = arith.constant 0 : index
    %c0_113 = arith.constant 0 : index
    %315 = vector.load %arg15[%c0_111, %c0_112, %c0_113] : memref<2x1x32xf32, #tpu.memory_space<vmem>>, vector<1x1x32xf32>
    %316 = vector.shape_cast %315 : vector<1x1x32xf32> to vector<1x32xf32>
    %c0_114 = arith.constant 0 : index
    %c0_115 = arith.constant 0 : index
    %c0_116 = arith.constant 0 : index
    %317 = vector.load %arg16[%c0_114, %c0_115, %c0_116] : memref<2x1x32xf32, #tpu.memory_space<vmem>>, vector<1x1x32xf32>
    %318 = vector.shape_cast %317 : vector<1x1x32xf32> to vector<1x32xf32>
    %cst_117 = arith.constant dense<0.000000e+00> : vector<32xf32>
    %319 = vector.multi_reduction <add>, %314, %cst_117 [1] : vector<32x32xf32> to vector<32xf32>
    %320 = vector.shape_cast %319 : vector<32xf32> to vector<32x1xf32>
    %cst_118 = arith.constant 3.200000e+01 : f32
    %321 = vector.broadcast %cst_118 : f32 to vector<32x1xf32>
    %322 = arith.divf %320, %321 : vector<32x1xf32>
    %323 = vector.broadcast %322 : vector<32x1xf32> to vector<32x32xf32>
    %324 = arith.subf %314, %323 : vector<32x32xf32>
    %325 = arith.mulf %324, %324 : vector<32x32xf32>
    %cst_119 = arith.constant dense<0.000000e+00> : vector<32xf32>
    %326 = vector.multi_reduction <add>, %325, %cst_119 [1] : vector<32x32xf32> to vector<32xf32>
    %327 = vector.shape_cast %326 : vector<32xf32> to vector<32x1xf32>
    %cst_120 = arith.constant 3.200000e+01 : f32
    %328 = vector.broadcast %cst_120 : f32 to vector<32x1xf32>
    %329 = arith.divf %327, %328 : vector<32x1xf32>
    %330 = vector.broadcast %322 : vector<32x1xf32> to vector<32x32xf32>
    %331 = arith.subf %314, %330 : vector<32x32xf32>
    %cst_121 = arith.constant 9.99999974E-6 : f32
    %332 = vector.broadcast %cst_121 : f32 to vector<32x1xf32>
    %333 = arith.addf %329, %332 : vector<32x1xf32>
    %334 = math.rsqrt %333 : vector<32x1xf32>
    %335 = vector.broadcast %334 : vector<32x1xf32> to vector<32x32xf32>
    %336 = arith.mulf %331, %335 : vector<32x32xf32>
    %337 = vector.broadcast %316 : vector<1x32xf32> to vector<32x32xf32>
    %338 = arith.mulf %336, %337 : vector<32x32xf32>
    %339 = vector.broadcast %318 : vector<1x32xf32> to vector<32x32xf32>
    %340 = arith.addf %338, %339 : vector<32x32xf32>
    %c1 = arith.constant 1 : index
    %c0_122 = arith.constant 0 : index
    %c0_123 = arith.constant 0 : index
    %341 = vector.load %arg5[%c1, %c0_122, %c0_123] : memref<2x32x96xf32, #tpu.memory_space<vmem>>, vector<1x32x96xf32>
    %342 = vector.shape_cast %341 : vector<1x32x96xf32> to vector<32x96xf32>
    %cst_124 = arith.constant dense<0.000000e+00> : vector<32x96xf32>
    %343 = tpu.matmul %340, %342, %cst_124 {dimension_numbers = #tpu.dot_dimension_numbers<[1], [0], [0], [1], [0, 0, 1, 1], [], []>} : vector<32x32xf32>, vector<32x96xf32>, vector<32x96xf32> -> vector<32x96xf32>
    %c1_125 = arith.constant 1 : index
    %c0_126 = arith.constant 0 : index
    %c0_127 = arith.constant 0 : index
    %344 = vector.load %arg6[%c1_125, %c0_126, %c0_127] : memref<2x1x96xf32, #tpu.memory_space<vmem>>, vector<1x1x96xf32>
    %345 = vector.shape_cast %344 : vector<1x1x96xf32> to vector<1x96xf32>
    %346 = vector.broadcast %345 : vector<1x96xf32> to vector<32x96xf32>
    %347 = arith.addf %343, %346 : vector<32x96xf32>
    %348 = vector.extract_strided_slice %347 {offsets = [0, 0], sizes = [8, 96], strides = [1, 1]} : vector<32x96xf32> to vector<8x96xf32>
    %349 = vector.extract_strided_slice %348 {offsets = [0, 0], sizes = [8, 8], strides = [1, 1]} : vector<8x96xf32> to vector<8x8xf32>
    %350 = vector.extract_strided_slice %348 {offsets = [0, 32], sizes = [8, 8], strides = [1, 1]} : vector<8x96xf32> to vector<8x8xf32>
    %351 = vector.extract_strided_slice %348 {offsets = [0, 64], sizes = [8, 8], strides = [1, 1]} : vector<8x96xf32> to vector<8x8xf32>
    %cst_128 = arith.constant dense<0.000000e+00> : vector<8x8xf32>
    %352 = tpu.matmul %349, %350, %cst_128 {dimension_numbers = #tpu.dot_dimension_numbers<[1], [1], [0], [0], [0, 0, 1, 0], [], []>} : vector<8x8xf32>, vector<8x8xf32>, vector<8x8xf32> -> vector<8x8xf32>
    %cst_129 = arith.constant dense<0xFF800000> : vector<8xf32>
    %353 = vector.multi_reduction <maximumf>, %352, %cst_129 [1] : vector<8x8xf32> to vector<8xf32>
    %354 = vector.shape_cast %353 : vector<8xf32> to vector<8x1xf32>
    %355 = vector.broadcast %354 : vector<8x1xf32> to vector<8x8xf32>
    %356 = arith.subf %352, %355 : vector<8x8xf32>
    %357 = math.exp %356 : vector<8x8xf32>
    %cst_130 = arith.constant dense<0.000000e+00> : vector<8xf32>
    %358 = vector.multi_reduction <add>, %357, %cst_130 [1] : vector<8x8xf32> to vector<8xf32>
    %359 = vector.shape_cast %358 : vector<8xf32> to vector<8x1xf32>
    %360 = tpu.reciprocal %359 {approx = true} : vector<8x1xf32> -> vector<8x1xf32>
    %361 = vector.broadcast %360 : vector<8x1xf32> to vector<8x8xf32>
    %362 = arith.mulf %357, %361 : vector<8x8xf32>
    %cst_131 = arith.constant dense<0.000000e+00> : vector<8x8xf32>
    %363 = tpu.matmul %362, %351, %cst_131 {dimension_numbers = #tpu.dot_dimension_numbers<[1], [0], [0], [1], [0, 0, 1, 1], [], []>} : vector<8x8xf32>, vector<8x8xf32>, vector<8x8xf32> -> vector<8x8xf32>
    %364 = vector.extract_strided_slice %348 {offsets = [0, 8], sizes = [8, 8], strides = [1, 1]} : vector<8x96xf32> to vector<8x8xf32>
    %365 = vector.extract_strided_slice %348 {offsets = [0, 40], sizes = [8, 8], strides = [1, 1]} : vector<8x96xf32> to vector<8x8xf32>
    %366 = vector.extract_strided_slice %348 {offsets = [0, 72], sizes = [8, 8], strides = [1, 1]} : vector<8x96xf32> to vector<8x8xf32>
    %cst_132 = arith.constant dense<0.000000e+00> : vector<8x8xf32>
    %367 = tpu.matmul %364, %365, %cst_132 {dimension_numbers = #tpu.dot_dimension_numbers<[1], [1], [0], [0], [0, 0, 1, 0], [], []>} : vector<8x8xf32>, vector<8x8xf32>, vector<8x8xf32> -> vector<8x8xf32>
    %cst_133 = arith.constant dense<0xFF800000> : vector<8xf32>
    %368 = vector.multi_reduction <maximumf>, %367, %cst_133 [1] : vector<8x8xf32> to vector<8xf32>
    %369 = vector.shape_cast %368 : vector<8xf32> to vector<8x1xf32>
    %370 = vector.broadcast %369 : vector<8x1xf32> to vector<8x8xf32>
    %371 = arith.subf %367, %370 : vector<8x8xf32>
    %372 = math.exp %371 : vector<8x8xf32>
    %cst_134 = arith.constant dense<0.000000e+00> : vector<8xf32>
    %373 = vector.multi_reduction <add>, %372, %cst_134 [1] : vector<8x8xf32> to vector<8xf32>
    %374 = vector.shape_cast %373 : vector<8xf32> to vector<8x1xf32>
    %375 = tpu.reciprocal %374 {approx = true} : vector<8x1xf32> -> vector<8x1xf32>
    %376 = vector.broadcast %375 : vector<8x1xf32> to vector<8x8xf32>
    %377 = arith.mulf %372, %376 : vector<8x8xf32>
    %cst_135 = arith.constant dense<0.000000e+00> : vector<8x8xf32>
    %378 = tpu.matmul %377, %366, %cst_135 {dimension_numbers = #tpu.dot_dimension_numbers<[1], [0], [0], [1], [0, 0, 1, 1], [], []>} : vector<8x8xf32>, vector<8x8xf32>, vector<8x8xf32> -> vector<8x8xf32>
    %379 = vector.extract_strided_slice %348 {offsets = [0, 16], sizes = [8, 8], strides = [1, 1]} : vector<8x96xf32> to vector<8x8xf32>
    %380 = vector.extract_strided_slice %348 {offsets = [0, 48], sizes = [8, 8], strides = [1, 1]} : vector<8x96xf32> to vector<8x8xf32>
    %381 = vector.extract_strided_slice %348 {offsets = [0, 80], sizes = [8, 8], strides = [1, 1]} : vector<8x96xf32> to vector<8x8xf32>
    %cst_136 = arith.constant dense<0.000000e+00> : vector<8x8xf32>
    %382 = tpu.matmul %379, %380, %cst_136 {dimension_numbers = #tpu.dot_dimension_numbers<[1], [1], [0], [0], [0, 0, 1, 0], [], []>} : vector<8x8xf32>, vector<8x8xf32>, vector<8x8xf32> -> vector<8x8xf32>
    %cst_137 = arith.constant dense<0xFF800000> : vector<8xf32>
    %383 = vector.multi_reduction <maximumf>, %382, %cst_137 [1] : vector<8x8xf32> to vector<8xf32>
    %384 = vector.shape_cast %383 : vector<8xf32> to vector<8x1xf32>
    %385 = vector.broadcast %384 : vector<8x1xf32> to vector<8x8xf32>
    %386 = arith.subf %382, %385 : vector<8x8xf32>
    %387 = math.exp %386 : vector<8x8xf32>
    %cst_138 = arith.constant dense<0.000000e+00> : vector<8xf32>
    %388 = vector.multi_reduction <add>, %387, %cst_138 [1] : vector<8x8xf32> to vector<8xf32>
    %389 = vector.shape_cast %388 : vector<8xf32> to vector<8x1xf32>
    %390 = tpu.reciprocal %389 {approx = true} : vector<8x1xf32> -> vector<8x1xf32>
    %391 = vector.broadcast %390 : vector<8x1xf32> to vector<8x8xf32>
    %392 = arith.mulf %387, %391 : vector<8x8xf32>
    %cst_139 = arith.constant dense<0.000000e+00> : vector<8x8xf32>
    %393 = tpu.matmul %392, %381, %cst_139 {dimension_numbers = #tpu.dot_dimension_numbers<[1], [0], [0], [1], [0, 0, 1, 1], [], []>} : vector<8x8xf32>, vector<8x8xf32>, vector<8x8xf32> -> vector<8x8xf32>
    %394 = vector.extract_strided_slice %348 {offsets = [0, 24], sizes = [8, 8], strides = [1, 1]} : vector<8x96xf32> to vector<8x8xf32>
    %395 = vector.extract_strided_slice %348 {offsets = [0, 56], sizes = [8, 8], strides = [1, 1]} : vector<8x96xf32> to vector<8x8xf32>
    %396 = vector.extract_strided_slice %348 {offsets = [0, 88], sizes = [8, 8], strides = [1, 1]} : vector<8x96xf32> to vector<8x8xf32>
    %cst_140 = arith.constant dense<0.000000e+00> : vector<8x8xf32>
    %397 = tpu.matmul %394, %395, %cst_140 {dimension_numbers = #tpu.dot_dimension_numbers<[1], [1], [0], [0], [0, 0, 1, 0], [], []>} : vector<8x8xf32>, vector<8x8xf32>, vector<8x8xf32> -> vector<8x8xf32>
    %cst_141 = arith.constant dense<0xFF800000> : vector<8xf32>
    %398 = vector.multi_reduction <maximumf>, %397, %cst_141 [1] : vector<8x8xf32> to vector<8xf32>
    %399 = vector.shape_cast %398 : vector<8xf32> to vector<8x1xf32>
    %400 = vector.broadcast %399 : vector<8x1xf32> to vector<8x8xf32>
    %401 = arith.subf %397, %400 : vector<8x8xf32>
    %402 = math.exp %401 : vector<8x8xf32>
    %cst_142 = arith.constant dense<0.000000e+00> : vector<8xf32>
    %403 = vector.multi_reduction <add>, %402, %cst_142 [1] : vector<8x8xf32> to vector<8xf32>
    %404 = vector.shape_cast %403 : vector<8xf32> to vector<8x1xf32>
    %405 = tpu.reciprocal %404 {approx = true} : vector<8x1xf32> -> vector<8x1xf32>
    %406 = vector.broadcast %405 : vector<8x1xf32> to vector<8x8xf32>
    %407 = arith.mulf %402, %406 : vector<8x8xf32>
    %cst_143 = arith.constant dense<0.000000e+00> : vector<8x8xf32>
    %408 = tpu.matmul %407, %396, %cst_143 {dimension_numbers = #tpu.dot_dimension_numbers<[1], [0], [0], [1], [0, 0, 1, 1], [], []>} : vector<8x8xf32>, vector<8x8xf32>, vector<8x8xf32> -> vector<8x8xf32>
    %409 = tpu.concatenate %363, %378, %393, %408 in 1 : vector<8x8xf32>, vector<8x8xf32>, vector<8x8xf32>, vector<8x8xf32> -> vector<8x32xf32>
    %410 = vector.extract_strided_slice %347 {offsets = [8, 0], sizes = [8, 96], strides = [1, 1]} : vector<32x96xf32> to vector<8x96xf32>
    %411 = vector.extract_strided_slice %410 {offsets = [0, 0], sizes = [8, 8], strides = [1, 1]} : vector<8x96xf32> to vector<8x8xf32>
    %412 = vector.extract_strided_slice %410 {offsets = [0, 32], sizes = [8, 8], strides = [1, 1]} : vector<8x96xf32> to vector<8x8xf32>
    %413 = vector.extract_strided_slice %410 {offsets = [0, 64], sizes = [8, 8], strides = [1, 1]} : vector<8x96xf32> to vector<8x8xf32>
    %cst_144 = arith.constant dense<0.000000e+00> : vector<8x8xf32>
    %414 = tpu.matmul %411, %412, %cst_144 {dimension_numbers = #tpu.dot_dimension_numbers<[1], [1], [0], [0], [0, 0, 1, 0], [], []>} : vector<8x8xf32>, vector<8x8xf32>, vector<8x8xf32> -> vector<8x8xf32>
    %cst_145 = arith.constant dense<0xFF800000> : vector<8xf32>
    %415 = vector.multi_reduction <maximumf>, %414, %cst_145 [1] : vector<8x8xf32> to vector<8xf32>
    %416 = vector.shape_cast %415 : vector<8xf32> to vector<8x1xf32>
    %417 = vector.broadcast %416 : vector<8x1xf32> to vector<8x8xf32>
    %418 = arith.subf %414, %417 : vector<8x8xf32>
    %419 = math.exp %418 : vector<8x8xf32>
    %cst_146 = arith.constant dense<0.000000e+00> : vector<8xf32>
    %420 = vector.multi_reduction <add>, %419, %cst_146 [1] : vector<8x8xf32> to vector<8xf32>
    %421 = vector.shape_cast %420 : vector<8xf32> to vector<8x1xf32>
    %422 = tpu.reciprocal %421 {approx = true} : vector<8x1xf32> -> vector<8x1xf32>
    %423 = vector.broadcast %422 : vector<8x1xf32> to vector<8x8xf32>
    %424 = arith.mulf %419, %423 : vector<8x8xf32>
    %cst_147 = arith.constant dense<0.000000e+00> : vector<8x8xf32>
    %425 = tpu.matmul %424, %413, %cst_147 {dimension_numbers = #tpu.dot_dimension_numbers<[1], [0], [0], [1], [0, 0, 1, 1], [], []>} : vector<8x8xf32>, vector<8x8xf32>, vector<8x8xf32> -> vector<8x8xf32>
    %426 = vector.extract_strided_slice %410 {offsets = [0, 8], sizes = [8, 8], strides = [1, 1]} : vector<8x96xf32> to vector<8x8xf32>
    %427 = vector.extract_strided_slice %410 {offsets = [0, 40], sizes = [8, 8], strides = [1, 1]} : vector<8x96xf32> to vector<8x8xf32>
    %428 = vector.extract_strided_slice %410 {offsets = [0, 72], sizes = [8, 8], strides = [1, 1]} : vector<8x96xf32> to vector<8x8xf32>
    %cst_148 = arith.constant dense<0.000000e+00> : vector<8x8xf32>
    %429 = tpu.matmul %426, %427, %cst_148 {dimension_numbers = #tpu.dot_dimension_numbers<[1], [1], [0], [0], [0, 0, 1, 0], [], []>} : vector<8x8xf32>, vector<8x8xf32>, vector<8x8xf32> -> vector<8x8xf32>
    %cst_149 = arith.constant dense<0xFF800000> : vector<8xf32>
    %430 = vector.multi_reduction <maximumf>, %429, %cst_149 [1] : vector<8x8xf32> to vector<8xf32>
    %431 = vector.shape_cast %430 : vector<8xf32> to vector<8x1xf32>
    %432 = vector.broadcast %431 : vector<8x1xf32> to vector<8x8xf32>
    %433 = arith.subf %429, %432 : vector<8x8xf32>
    %434 = math.exp %433 : vector<8x8xf32>
    %cst_150 = arith.constant dense<0.000000e+00> : vector<8xf32>
    %435 = vector.multi_reduction <add>, %434, %cst_150 [1] : vector<8x8xf32> to vector<8xf32>
    %436 = vector.shape_cast %435 : vector<8xf32> to vector<8x1xf32>
    %437 = tpu.reciprocal %436 {approx = true} : vector<8x1xf32> -> vector<8x1xf32>
    %438 = vector.broadcast %437 : vector<8x1xf32> to vector<8x8xf32>
    %439 = arith.mulf %434, %438 : vector<8x8xf32>
    %cst_151 = arith.constant dense<0.000000e+00> : vector<8x8xf32>
    %440 = tpu.matmul %439, %428, %cst_151 {dimension_numbers = #tpu.dot_dimension_numbers<[1], [0], [0], [1], [0, 0, 1, 1], [], []>} : vector<8x8xf32>, vector<8x8xf32>, vector<8x8xf32> -> vector<8x8xf32>
    %441 = vector.extract_strided_slice %410 {offsets = [0, 16], sizes = [8, 8], strides = [1, 1]} : vector<8x96xf32> to vector<8x8xf32>
    %442 = vector.extract_strided_slice %410 {offsets = [0, 48], sizes = [8, 8], strides = [1, 1]} : vector<8x96xf32> to vector<8x8xf32>
    %443 = vector.extract_strided_slice %410 {offsets = [0, 80], sizes = [8, 8], strides = [1, 1]} : vector<8x96xf32> to vector<8x8xf32>
    %cst_152 = arith.constant dense<0.000000e+00> : vector<8x8xf32>
    %444 = tpu.matmul %441, %442, %cst_152 {dimension_numbers = #tpu.dot_dimension_numbers<[1], [1], [0], [0], [0, 0, 1, 0], [], []>} : vector<8x8xf32>, vector<8x8xf32>, vector<8x8xf32> -> vector<8x8xf32>
    %cst_153 = arith.constant dense<0xFF800000> : vector<8xf32>
    %445 = vector.multi_reduction <maximumf>, %444, %cst_153 [1] : vector<8x8xf32> to vector<8xf32>
    %446 = vector.shape_cast %445 : vector<8xf32> to vector<8x1xf32>
    %447 = vector.broadcast %446 : vector<8x1xf32> to vector<8x8xf32>
    %448 = arith.subf %444, %447 : vector<8x8xf32>
    %449 = math.exp %448 : vector<8x8xf32>
    %cst_154 = arith.constant dense<0.000000e+00> : vector<8xf32>
    %450 = vector.multi_reduction <add>, %449, %cst_154 [1] : vector<8x8xf32> to vector<8xf32>
    %451 = vector.shape_cast %450 : vector<8xf32> to vector<8x1xf32>
    %452 = tpu.reciprocal %451 {approx = true} : vector<8x1xf32> -> vector<8x1xf32>
    %453 = vector.broadcast %452 : vector<8x1xf32> to vector<8x8xf32>
    %454 = arith.mulf %449, %453 : vector<8x8xf32>
    %cst_155 = arith.constant dense<0.000000e+00> : vector<8x8xf32>
    %455 = tpu.matmul %454, %443, %cst_155 {dimension_numbers = #tpu.dot_dimension_numbers<[1], [0], [0], [1], [0, 0, 1, 1], [], []>} : vector<8x8xf32>, vector<8x8xf32>, vector<8x8xf32> -> vector<8x8xf32>
    %456 = vector.extract_strided_slice %410 {offsets = [0, 24], sizes = [8, 8], strides = [1, 1]} : vector<8x96xf32> to vector<8x8xf32>
    %457 = vector.extract_strided_slice %410 {offsets = [0, 56], sizes = [8, 8], strides = [1, 1]} : vector<8x96xf32> to vector<8x8xf32>
    %458 = vector.extract_strided_slice %410 {offsets = [0, 88], sizes = [8, 8], strides = [1, 1]} : vector<8x96xf32> to vector<8x8xf32>
    %cst_156 = arith.constant dense<0.000000e+00> : vector<8x8xf32>
    %459 = tpu.matmul %456, %457, %cst_156 {dimension_numbers = #tpu.dot_dimension_numbers<[1], [1], [0], [0], [0, 0, 1, 0], [], []>} : vector<8x8xf32>, vector<8x8xf32>, vector<8x8xf32> -> vector<8x8xf32>
    %cst_157 = arith.constant dense<0xFF800000> : vector<8xf32>
    %460 = vector.multi_reduction <maximumf>, %459, %cst_157 [1] : vector<8x8xf32> to vector<8xf32>
    %461 = vector.shape_cast %460 : vector<8xf32> to vector<8x1xf32>
    %462 = vector.broadcast %461 : vector<8x1xf32> to vector<8x8xf32>
    %463 = arith.subf %459, %462 : vector<8x8xf32>
    %464 = math.exp %463 : vector<8x8xf32>
    %cst_158 = arith.constant dense<0.000000e+00> : vector<8xf32>
    %465 = vector.multi_reduction <add>, %464, %cst_158 [1] : vector<8x8xf32> to vector<8xf32>
    %466 = vector.shape_cast %465 : vector<8xf32> to vector<8x1xf32>
    %467 = tpu.reciprocal %466 {approx = true} : vector<8x1xf32> -> vector<8x1xf32>
    %468 = vector.broadcast %467 : vector<8x1xf32> to vector<8x8xf32>
    %469 = arith.mulf %464, %468 : vector<8x8xf32>
    %cst_159 = arith.constant dense<0.000000e+00> : vector<8x8xf32>
    %470 = tpu.matmul %469, %458, %cst_159 {dimension_numbers = #tpu.dot_dimension_numbers<[1], [0], [0], [1], [0, 0, 1, 1], [], []>} : vector<8x8xf32>, vector<8x8xf32>, vector<8x8xf32> -> vector<8x8xf32>
    %471 = tpu.concatenate %425, %440, %455, %470 in 1 : vector<8x8xf32>, vector<8x8xf32>, vector<8x8xf32>, vector<8x8xf32> -> vector<8x32xf32>
    %472 = vector.extract_strided_slice %347 {offsets = [16, 0], sizes = [8, 96], strides = [1, 1]} : vector<32x96xf32> to vector<8x96xf32>
    %473 = vector.extract_strided_slice %472 {offsets = [0, 0], sizes = [8, 8], strides = [1, 1]} : vector<8x96xf32> to vector<8x8xf32>
    %474 = vector.extract_strided_slice %472 {offsets = [0, 32], sizes = [8, 8], strides = [1, 1]} : vector<8x96xf32> to vector<8x8xf32>
    %475 = vector.extract_strided_slice %472 {offsets = [0, 64], sizes = [8, 8], strides = [1, 1]} : vector<8x96xf32> to vector<8x8xf32>
    %cst_160 = arith.constant dense<0.000000e+00> : vector<8x8xf32>
    %476 = tpu.matmul %473, %474, %cst_160 {dimension_numbers = #tpu.dot_dimension_numbers<[1], [1], [0], [0], [0, 0, 1, 0], [], []>} : vector<8x8xf32>, vector<8x8xf32>, vector<8x8xf32> -> vector<8x8xf32>
    %cst_161 = arith.constant dense<0xFF800000> : vector<8xf32>
    %477 = vector.multi_reduction <maximumf>, %476, %cst_161 [1] : vector<8x8xf32> to vector<8xf32>
    %478 = vector.shape_cast %477 : vector<8xf32> to vector<8x1xf32>
    %479 = vector.broadcast %478 : vector<8x1xf32> to vector<8x8xf32>
    %480 = arith.subf %476, %479 : vector<8x8xf32>
    %481 = math.exp %480 : vector<8x8xf32>
    %cst_162 = arith.constant dense<0.000000e+00> : vector<8xf32>
    %482 = vector.multi_reduction <add>, %481, %cst_162 [1] : vector<8x8xf32> to vector<8xf32>
    %483 = vector.shape_cast %482 : vector<8xf32> to vector<8x1xf32>
    %484 = tpu.reciprocal %483 {approx = true} : vector<8x1xf32> -> vector<8x1xf32>
    %485 = vector.broadcast %484 : vector<8x1xf32> to vector<8x8xf32>
    %486 = arith.mulf %481, %485 : vector<8x8xf32>
    %cst_163 = arith.constant dense<0.000000e+00> : vector<8x8xf32>
    %487 = tpu.matmul %486, %475, %cst_163 {dimension_numbers = #tpu.dot_dimension_numbers<[1], [0], [0], [1], [0, 0, 1, 1], [], []>} : vector<8x8xf32>, vector<8x8xf32>, vector<8x8xf32> -> vector<8x8xf32>
    %488 = vector.extract_strided_slice %472 {offsets = [0, 8], sizes = [8, 8], strides = [1, 1]} : vector<8x96xf32> to vector<8x8xf32>
    %489 = vector.extract_strided_slice %472 {offsets = [0, 40], sizes = [8, 8], strides = [1, 1]} : vector<8x96xf32> to vector<8x8xf32>
    %490 = vector.extract_strided_slice %472 {offsets = [0, 72], sizes = [8, 8], strides = [1, 1]} : vector<8x96xf32> to vector<8x8xf32>
    %cst_164 = arith.constant dense<0.000000e+00> : vector<8x8xf32>
    %491 = tpu.matmul %488, %489, %cst_164 {dimension_numbers = #tpu.dot_dimension_numbers<[1], [1], [0], [0], [0, 0, 1, 0], [], []>} : vector<8x8xf32>, vector<8x8xf32>, vector<8x8xf32> -> vector<8x8xf32>
    %cst_165 = arith.constant dense<0xFF800000> : vector<8xf32>
    %492 = vector.multi_reduction <maximumf>, %491, %cst_165 [1] : vector<8x8xf32> to vector<8xf32>
    %493 = vector.shape_cast %492 : vector<8xf32> to vector<8x1xf32>
    %494 = vector.broadcast %493 : vector<8x1xf32> to vector<8x8xf32>
    %495 = arith.subf %491, %494 : vector<8x8xf32>
    %496 = math.exp %495 : vector<8x8xf32>
    %cst_166 = arith.constant dense<0.000000e+00> : vector<8xf32>
    %497 = vector.multi_reduction <add>, %496, %cst_166 [1] : vector<8x8xf32> to vector<8xf32>
    %498 = vector.shape_cast %497 : vector<8xf32> to vector<8x1xf32>
    %499 = tpu.reciprocal %498 {approx = true} : vector<8x1xf32> -> vector<8x1xf32>
    %500 = vector.broadcast %499 : vector<8x1xf32> to vector<8x8xf32>
    %501 = arith.mulf %496, %500 : vector<8x8xf32>
    %cst_167 = arith.constant dense<0.000000e+00> : vector<8x8xf32>
    %502 = tpu.matmul %501, %490, %cst_167 {dimension_numbers = #tpu.dot_dimension_numbers<[1], [0], [0], [1], [0, 0, 1, 1], [], []>} : vector<8x8xf32>, vector<8x8xf32>, vector<8x8xf32> -> vector<8x8xf32>
    %503 = vector.extract_strided_slice %472 {offsets = [0, 16], sizes = [8, 8], strides = [1, 1]} : vector<8x96xf32> to vector<8x8xf32>
    %504 = vector.extract_strided_slice %472 {offsets = [0, 48], sizes = [8, 8], strides = [1, 1]} : vector<8x96xf32> to vector<8x8xf32>
    %505 = vector.extract_strided_slice %472 {offsets = [0, 80], sizes = [8, 8], strides = [1, 1]} : vector<8x96xf32> to vector<8x8xf32>
    %cst_168 = arith.constant dense<0.000000e+00> : vector<8x8xf32>
    %506 = tpu.matmul %503, %504, %cst_168 {dimension_numbers = #tpu.dot_dimension_numbers<[1], [1], [0], [0], [0, 0, 1, 0], [], []>} : vector<8x8xf32>, vector<8x8xf32>, vector<8x8xf32> -> vector<8x8xf32>
    %cst_169 = arith.constant dense<0xFF800000> : vector<8xf32>
    %507 = vector.multi_reduction <maximumf>, %506, %cst_169 [1] : vector<8x8xf32> to vector<8xf32>
    %508 = vector.shape_cast %507 : vector<8xf32> to vector<8x1xf32>
    %509 = vector.broadcast %508 : vector<8x1xf32> to vector<8x8xf32>
    %510 = arith.subf %506, %509 : vector<8x8xf32>
    %511 = math.exp %510 : vector<8x8xf32>
    %cst_170 = arith.constant dense<0.000000e+00> : vector<8xf32>
    %512 = vector.multi_reduction <add>, %511, %cst_170 [1] : vector<8x8xf32> to vector<8xf32>
    %513 = vector.shape_cast %512 : vector<8xf32> to vector<8x1xf32>
    %514 = tpu.reciprocal %513 {approx = true} : vector<8x1xf32> -> vector<8x1xf32>
    %515 = vector.broadcast %514 : vector<8x1xf32> to vector<8x8xf32>
    %516 = arith.mulf %511, %515 : vector<8x8xf32>
    %cst_171 = arith.constant dense<0.000000e+00> : vector<8x8xf32>
    %517 = tpu.matmul %516, %505, %cst_171 {dimension_numbers = #tpu.dot_dimension_numbers<[1], [0], [0], [1], [0, 0, 1, 1], [], []>} : vector<8x8xf32>, vector<8x8xf32>, vector<8x8xf32> -> vector<8x8xf32>
    %518 = vector.extract_strided_slice %472 {offsets = [0, 24], sizes = [8, 8], strides = [1, 1]} : vector<8x96xf32> to vector<8x8xf32>
    %519 = vector.extract_strided_slice %472 {offsets = [0, 56], sizes = [8, 8], strides = [1, 1]} : vector<8x96xf32> to vector<8x8xf32>
    %520 = vector.extract_strided_slice %472 {offsets = [0, 88], sizes = [8, 8], strides = [1, 1]} : vector<8x96xf32> to vector<8x8xf32>
    %cst_172 = arith.constant dense<0.000000e+00> : vector<8x8xf32>
    %521 = tpu.matmul %518, %519, %cst_172 {dimension_numbers = #tpu.dot_dimension_numbers<[1], [1], [0], [0], [0, 0, 1, 0], [], []>} : vector<8x8xf32>, vector<8x8xf32>, vector<8x8xf32> -> vector<8x8xf32>
    %cst_173 = arith.constant dense<0xFF800000> : vector<8xf32>
    %522 = vector.multi_reduction <maximumf>, %521, %cst_173 [1] : vector<8x8xf32> to vector<8xf32>
    %523 = vector.shape_cast %522 : vector<8xf32> to vector<8x1xf32>
    %524 = vector.broadcast %523 : vector<8x1xf32> to vector<8x8xf32>
    %525 = arith.subf %521, %524 : vector<8x8xf32>
    %526 = math.exp %525 : vector<8x8xf32>
    %cst_174 = arith.constant dense<0.000000e+00> : vector<8xf32>
    %527 = vector.multi_reduction <add>, %526, %cst_174 [1] : vector<8x8xf32> to vector<8xf32>
    %528 = vector.shape_cast %527 : vector<8xf32> to vector<8x1xf32>
    %529 = tpu.reciprocal %528 {approx = true} : vector<8x1xf32> -> vector<8x1xf32>
    %530 = vector.broadcast %529 : vector<8x1xf32> to vector<8x8xf32>
    %531 = arith.mulf %526, %530 : vector<8x8xf32>
    %cst_175 = arith.constant dense<0.000000e+00> : vector<8x8xf32>
    %532 = tpu.matmul %531, %520, %cst_175 {dimension_numbers = #tpu.dot_dimension_numbers<[1], [0], [0], [1], [0, 0, 1, 1], [], []>} : vector<8x8xf32>, vector<8x8xf32>, vector<8x8xf32> -> vector<8x8xf32>
    %533 = tpu.concatenate %487, %502, %517, %532 in 1 : vector<8x8xf32>, vector<8x8xf32>, vector<8x8xf32>, vector<8x8xf32> -> vector<8x32xf32>
    %534 = vector.extract_strided_slice %347 {offsets = [24, 0], sizes = [8, 96], strides = [1, 1]} : vector<32x96xf32> to vector<8x96xf32>
    %535 = vector.extract_strided_slice %534 {offsets = [0, 0], sizes = [8, 8], strides = [1, 1]} : vector<8x96xf32> to vector<8x8xf32>
    %536 = vector.extract_strided_slice %534 {offsets = [0, 32], sizes = [8, 8], strides = [1, 1]} : vector<8x96xf32> to vector<8x8xf32>
    %537 = vector.extract_strided_slice %534 {offsets = [0, 64], sizes = [8, 8], strides = [1, 1]} : vector<8x96xf32> to vector<8x8xf32>
    %cst_176 = arith.constant dense<0.000000e+00> : vector<8x8xf32>
    %538 = tpu.matmul %535, %536, %cst_176 {dimension_numbers = #tpu.dot_dimension_numbers<[1], [1], [0], [0], [0, 0, 1, 0], [], []>} : vector<8x8xf32>, vector<8x8xf32>, vector<8x8xf32> -> vector<8x8xf32>
    %cst_177 = arith.constant dense<0xFF800000> : vector<8xf32>
    %539 = vector.multi_reduction <maximumf>, %538, %cst_177 [1] : vector<8x8xf32> to vector<8xf32>
    %540 = vector.shape_cast %539 : vector<8xf32> to vector<8x1xf32>
    %541 = vector.broadcast %540 : vector<8x1xf32> to vector<8x8xf32>
    %542 = arith.subf %538, %541 : vector<8x8xf32>
    %543 = math.exp %542 : vector<8x8xf32>
    %cst_178 = arith.constant dense<0.000000e+00> : vector<8xf32>
    %544 = vector.multi_reduction <add>, %543, %cst_178 [1] : vector<8x8xf32> to vector<8xf32>
    %545 = vector.shape_cast %544 : vector<8xf32> to vector<8x1xf32>
    %546 = tpu.reciprocal %545 {approx = true} : vector<8x1xf32> -> vector<8x1xf32>
    %547 = vector.broadcast %546 : vector<8x1xf32> to vector<8x8xf32>
    %548 = arith.mulf %543, %547 : vector<8x8xf32>
    %cst_179 = arith.constant dense<0.000000e+00> : vector<8x8xf32>
    %549 = tpu.matmul %548, %537, %cst_179 {dimension_numbers = #tpu.dot_dimension_numbers<[1], [0], [0], [1], [0, 0, 1, 1], [], []>} : vector<8x8xf32>, vector<8x8xf32>, vector<8x8xf32> -> vector<8x8xf32>
    %550 = vector.extract_strided_slice %534 {offsets = [0, 8], sizes = [8, 8], strides = [1, 1]} : vector<8x96xf32> to vector<8x8xf32>
    %551 = vector.extract_strided_slice %534 {offsets = [0, 40], sizes = [8, 8], strides = [1, 1]} : vector<8x96xf32> to vector<8x8xf32>
    %552 = vector.extract_strided_slice %534 {offsets = [0, 72], sizes = [8, 8], strides = [1, 1]} : vector<8x96xf32> to vector<8x8xf32>
    %cst_180 = arith.constant dense<0.000000e+00> : vector<8x8xf32>
    %553 = tpu.matmul %550, %551, %cst_180 {dimension_numbers = #tpu.dot_dimension_numbers<[1], [1], [0], [0], [0, 0, 1, 0], [], []>} : vector<8x8xf32>, vector<8x8xf32>, vector<8x8xf32> -> vector<8x8xf32>
    %cst_181 = arith.constant dense<0xFF800000> : vector<8xf32>
    %554 = vector.multi_reduction <maximumf>, %553, %cst_181 [1] : vector<8x8xf32> to vector<8xf32>
    %555 = vector.shape_cast %554 : vector<8xf32> to vector<8x1xf32>
    %556 = vector.broadcast %555 : vector<8x1xf32> to vector<8x8xf32>
    %557 = arith.subf %553, %556 : vector<8x8xf32>
    %558 = math.exp %557 : vector<8x8xf32>
    %cst_182 = arith.constant dense<0.000000e+00> : vector<8xf32>
    %559 = vector.multi_reduction <add>, %558, %cst_182 [1] : vector<8x8xf32> to vector<8xf32>
    %560 = vector.shape_cast %559 : vector<8xf32> to vector<8x1xf32>
    %561 = tpu.reciprocal %560 {approx = true} : vector<8x1xf32> -> vector<8x1xf32>
    %562 = vector.broadcast %561 : vector<8x1xf32> to vector<8x8xf32>
    %563 = arith.mulf %558, %562 : vector<8x8xf32>
    %cst_183 = arith.constant dense<0.000000e+00> : vector<8x8xf32>
    %564 = tpu.matmul %563, %552, %cst_183 {dimension_numbers = #tpu.dot_dimension_numbers<[1], [0], [0], [1], [0, 0, 1, 1], [], []>} : vector<8x8xf32>, vector<8x8xf32>, vector<8x8xf32> -> vector<8x8xf32>
    %565 = vector.extract_strided_slice %534 {offsets = [0, 16], sizes = [8, 8], strides = [1, 1]} : vector<8x96xf32> to vector<8x8xf32>
    %566 = vector.extract_strided_slice %534 {offsets = [0, 48], sizes = [8, 8], strides = [1, 1]} : vector<8x96xf32> to vector<8x8xf32>
    %567 = vector.extract_strided_slice %534 {offsets = [0, 80], sizes = [8, 8], strides = [1, 1]} : vector<8x96xf32> to vector<8x8xf32>
    %cst_184 = arith.constant dense<0.000000e+00> : vector<8x8xf32>
    %568 = tpu.matmul %565, %566, %cst_184 {dimension_numbers = #tpu.dot_dimension_numbers<[1], [1], [0], [0], [0, 0, 1, 0], [], []>} : vector<8x8xf32>, vector<8x8xf32>, vector<8x8xf32> -> vector<8x8xf32>
    %cst_185 = arith.constant dense<0xFF800000> : vector<8xf32>
    %569 = vector.multi_reduction <maximumf>, %568, %cst_185 [1] : vector<8x8xf32> to vector<8xf32>
    %570 = vector.shape_cast %569 : vector<8xf32> to vector<8x1xf32>
    %571 = vector.broadcast %570 : vector<8x1xf32> to vector<8x8xf32>
    %572 = arith.subf %568, %571 : vector<8x8xf32>
    %573 = math.exp %572 : vector<8x8xf32>
    %cst_186 = arith.constant dense<0.000000e+00> : vector<8xf32>
    %574 = vector.multi_reduction <add>, %573, %cst_186 [1] : vector<8x8xf32> to vector<8xf32>
    %575 = vector.shape_cast %574 : vector<8xf32> to vector<8x1xf32>
    %576 = tpu.reciprocal %575 {approx = true} : vector<8x1xf32> -> vector<8x1xf32>
    %577 = vector.broadcast %576 : vector<8x1xf32> to vector<8x8xf32>
    %578 = arith.mulf %573, %577 : vector<8x8xf32>
    %cst_187 = arith.constant dense<0.000000e+00> : vector<8x8xf32>
    %579 = tpu.matmul %578, %567, %cst_187 {dimension_numbers = #tpu.dot_dimension_numbers<[1], [0], [0], [1], [0, 0, 1, 1], [], []>} : vector<8x8xf32>, vector<8x8xf32>, vector<8x8xf32> -> vector<8x8xf32>
    %580 = vector.extract_strided_slice %534 {offsets = [0, 24], sizes = [8, 8], strides = [1, 1]} : vector<8x96xf32> to vector<8x8xf32>
    %581 = vector.extract_strided_slice %534 {offsets = [0, 56], sizes = [8, 8], strides = [1, 1]} : vector<8x96xf32> to vector<8x8xf32>
    %582 = vector.extract_strided_slice %534 {offsets = [0, 88], sizes = [8, 8], strides = [1, 1]} : vector<8x96xf32> to vector<8x8xf32>
    %cst_188 = arith.constant dense<0.000000e+00> : vector<8x8xf32>
    %583 = tpu.matmul %580, %581, %cst_188 {dimension_numbers = #tpu.dot_dimension_numbers<[1], [1], [0], [0], [0, 0, 1, 0], [], []>} : vector<8x8xf32>, vector<8x8xf32>, vector<8x8xf32> -> vector<8x8xf32>
    %cst_189 = arith.constant dense<0xFF800000> : vector<8xf32>
    %584 = vector.multi_reduction <maximumf>, %583, %cst_189 [1] : vector<8x8xf32> to vector<8xf32>
    %585 = vector.shape_cast %584 : vector<8xf32> to vector<8x1xf32>
    %586 = vector.broadcast %585 : vector<8x1xf32> to vector<8x8xf32>
    %587 = arith.subf %583, %586 : vector<8x8xf32>
    %588 = math.exp %587 : vector<8x8xf32>
    %cst_190 = arith.constant dense<0.000000e+00> : vector<8xf32>
    %589 = vector.multi_reduction <add>, %588, %cst_190 [1] : vector<8x8xf32> to vector<8xf32>
    %590 = vector.shape_cast %589 : vector<8xf32> to vector<8x1xf32>
    %591 = tpu.reciprocal %590 {approx = true} : vector<8x1xf32> -> vector<8x1xf32>
    %592 = vector.broadcast %591 : vector<8x1xf32> to vector<8x8xf32>
    %593 = arith.mulf %588, %592 : vector<8x8xf32>
    %cst_191 = arith.constant dense<0.000000e+00> : vector<8x8xf32>
    %594 = tpu.matmul %593, %582, %cst_191 {dimension_numbers = #tpu.dot_dimension_numbers<[1], [0], [0], [1], [0, 0, 1, 1], [], []>} : vector<8x8xf32>, vector<8x8xf32>, vector<8x8xf32> -> vector<8x8xf32>
    %595 = tpu.concatenate %549, %564, %579, %594 in 1 : vector<8x8xf32>, vector<8x8xf32>, vector<8x8xf32>, vector<8x8xf32> -> vector<8x32xf32>
    %596 = tpu.concatenate %409, %471, %533, %595 in 0 : vector<8x32xf32>, vector<8x32xf32>, vector<8x32xf32>, vector<8x32xf32> -> vector<32x32xf32>
    %c1_192 = arith.constant 1 : index
    %c0_193 = arith.constant 0 : index
    %c0_194 = arith.constant 0 : index
    %597 = vector.load %arg7[%c1_192, %c0_193, %c0_194] : memref<2x32x32xf32, #tpu.memory_space<vmem>>, vector<1x32x32xf32>
    %598 = vector.shape_cast %597 : vector<1x32x32xf32> to vector<32x32xf32>
    %cst_195 = arith.constant dense<0.000000e+00> : vector<32x32xf32>
    %599 = tpu.matmul %596, %598, %cst_195 {dimension_numbers = #tpu.dot_dimension_numbers<[1], [0], [0], [1], [0, 0, 1, 1], [], []>} : vector<32x32xf32>, vector<32x32xf32>, vector<32x32xf32> -> vector<32x32xf32>
    %c1_196 = arith.constant 1 : index
    %c0_197 = arith.constant 0 : index
    %c0_198 = arith.constant 0 : index
    %600 = vector.load %arg8[%c1_196, %c0_197, %c0_198] : memref<2x1x32xf32, #tpu.memory_space<vmem>>, vector<1x1x32xf32>
    %601 = vector.shape_cast %600 : vector<1x1x32xf32> to vector<1x32xf32>
    %602 = vector.broadcast %601 : vector<1x32xf32> to vector<32x32xf32>
    %603 = arith.addf %599, %602 : vector<32x32xf32>
    %604 = arith.addf %340, %603 : vector<32x32xf32>
    %c1_199 = arith.constant 1 : index
    %c0_200 = arith.constant 0 : index
    %c0_201 = arith.constant 0 : index
    %605 = vector.load %arg13[%c1_199, %c0_200, %c0_201] : memref<2x1x32xf32, #tpu.memory_space<vmem>>, vector<1x1x32xf32>
    %606 = vector.shape_cast %605 : vector<1x1x32xf32> to vector<1x32xf32>
    %c1_202 = arith.constant 1 : index
    %c0_203 = arith.constant 0 : index
    %c0_204 = arith.constant 0 : index
    %607 = vector.load %arg14[%c1_202, %c0_203, %c0_204] : memref<2x1x32xf32, #tpu.memory_space<vmem>>, vector<1x1x32xf32>
    %608 = vector.shape_cast %607 : vector<1x1x32xf32> to vector<1x32xf32>
    %cst_205 = arith.constant dense<0.000000e+00> : vector<32xf32>
    %609 = vector.multi_reduction <add>, %604, %cst_205 [1] : vector<32x32xf32> to vector<32xf32>
    %610 = vector.shape_cast %609 : vector<32xf32> to vector<32x1xf32>
    %cst_206 = arith.constant 3.200000e+01 : f32
    %611 = vector.broadcast %cst_206 : f32 to vector<32x1xf32>
    %612 = arith.divf %610, %611 : vector<32x1xf32>
    %613 = vector.broadcast %612 : vector<32x1xf32> to vector<32x32xf32>
    %614 = arith.subf %604, %613 : vector<32x32xf32>
    %615 = arith.mulf %614, %614 : vector<32x32xf32>
    %cst_207 = arith.constant dense<0.000000e+00> : vector<32xf32>
    %616 = vector.multi_reduction <add>, %615, %cst_207 [1] : vector<32x32xf32> to vector<32xf32>
    %617 = vector.shape_cast %616 : vector<32xf32> to vector<32x1xf32>
    %cst_208 = arith.constant 3.200000e+01 : f32
    %618 = vector.broadcast %cst_208 : f32 to vector<32x1xf32>
    %619 = arith.divf %617, %618 : vector<32x1xf32>
    %620 = vector.broadcast %612 : vector<32x1xf32> to vector<32x32xf32>
    %621 = arith.subf %604, %620 : vector<32x32xf32>
    %cst_209 = arith.constant 9.99999974E-6 : f32
    %622 = vector.broadcast %cst_209 : f32 to vector<32x1xf32>
    %623 = arith.addf %619, %622 : vector<32x1xf32>
    %624 = math.rsqrt %623 : vector<32x1xf32>
    %625 = vector.broadcast %624 : vector<32x1xf32> to vector<32x32xf32>
    %626 = arith.mulf %621, %625 : vector<32x32xf32>
    %627 = vector.broadcast %606 : vector<1x32xf32> to vector<32x32xf32>
    %628 = arith.mulf %626, %627 : vector<32x32xf32>
    %629 = vector.broadcast %608 : vector<1x32xf32> to vector<32x32xf32>
    %630 = arith.addf %628, %629 : vector<32x32xf32>
    %c1_210 = arith.constant 1 : index
    %c0_211 = arith.constant 0 : index
    %c0_212 = arith.constant 0 : index
    %631 = vector.load %arg9[%c1_210, %c0_211, %c0_212] : memref<2x32x64xf32, #tpu.memory_space<vmem>>, vector<1x32x64xf32>
    %632 = vector.shape_cast %631 : vector<1x32x64xf32> to vector<32x64xf32>
    %cst_213 = arith.constant dense<0.000000e+00> : vector<32x64xf32>
    %633 = tpu.matmul %630, %632, %cst_213 {dimension_numbers = #tpu.dot_dimension_numbers<[1], [0], [0], [1], [0, 0, 1, 1], [], []>} : vector<32x32xf32>, vector<32x64xf32>, vector<32x64xf32> -> vector<32x64xf32>
    %c1_214 = arith.constant 1 : index
    %c0_215 = arith.constant 0 : index
    %c0_216 = arith.constant 0 : index
    %634 = vector.load %arg10[%c1_214, %c0_215, %c0_216] : memref<2x1x64xf32, #tpu.memory_space<vmem>>, vector<1x1x64xf32>
    %635 = vector.shape_cast %634 : vector<1x1x64xf32> to vector<1x64xf32>
    %636 = vector.broadcast %635 : vector<1x64xf32> to vector<32x64xf32>
    %637 = arith.addf %633, %636 : vector<32x64xf32>
    %cst_217 = arith.constant 0.000000e+00 : f32
    %638 = vector.broadcast %cst_217 : f32 to vector<32x64xf32>
    %639 = arith.maximumf %637, %638 : vector<32x64xf32>
    %c1_218 = arith.constant 1 : index
    %c0_219 = arith.constant 0 : index
    %c0_220 = arith.constant 0 : index
    %640 = vector.load %arg11[%c1_218, %c0_219, %c0_220] : memref<2x64x32xf32, #tpu.memory_space<vmem>>, vector<1x64x32xf32>
    %641 = vector.shape_cast %640 : vector<1x64x32xf32> to vector<64x32xf32>
    %cst_221 = arith.constant dense<0.000000e+00> : vector<32x32xf32>
    %642 = tpu.matmul %639, %641, %cst_221 {dimension_numbers = #tpu.dot_dimension_numbers<[1], [0], [0], [1], [0, 0, 1, 1], [], []>} : vector<32x64xf32>, vector<64x32xf32>, vector<32x32xf32> -> vector<32x32xf32>
    %c1_222 = arith.constant 1 : index
    %c0_223 = arith.constant 0 : index
    %c0_224 = arith.constant 0 : index
    %643 = vector.load %arg12[%c1_222, %c0_223, %c0_224] : memref<2x1x32xf32, #tpu.memory_space<vmem>>, vector<1x1x32xf32>
    %644 = vector.shape_cast %643 : vector<1x1x32xf32> to vector<1x32xf32>
    %645 = vector.broadcast %644 : vector<1x32xf32> to vector<32x32xf32>
    %646 = arith.addf %642, %645 : vector<32x32xf32>
    %647 = arith.addf %630, %646 : vector<32x32xf32>
    %c1_225 = arith.constant 1 : index
    %c0_226 = arith.constant 0 : index
    %c0_227 = arith.constant 0 : index
    %648 = vector.load %arg15[%c1_225, %c0_226, %c0_227] : memref<2x1x32xf32, #tpu.memory_space<vmem>>, vector<1x1x32xf32>
    %649 = vector.shape_cast %648 : vector<1x1x32xf32> to vector<1x32xf32>
    %c1_228 = arith.constant 1 : index
    %c0_229 = arith.constant 0 : index
    %c0_230 = arith.constant 0 : index
    %650 = vector.load %arg16[%c1_228, %c0_229, %c0_230] : memref<2x1x32xf32, #tpu.memory_space<vmem>>, vector<1x1x32xf32>
    %651 = vector.shape_cast %650 : vector<1x1x32xf32> to vector<1x32xf32>
    %cst_231 = arith.constant dense<0.000000e+00> : vector<32xf32>
    %652 = vector.multi_reduction <add>, %647, %cst_231 [1] : vector<32x32xf32> to vector<32xf32>
    %653 = vector.shape_cast %652 : vector<32xf32> to vector<32x1xf32>
    %cst_232 = arith.constant 3.200000e+01 : f32
    %654 = vector.broadcast %cst_232 : f32 to vector<32x1xf32>
    %655 = arith.divf %653, %654 : vector<32x1xf32>
    %656 = vector.broadcast %655 : vector<32x1xf32> to vector<32x32xf32>
    %657 = arith.subf %647, %656 : vector<32x32xf32>
    %658 = arith.mulf %657, %657 : vector<32x32xf32>
    %cst_233 = arith.constant dense<0.000000e+00> : vector<32xf32>
    %659 = vector.multi_reduction <add>, %658, %cst_233 [1] : vector<32x32xf32> to vector<32xf32>
    %660 = vector.shape_cast %659 : vector<32xf32> to vector<32x1xf32>
    %cst_234 = arith.constant 3.200000e+01 : f32
    %661 = vector.broadcast %cst_234 : f32 to vector<32x1xf32>
    %662 = arith.divf %660, %661 : vector<32x1xf32>
    %663 = vector.broadcast %655 : vector<32x1xf32> to vector<32x32xf32>
    %664 = arith.subf %647, %663 : vector<32x32xf32>
    %cst_235 = arith.constant 9.99999974E-6 : f32
    %665 = vector.broadcast %cst_235 : f32 to vector<32x1xf32>
    %666 = arith.addf %662, %665 : vector<32x1xf32>
    %667 = math.rsqrt %666 : vector<32x1xf32>
    %668 = vector.broadcast %667 : vector<32x1xf32> to vector<32x32xf32>
    %669 = arith.mulf %664, %668 : vector<32x32xf32>
    %670 = vector.broadcast %649 : vector<1x32xf32> to vector<32x32xf32>
    %671 = arith.mulf %669, %670 : vector<32x32xf32>
    %672 = vector.broadcast %651 : vector<1x32xf32> to vector<32x32xf32>
    %673 = arith.addf %671, %672 : vector<32x32xf32>
    %c0_236 = arith.constant 0 : index
    %c0_237 = arith.constant 0 : index
    %674 = vector.load %arg17[%c0_236, %c0_237] : memref<10x32xf32, #tpu.memory_space<vmem>>, vector<10x32xf32>
    %cst_238 = arith.constant dense<0.000000e+00> : vector<10x32xf32>
    %675 = tpu.matmul %674, %673, %cst_238 {dimension_numbers = #tpu.dot_dimension_numbers<[1], [1], [0], [0], [0, 0, 1, 0], [], []>} : vector<10x32xf32>, vector<32x32xf32>, vector<10x32xf32> -> vector<10x32xf32>
    %c0_239 = arith.constant 0 : index
    %c0_240 = arith.constant 0 : index
    %676 = vector.load %arg18[%c0_239, %c0_240] : memref<10x1xf32, #tpu.memory_space<vmem>>, vector<10x1xf32>
    %677 = vector.broadcast %676 : vector<10x1xf32> to vector<10x32xf32>
    %678 = arith.addf %675, %677 : vector<10x32xf32>
    %c0_241 = arith.constant 0 : index
    %c0_242 = arith.constant 0 : index
    %c0_243 = arith.constant 0 : index
    %679 = vector.load %arg19[%c0_241, %c0_242, %c0_243] : memref<1x10x32xf32, #tpu.memory_space<vmem>>, vector<1x10x32xf32>
    %680 = vector.shape_cast %679 : vector<1x10x32xf32> to vector<10x32xf32>
    %681 = vector.shape_cast %678 : vector<10x32xf32> to vector<1x10x32xf32>
    tpu.vector_store %arg19[%c0_241, %c0_242, %c0_243], %681 {strides = array<i32>} : memref<1x10x32xf32, #tpu.memory_space<vmem>>, vector<1x10x32xf32>,
    return
  }
  func.func @transform_0(%arg0: i32) -> (i32, i32) {
    %c0_i32 = arith.constant 0 : i32
    %c0_i32_0 = arith.constant 0 : i32
    return %arg0, %c0_i32 : i32, i32
  }
  func.func @transform_1(%arg0: i32) -> (i32, i32) {
    %c0_i32 = arith.constant 0 : i32
    %c0_i32_0 = arith.constant 0 : i32
    %c0_i32_1 = arith.constant 0 : i32
    return %c0_i32, %c0_i32_0 : i32, i32
  }
  func.func @transform_2(%arg0: i32) -> (i32, i32) {
    %c0_i32 = arith.constant 0 : i32
    %c0_i32_0 = arith.constant 0 : i32
    %c0_i32_1 = arith.constant 0 : i32
    return %c0_i32, %c0_i32_0 : i32, i32
  }
  func.func @transform_3(%arg0: i32) -> (i32, i32) {
    %c0_i32 = arith.constant 0 : i32
    %c0_i32_0 = arith.constant 0 : i32
    %c0_i32_1 = arith.constant 0 : i32
    return %c0_i32, %c0_i32_0 : i32, i32
  }
  func.func @transform_4(%arg0: i32) -> (i32, i32, i32) {
    %c0_i32 = arith.constant 0 : i32
    %c0_i32_0 = arith.constant 0 : i32
    %c0_i32_1 = arith.constant 0 : i32
    %c0_i32_2 = arith.constant 0 : i32
    return %c0_i32, %c0_i32_0, %c0_i32_1 : i32, i32, i32
  }
  func.func @transform_5(%arg0: i32) -> (i32, i32, i32) {
    %c0_i32 = arith.constant 0 : i32
    %c0_i32_0 = arith.constant 0 : i32
    %c0_i32_1 = arith.constant 0 : i32
    %c0_i32_2 = arith.constant 0 : i32
    return %c0_i32, %c0_i32_0, %c0_i32_1 : i32, i32, i32
  }
  func.func @transform_6(%arg0: i32) -> (i32, i32, i32) {
    %c0_i32 = arith.constant 0 : i32
    %c0_i32_0 = arith.constant 0 : i32
    %c0_i32_1 = arith.constant 0 : i32
    %c0_i32_2 = arith.constant 0 : i32
    return %c0_i32, %c0_i32_0, %c0_i32_1 : i32, i32, i32
  }
  func.func @transform_7(%arg0: i32) -> (i32, i32, i32) {
    %c0_i32 = arith.constant 0 : i32
    %c0_i32_0 = arith.constant 0 : i32
    %c0_i32_1 = arith.constant 0 : i32
    %c0_i32_2 = arith.constant 0 : i32
    return %c0_i32, %c0_i32_0, %c0_i32_1 : i32, i32, i32
  }
  func.func @transform_8(%arg0: i32) -> (i32, i32, i32) {
    %c0_i32 = arith.constant 0 : i32
    %c0_i32_0 = arith.constant 0 : i32
    %c0_i32_1 = arith.constant 0 : i32
    %c0_i32_2 = arith.constant 0 : i32
    return %c0_i32, %c0_i32_0, %c0_i32_1 : i32, i32, i32
  }
  func.func @transform_9(%arg0: i32) -> (i32, i32, i32) {
    %c0_i32 = arith.constant 0 : i32
    %c0_i32_0 = arith.constant 0 : i32
    %c0_i32_1 = arith.constant 0 : i32
    %c0_i32_2 = arith.constant 0 : i32
    return %c0_i32, %c0_i32_0, %c0_i32_1 : i32, i32, i32
  }
  func.func @transform_10(%arg0: i32) -> (i32, i32, i32) {
    %c0_i32 = arith.constant 0 : i32
    %c0_i32_0 = arith.constant 0 : i32
    %c0_i32_1 = arith.constant 0 : i32
    %c0_i32_2 = arith.constant 0 : i32
    return %c0_i32, %c0_i32_0, %c0_i32_1 : i32, i32, i32
  }
  func.func @transform_11(%arg0: i32) -> (i32, i32, i32) {
    %c0_i32 = arith.constant 0 : i32
    %c0_i32_0 = arith.constant 0 : i32
    %c0_i32_1 = arith.constant 0 : i32
    %c0_i32_2 = arith.constant 0 : i32
    return %c0_i32, %c0_i32_0, %c0_i32_1 : i32, i32, i32
  }
  func.func @transform_12(%arg0: i32) -> (i32, i32, i32) {
    %c0_i32 = arith.constant 0 : i32
    %c0_i32_0 = arith.constant 0 : i32
    %c0_i32_1 = arith.constant 0 : i32
    %c0_i32_2 = arith.constant 0 : i32
    return %c0_i32, %c0_i32_0, %c0_i32_1 : i32, i32, i32
  }
  func.func @transform_13(%arg0: i32) -> (i32, i32, i32) {
    %c0_i32 = arith.constant 0 : i32
    %c0_i32_0 = arith.constant 0 : i32
    %c0_i32_1 = arith.constant 0 : i32
    %c0_i32_2 = arith.constant 0 : i32
    return %c0_i32, %c0_i32_0, %c0_i32_1 : i32, i32, i32
  }
  func.func @transform_14(%arg0: i32) -> (i32, i32, i32) {
    %c0_i32 = arith.constant 0 : i32
    %c0_i32_0 = arith.constant 0 : i32
    %c0_i32_1 = arith.constant 0 : i32
    %c0_i32_2 = arith.constant 0 : i32
    return %c0_i32, %c0_i32_0, %c0_i32_1 : i32, i32, i32
  }
  func.func @transform_15(%arg0: i32) -> (i32, i32, i32) {
    %c0_i32 = arith.constant 0 : i32
    %c0_i32_0 = arith.constant 0 : i32
    %c0_i32_1 = arith.constant 0 : i32
    %c0_i32_2 = arith.constant 0 : i32
    return %c0_i32, %c0_i32_0, %c0_i32_1 : i32, i32, i32
  }
  func.func @transform_16(%arg0: i32) -> (i32, i32) {
    %c0_i32 = arith.constant 0 : i32
    %c0_i32_0 = arith.constant 0 : i32
    %c0_i32_1 = arith.constant 0 : i32
    return %c0_i32, %c0_i32_0 : i32, i32
  }
  func.func @transform_17(%arg0: i32) -> (i32, i32) {
    %c0_i32 = arith.constant 0 : i32
    %c0_i32_0 = arith.constant 0 : i32
    %c0_i32_1 = arith.constant 0 : i32
    return %c0_i32, %c0_i32_0 : i32, i32
  }
  func.func @transform_18(%arg0: i32) -> (i32, i32, i32) {
    %c0_i32 = arith.constant 0 : i32
    %c0_i32_0 = arith.constant 0 : i32
    %c0_i32_1 = arith.constant 0 : i32
    return %arg0, %c0_i32, %c0_i32_0 : i32, i32, i32
  }
}

</mosaic_0001>

<bundles_post_ra>
// kernel: forward_pallas.1
= control target key start
LH: loop header
LB: loop body
LE: loop exit
PB: predicated region body
PF: predicated region fallthrough
CT: control target
= control target key end

     0   :  { %s4350_s27 = smov 0   ;;  %s5433_s0 = inlined_call_operand.vmem [shape: f32[64,24], index: 0, kind: input, shape index: {}]   ;;  %s5434_s1 = inlined_call_operand.vmem [shape: f32[32,32], index: 1, kind: input, shape index: {}]   ;;  %s5435_s2 = inlined_call_operand.vmem [shape: f32[24,32], index: 2, kind: input, shape index: {}]   ;;  %s5436_s3 = inlined_call_operand.vmem [shape: f32[1,32], index: 3, kind: input, shape index: {}]   ;;  %s5437_s4 = inlined_call_operand.vmem [shape: f32[2,32,96], index: 4, kind: input, shape index: {}]   ;;  %s5438_s5 = inlined_call_operand.vmem [shape: f32[2,1,96], index: 5, kind: input, shape index: {}]   ;;  %s5439_s6 = inlined_call_operand.vmem [shape: f32[2,32,32], index: 6, kind: input, shape index: {}]   ;;  %s5440_s7 = inlined_call_operand.vmem [shape: f32[2,1,32], index: 7, kind: input, shape index: {}]   ;;  %s5441_s8 = inlined_call_operand.vmem [shape: f32[2,32,64], index: 8, kind: input, shape index: {}]   ;;  %s5442_s9 = inlined_call_operand.vmem [shape: f32[2,1,64], index: 9, kind: input, shape index: {}]   ;;  %s5443_s10 = inlined_call_operand.vmem [shape: f32[2,64,32], index: 10, kind: input, shape index: {}]   ;;  %s5444_s11 = inlined_call_operand.vmem [shape: f32[2,1,32], index: 11, kind: input, shape index: {}]   ;;  %s5445_s12 = inlined_call_operand.vmem [shape: f32[2,1,32], index: 12, kind: input, shape index: {}]   ;;  %s5446_s13 = inlined_call_operand.vmem [shape: f32[2,1,32], index: 13, kind: input, shape index: {}]   ;;  %s5447_s14 = inlined_call_operand.vmem [shape: f32[2,1,32], index: 14, kind: input, shape index: {}]   ;;  %s5448_s15 = inlined_call_operand.vmem [shape: f32[2,1,32], index: 15, kind: input, shape index: {}]   ;;  %s5449_s16 = inlined_call_operand.vmem [shape: f32[10,32], index: 16, kind: input, shape index: {}]   ;;  %s5450_s17 = inlined_call_operand.vmem [shape: f32[10,1], index: 17, kind: input, shape index: {}]   ;;  %s5451_s18 = inlined_call_operand.vmem [shape: f32[2,10,32], index: 18, kind: output, shape index: {}]  }
   0x1   :  { %5483 = sst [smem:[#allocation2_spill]] %s5433_s0 }
   0x2   :  { %5484 = sst [smem:[#allocation3_spill]] %s5434_s1 }
   0x3   :  { %5485 = sst [smem:[#allocation4_spill]] %s5435_s2 }
   0x4   :  { %5486 = sst [smem:[#allocation5_spill]] %s5436_s3 }
   0x5 LB: > { %s4356_s28 = sadd.s32 4294967295, %s4237_s27   ;;  %p3811_p0 = scmp.ge.s32.totalorder %s4237_s27, 1  ;;  %s4237_s27 = sphi %s4350_s27, %s28_s27  }
   0x6   : > { %p513_p1 = scmp.lt.s32.totalorder %s4237_s27, 3 }
   0x8   : > { %p514_p2 = pnand %p3811_p0, %p513_p1 }
   0x9   : > { %s5487_s0 = sld [smem:[#allocation4_spill]] (!%p514_p2)  ;;  %s3812_s20 = sshll.u32 (!%p514_p2), %s4356_s28, 2 }
   0xa   : > { %517 = sbr.rel (%p514_p2) target bundleno = 5032 (0x13a8), region = 92  ;;  %p568_p3 = scmp.lt.s32.totalorder (!%p514_p2), %s3812_s20, 7 }
   0xb   : > { %s5488_s29 = sld [smem:[#allocation2_spill]] (!%p514_p2)  ;;  %s5462_s21 = smov (!%p514_p2), 88  }
   0xc   : > { %s5489_s3 = sld [smem:[#allocation5_spill]] (!%p514_p2)  ;;  %s5454_s22 = smov (!%p514_p2), 64  }
   0xd   : > { %s5460_s2 = smov (!%p514_p2), 120   ;;  %s5458_s23 = smov (!%p514_p2), 80  }
   0xe   : > { %s5466_s25 = smov (!%p514_p2), 72   ;;  %s5480_s19 = smov (!%p514_p2), 56  }
   0xf   : > { %v584_v0 = vld [vmem:[%s5487_s0 + $0x10] sm:$0xff]  ;;  %v583_v1 = vld [vmem:[%s5487_s0 + $0x8] sm:$0xff]  ;;  %v582_v2 = vld [vmem:[%s5487_s0] sm:$0xff]  ;;  %s5508_s20 = smov (!%p568_p3, %s3812_s20), 7  ;;  %vm589_vm0 = vcmask 195584   ;;  %vm647_vm1 = vcmask 261120  }
  0x10   : > { %615 = vmatpush.msra.mxu0 %v584_v0  ;;  %v642_v3 = vld [vmem:[%s5437_s4 + $0x18] sm:$0xff]  ;;  %s3813_s24 = sshll.u32 %s5508_s20, 3  ;;  %v641_v5 = vld [vmem:[%s5437_s4 + $0x10] sm:$0xff]  ;;  %v640_v6 = vld [vmem:[%s5437_s4 + $0x8] sm:$0xff]  ;;  %s5468_s20 = smov 96   ;;  %vm692_vm2 = vcmask 64512  }
  0x11   : > { %672 = vmatpush.msra.mxu1 %v642_v3  ;;  %s4376_s30 = scalar_lea.vmem %s5488_s29, %s3813_s24  ;;  %v639_v7 = vld [vmem:[%s5437_s4] sm:$0xff]  ;;  %s5490_s29 = sld [smem:[#allocation3_spill]]  ;;  %vm962_vm3 = vcmask 130048   ;;  %vm2016_vm8 = vcmask 523264  }
  0x12   : > { %616 = vmatpush.msra.mxu0 %v583_v1  ;;  %v578_v4 = vld [vmem:[%s4376_s30] sm:$0xff]  ;;  %s5456_s24 = smov 112   ;;  %v579_v16 = vld [vmem:[%s4376_s30 + $0x8] sm:$0xff]  ;;  %v580_v17 = vld [vmem:[%s4376_s30 + $0x10] sm:$0xff]  ;;  %s5478_s1 = smov 48  }
  0x13   : > { %673 = vmatpush.msra.mxu1 %v641_v5  ;;  %v4392_v8 = vld [vmem:[%s5489_s3] ss:$0 sm:$0xff]  ;;  %v581_v43 = vld [vmem:[%s4376_s30 + $0x18] sm:$0xff]  ;;  %s5476_s30 = smov 40   ;;  %s5472_s26 = smov 16  }
  0x14   : > { %617 = vmatpush.msra.mxu0 %v582_v2  ;;  %v4405_v13 = vld [vmem:[%s5438_s5] ss:$0 sm:$0xff]  ;;  %s5502_s3 = smov 48   ;;  %s5503_s0 = smov 40  }
  0x15   : > { %3816 = vmatmul.msk.f32.vlgmr.msra.gmra.mxu0 %vm589_vm0, %v578_v4  ;;  %674 = vmatpush.msra.mxu1 %v640_v6  ;;  %p573_p4 = scmp.lt.s32.totalorder %s4356_s28, 1 }
  0x17   : > { %675 = vmatpush.msra.mxu1 %v639_v7  ;;  %v631_v10 = vld [vmem:[%s5490_s29] sm:$0xff]  ;;  %v632_v22 = vld [vmem:[%s5490_s29 + $0x8] sm:$0xff]  ;;  %v633_v26 = vld [vmem:[%s5490_s29 + $0x10] sm:$0xff]  ;;  %s5510_s28 = smov (!%p573_p4, %s4356_s28), 1 }
  0x18   : > { %v634_v50 = vld [vmem:[%s5490_s29 + $0x18] sm:$0xff] }
  0x1d   : > { %3817 = vmatmul.msk.f32.gmra.mxu0 %vm589_vm0, %v579_v16 }
  0x25   : > { %3818 = vmatmul.msk.f32.gmra.mxu0 %vm589_vm0, %v580_v17 }
  0x2d   : > { %3819 = vmatmul.msk.f32.gmra.mxu0 %vm589_vm0, %v581_v43 }
  0x92   : > { %v619_v9 = vpop.f32.mrf.mxu0 }
  0x93   : > { %v620_v11 = vadd.f32 %v4392_v8, %v619_v9 }
  0x95   : > { %v4398_v12 = vadd.f32 %v631_v10, %v620_v11 }
  0x97   : > { %3820 = vmatmul.msk.f32.vlgmr.msra.gmra.mxu1 %vm647_vm1, %v4398_v12 }
  0x9a   : > { %v622_v21 = vpop.f32.mrf.mxu0 }
  0x9b   : > { %v623_v23 = vadd.f32 %v4392_v8, %v622_v21 }
  0x9d   : > { %v4436_v24 = vadd.f32 %v632_v22, %v623_v23 }
  0x9f   : > { %3821 = vmatmul.msk.f32.gmra.mxu1 %vm647_vm1, %v4436_v24 }
  0xa2   : > { %v625_v25 = vpop.f32.mrf.mxu0 }
  0xa3   : > { %v626_v27 = vadd.f32 %v4392_v8, %v625_v25 }
  0xa5   : > { %v4444_v28 = vadd.f32 %v633_v26, %v626_v27 }
  0xa7   : > { %3822 = vmatmul.msk.f32.gmra.mxu1 %vm647_vm1, %v4444_v28 }
  0xaa   : > { %v628_v49 = vpop.f32.mrf.mxu0 }
  0xab   : > { %v629_v51 = vadd.f32 %v4392_v8, %v628_v49 }
  0xad   : > { %v4473_v52 = vadd.f32 %v634_v50, %v629_v51 }
  0xaf   : > { %3823 = vmatmul.msk.f32.gmra.mxu1 %vm647_vm1, %v4473_v52 }
 0x114   : > { %v677_v14 = vpop.f32.mrf.mxu1 }
 0x115   : > { %v4408_v15 = vadd.f32 %v4405_v13, %v677_v14 }
 0x117   : > { %756 = vrot.lane.b32.xlu2 %v4408_v15, %s5462_s21  ;;  %728 = vrot.lane.b32.xlu1 %v4408_v15, %s5454_s22  ;;  %s5464_s22 = smov 104  }
 0x118   : > { %690 = vrot.lane.b32.xlu0 %v4408_v15, %s5468_s20 }
 0x11c   : > { %v680_v34 = vpop.f32.mrf.mxu1 }
 0x11d   : > { %v4450_v35 = vadd.f32 %v4405_v13, %v680_v34 }
 0x11f   : > { %754 = vrot.lane.b32.xlu2 %v4408_v15, %s5460_s2 }
 0x124   : > { %v683_v62 = vpop.f32.mrf.mxu1 }
 0x125   : > { %v4500_v63 = vadd.f32 %v4405_v13, %v683_v62 }
 0x127   : > { %821 = vrot.lane.b32.xlu2 %v4408_v15, %s5458_s23 }
 0x12c   : > { %v686_v0 = vpop.f32.mrf.mxu1 }
 0x12d   : > { %v4513_v1 = vadd.f32 %v4405_v13, %v686_v0 }
 0x12f   : > { %819 = vrot.lane.b32.xlu2 %v4408_v15, %s5456_s24 }
 0x137   : > { %886 = vrot.lane.b32.xlu2 %v4408_v15, %s5466_s25 }
 0x13f   : > { %1031 = vrot.lane.b32.xlu2 %v4450_v35, %s5462_s21 }
 0x171   : > { %v757_v19 = vpop.permute.xlu2 %756 }
 0x179   : > { %v755_v38 = vpop.permute.xlu2 %754 }
 0x181   : > { %v822_v39 = vpop.permute.xlu2 %821 }
 0x189   : > { %v729_v18 = vpop.permute.xlu1 %728  ;;  %v820_v40 = vpop.permute.xlu2 %819 }
 0x18a   : > { %v691_v20 = vpop.permute.xlu0 %690  ;;  %749 = vmatpush.msra.mxu3 %v729_v18 }
 0x18b   : > { %3824 = vmatpush.xpose.msk.msra.mxu2 %vm692_vm2, %v691_v20 }
 0x18c   : > { %3827 = vmatpush.xpose.msk.msrb.mxu3 %vm692_vm2, %v757_v19 }
 0x18e   : > { %3825 = vmatmul.msk.f32.vlgmr.msra.gmra.mxu2 %vm692_vm2, %v4408_v15 }
 0x191   : > { %v887_v41 = vpop.permute.xlu2 %886 }
 0x199   : > { %v1032_v42 = vpop.permute.xlu2 %1031 }
 0x19a   : > { %3839 = vmatpush.xpose.msk.msrb.mxu0 %vm692_vm2, %v1032_v42 }
 0x211   : > { %v714_v29 = vpop.f32.mrf.mxu2 }
 0x212   : > { %v717_v30 = vsel %vm692_vm2, %v714_v29, -inf }
 0x213   : > { %718 = vmax.xlane.f32.xlu0 %v717_v30 }
 0x286   : > { %v719_v31 = vpop.xlane.xlu0 %718 }
 0x287   : > { %v720_v32 = vsub.f32 %v714_v29, %v719_v31 }
 0x289   : > { %v721_v33 = vmul.f32 1.442695, %v720_v32 }
 0x28b   : > { %4069 = vpow2.f32 %v721_v33 }
 0x291   : > { %v4070_v36 = vpop.eup %4069 }
 0x292   : > { %v723_v37 = vsel %vm692_vm2, %v4070_v36, 0.0 }
 0x293   : > { %724 = vadd.xlane.f32.xlu1 %v723_v37 }
 0x2ac   : > { %884 = vrot.lane.b32.xlu1 %v4408_v15, %s5464_s22 }
 0x2b4   : > { %1029 = vrot.lane.b32.xlu1 %v4450_v35, %s5460_s2 }
 0x306   : > { %v725_v44 = vpop.xlane.xlu1 %724 }
 0x307   : > { %4071 = vrcp.f32 %v725_v44 }
 0x30d   : > { %v4072_v45 = vpop.eup %4071 }
 0x30e   : > { %v727_v46 = vmul.f32 %v4072_v45, %v4070_v36 }
 0x310   : > { %3826 = vmatmul.msk.f32.vlgmr.msra.gmra.mxu3 %vm692_vm2, %v727_v46 }
 0x311   : > { %3830 = vmatpush.xpose.msk.msra.mxu3 %vm692_vm2, %v822_v39 }
 0x318   : > { %3828 = vmatmul.msk.f32.vlgmr.msrb.gmra.mxu3 %vm692_vm2, %v755_v38 }
 0x319   : > { %3833 = vmatpush.xpose.msk.msrb.mxu3 %vm692_vm2, %v887_v41 }
 0x31e   : > { %v885_v47 = vpop.permute.xlu1 %884 }
 0x320   : > { %3831 = vmatmul.msk.f32.vlgmr.msra.gmra.mxu3 %vm692_vm2, %v820_v40 }
 0x326   : > { %v1030_v48 = vpop.permute.xlu1 %1029 }
 0x327   : > { %3840 = vmatmul.msk.f32.vlgmr.msrb.gmra.mxu0 %vm692_vm2, %v1030_v48 }
 0x328   : > { %3834 = vmatmul.msk.f32.vlgmr.msrb.gmra.mxu3 %vm692_vm2, %v885_v47 }
 0x393   : > { %v4477_v53 = vpop.f32.mrf.mxu3 }
 0x39b   : > { %v779_v54 = vpop.f32.mrf.mxu3 }
 0x39c   : > { %v782_v55 = vsel %vm692_vm2, %v779_v54, -inf }
 0x39d   : > { %783 = vmax.xlane.f32.xlu2 %v782_v55 }
 0x3a3   : > { %v844_v56 = vpop.f32.mrf.mxu3 }
 0x3a4   : > { %v1054_v57 = vpop.f32.mrf.mxu0  ;;  %v847_v58 = vsel %vm692_vm2, %v844_v56, -inf }
 0x3a5   : > { %848 = vmax.xlane.f32.xlu1 %v847_v58  ;;  %v1057_v59 = vsel %vm692_vm2, %v1054_v57, -inf }
 0x3a6   : > { %1058 = vmax.xlane.f32.xlu0 %v1057_v59 }
 0x3ab   : > { %v909_v60 = vpop.f32.mrf.mxu3 }
 0x3ac   : > { %v912_v61 = vsel %vm692_vm2, %v909_v60, -inf }
 0x3ae   : > { %913 = vmax.xlane.f32.xlu0 %v912_v61 }
 0x3b5   : > { %966 = vrot.lane.b32.xlu2 %v4450_v35, %s5468_s20 }
 0x3bd   : > { %1068 = vrot.lane.b32.xlu2 %v4450_v35, %s5480_s19 }
 0x3be   : > { %858 = vrot.lane.b32.xlu1 %v4408_v15, %s5478_s1 }
 0x3c2   : > { %793 = vrot.lane.b32.xlu0 %v4408_v15, %s5480_s19 }
 0x3c5   : > { %1094 = vrot.lane.b32.xlu2 %v4450_v35, %s5456_s24 }
 0x3c6   : > { %923 = vrot.lane.b32.xlu1 %v4408_v15, %s5476_s30 }
 0x3cd   : > { %1161 = vrot.lane.b32.xlu2 %v4450_v35, %s5466_s25 }
 0x3ce   : > { %1096 = vrot.lane.b32.xlu1 %v4450_v35, %s5458_s23 }
 0x3d5   : > { %1368 = vrot.lane.b32.xlu2 %v4500_v63, %s5456_s24 }
 0x3d6   : > { %1240 = vrot.lane.b32.xlu1 %v4500_v63, %s5468_s20 }
 0x3dd   : > { %1303 = vrot.lane.b32.xlu2 %v4500_v63, %s5460_s2 }
 0x3de   : > { %1159 = vrot.lane.b32.xlu1 %v4450_v35, %s5464_s22 }
 0x3e6   : > { %1305 = vrot.lane.b32.xlu1 %v4500_v63, %s5462_s21 }
 0x3ee   : > { %1514 = vrot.lane.b32.xlu1 %v4513_v1, %s5468_s20  ;;  %s5494_s20 = smov 96  }
 0x3f6   : > { %1644 = vrot.lane.b32.xlu1 %v4513_v1, %s5458_s23 }
 0x3fe   : > { %1577 = vrot.lane.b32.xlu1 %v4513_v1, %s5460_s2  ;;  %s5491_s2 = smov 64  }
 0x410   : > { %v784_v2 = vpop.xlane.xlu2 %783 }
 0x411   : > { %v785_v3 = vsub.f32 %v779_v54, %v784_v2 }
 0x413   : > { %v786_v4 = vmul.f32 1.442695, %v785_v3 }
 0x415   : > { %4073 = vpow2.f32 %v786_v4 }
 0x418   : > { %v967_v5 = vpop.permute.xlu2 %966  ;;  %v849_v6 = vpop.xlane.xlu1 %848 }
 0x419   : > { %v850_v7 = vsub.f32 %v844_v56, %v849_v6  ;;  %3836 = vmatpush.xpose.msk.msra.mxu3 %vm692_vm2, %v967_v5  ;;  %v1059_v8 = vpop.xlane.xlu0 %1058 }
 0x41a   : > { %v1060_v11 = vsub.f32 %v1054_v57, %v1059_v8 }
 0x41b   : > { %v4074_v9 = vpop.eup %4073  ;;  %v851_v10 = vmul.f32 1.442695, %v850_v7 }
 0x41c   : > { %3837 = vmatmul.msk.f32.vlgmr.msra.gmra.mxu3 %vm692_vm2, %v4450_v35  ;;  %v788_v13 = vsel %vm692_vm2, %v4074_v9, 0.0  ;;  %v1061_v14 = vmul.f32 1.442695, %v1060_v11 }
 0x41d   : > { %4075 = vpow2.f32 %v851_v10  ;;  %789 = vadd.xlane.f32.xlu0 %v788_v13 }
 0x41e   : > { %4077 = vpow2.f32 %v1061_v14 }
 0x420   : > { %v1069_v15 = vpop.permute.xlu2 %1068 }
 0x421   : > { %1089 = vmatpush.msrb.mxu3 %v1069_v15  ;;  %v914_v16 = vpop.xlane.xlu0 %913 }
 0x422   : > { %v915_v17 = vsub.f32 %v909_v60, %v914_v16 }
 0x423   : > { %v4076_v18 = vpop.eup %4075 }
 0x424   : > { %v916_v19 = vmul.f32 1.442695, %v915_v17  ;;  %v853_v20 = vsel %vm692_vm2, %v4076_v18, 0.0  ;;  %v4078_v22 = vpop.eup %4077 }
 0x425   : > { %854 = vadd.xlane.f32.xlu0 %v853_v20  ;;  %v1063_v25 = vsel %vm692_vm2, %v4078_v22, 0.0 }
 0x426   : > { %4079 = vpow2.f32 %v916_v19 }
 0x428   : > { %v1095_v21 = vpop.permute.xlu2 %1094 }
 0x42c   : > { %v4080_v23 = vpop.eup %4079 }
 0x42d   : > { %1064 = vadd.xlane.f32.xlu0 %v1063_v25  ;;  %v918_v26 = vsel %vm692_vm2, %v4080_v23, 0.0 }
 0x42e   : > { %919 = vadd.xlane.f32.xlu2 %v918_v26 }
 0x430   : > { %v1162_v27 = vpop.permute.xlu2 %1161  ;;  %v859_v29 = vpop.permute.xlu1 %858 }
 0x431   : > { %3845 = vmatpush.xpose.msk.msra.mxu0 %vm692_vm2, %v1162_v27 }
 0x434   : > { %v794_v30 = vpop.permute.xlu0 %793 }
 0x435   : > { %814 = vmatpush.msrb.mxu2 %v794_v30 }
 0x437   : > { %879 = vmatpush.msra.mxu2 %v859_v29 }
 0x438   : > { %v924_v31 = vpop.permute.xlu1 %923  ;;  %v1369_v34 = vpop.permute.xlu2 %1368 }
 0x440   : > { %v1097_v32 = vpop.permute.xlu1 %1096  ;;  %v1304_v38 = vpop.permute.xlu2 %1303 }
 0x441   : > { %1370 = vrot.lane.b32.xlu0 %v4500_v63, %s5458_s23  ;;  %3842 = vmatpush.xpose.msk.msra.mxu3 %vm692_vm2, %v1097_v32  ;;  %s5474_s23 = smov 8  }
 0x446   : > { %1435 = vrot.lane.b32.xlu2 %v4500_v63, %s5466_s25 }
 0x448   : > { %v1241_v33 = vpop.permute.xlu1 %1240 }
 0x449   : > { %1433 = vrot.lane.b32.xlu0 %v4500_v63, %s5464_s22 }
 0x44e   : > { %1642 = vrot.lane.b32.xlu2 %v4513_v1, %s5456_s24  ;;  %s5470_s24 = smov 24  }
 0x450   : > { %v1160_v36 = vpop.permute.xlu1 %1159 }
 0x451   : > { %1579 = vrot.lane.b32.xlu0 %v4513_v1, %s5462_s21  ;;  %3846 = vmatmul.msk.f32.vlgmr.msra.gmra.mxu0 %vm692_vm2, %v1160_v36  ;;  %s5500_s21 = smov 112  }
 0x456   : > { %1709 = vrot.lane.b32.xlu2 %v4513_v1, %s5466_s25  ;;  %s5492_s25 = smov 16  }
 0x458   : > { %v1306_v37 = vpop.permute.xlu1 %1305 }
 0x459   : > { %1707 = vrot.lane.b32.xlu0 %v4513_v1, %s5464_s22  ;;  %3851 = vmatpush.xpose.msk.msrb.mxu0 %vm692_vm2, %v1306_v37  ;;  %s5501_s22 = smov 56  }
 0x45c   : > { %3852 = vmatmul.msk.f32.vlgmr.msrb.gmra.mxu0 %vm692_vm2, %v1304_v38 }
 0x460   : > { %v1515_v56 = vpop.permute.xlu1 %1514 }
 0x468   : > { %v1645_v60 = vpop.permute.xlu1 %1644 }
 0x470   : > { %v1578_v0 = vpop.permute.xlu1 %1577 }
 0x490   : > { %v790_v39 = vpop.xlane.xlu0 %789 }
 0x491   : > { %4081 = vrcp.f32 %v790_v39 }
 0x497   : > { %v4082_v40 = vpop.eup %4081 }
 0x498   : > { %v855_v41 = vpop.xlane.xlu0 %854  ;;  %v792_v42 = vmul.f32 %v4082_v40, %v4074_v9 }
 0x499   : > { %4083 = vrcp.f32 %v855_v41  ;;  %v4009_v41 = vpack.i.bf16 %v4500_v63, %v4450_v35 }
 0x49a   : > { %3829 = vmatmul.msk.f32.vlgmr.msrb.gmra.mxu2 %vm692_vm2, %v792_v42 }
 0x49b   : > { %944 = vmatpush.msrb.mxu2 %v924_v31 }
 0x49f   : > { %v4084_v43 = vpop.eup %4083  ;;  %v989_v44 = vpop.f32.mrf.mxu3 }
 0x4a0   : > { %v857_v45 = vmul.f32 %v4084_v43, %v4076_v18  ;;  %v1065_v46 = vpop.xlane.xlu0 %1064  ;;  %v992_v47 = vsel %vm692_vm2, %v989_v44, -inf }
 0x4a1   : > { %4085 = vrcp.f32 %v1065_v46  ;;  %993 = vmax.xlane.f32.xlu1 %v992_v47  ;;  %v920_v48 = vpop.xlane.xlu2 %919 }
 0x4a2   : > { %4087 = vrcp.f32 %v920_v48  ;;  %3832 = vmatmul.msk.f32.vlgmr.msra.gmra.mxu2 %vm692_vm2, %v857_v45 }
 0x4a7   : > { %v4086_v49 = vpop.eup %4085 }
 0x4a8   : > { %v4088_v50 = vpop.eup %4087  ;;  %v1067_v51 = vmul.f32 %v4086_v49, %v4078_v22 }
 0x4a9   : > { %v922_v54 = vmul.f32 %v4088_v50, %v4080_v23  ;;  %v1436_v55 = vpop.permute.xlu2 %1435 }
 0x4aa   : > { %3841 = vmatmul.msk.f32.vlgmr.msrb.gmra.mxu3 %vm692_vm2, %v1067_v51  ;;  %3857 = vmatpush.xpose.msk.msra.mxu0 %vm692_vm2, %v1436_v55  ;;  %v1790_v55 = vld [vmem:[%s5439_s6 + $0x18] sm:$0xff] }
 0x4ab   : > { %3848 = vmatpush.xpose.msk.msrb.mxu3 %vm692_vm2, %v1241_v33  ;;  %3835 = vmatmul.msk.f32.vlgmr.msrb.gmra.mxu2 %vm692_vm2, %v922_v54 }
 0x4b1   : > { %v1643_v58 = vpop.permute.xlu2 %1642 }
 0x4b2   : > { %3843 = vmatmul.msk.f32.vlgmr.msra.gmra.mxu3 %vm692_vm2, %v1095_v21 }
 0x4b3   : > { %v1371_v57 = vpop.permute.xlu0 %1370 }
 0x4b4   : > { %3854 = vmatpush.xpose.msk.msra.mxu3 %vm692_vm2, %v1371_v57 }
 0x4b9   : > { %v1710_v62 = vpop.permute.xlu2 %1709 }
 0x4ba   : > { %3849 = vmatmul.msk.f32.vlgmr.msrb.gmra.mxu3 %vm692_vm2, %v4500_v63 }
 0x4bb   : > { %3860 = vmatpush.xpose.msk.msrb.mxu3 %vm692_vm2, %v1515_v56  ;;  %v1434_v59 = vpop.permute.xlu0 %1433 }
 0x4bc   : > { %3858 = vmatmul.msk.f32.vlgmr.msra.gmra.mxu0 %vm692_vm2, %v1434_v59 }
 0x4c2   : > { %3855 = vmatmul.msk.f32.vlgmr.msra.gmra.mxu3 %vm692_vm2, %v1369_v34 }
 0x4c3   : > { %3866 = vmatpush.xpose.msk.msra.mxu3 %vm692_vm2, %v1645_v60  ;;  %v1580_v61 = vpop.permute.xlu0 %1579 }
 0x4c4   : > { %3863 = vmatpush.xpose.msk.msrb.mxu0 %vm692_vm2, %v1580_v61  ;;  %v1789_v61 = vld [vmem:[%s5439_s6 + $0x10] sm:$0xff] }
 0x4c7   : > { %3864 = vmatmul.msk.f32.vlgmr.msrb.gmra.mxu0 %vm692_vm2, %v1578_v0  ;;  %v1788_v0 = vld [vmem:[%s5439_s6 + $0x8] sm:$0xff] }
 0x4c8   : > { %3869 = vmatpush.xpose.msk.msra.mxu0 %vm692_vm2, %v1710_v62 }
 0x4ca   : > { %3861 = vmatmul.msk.f32.vlgmr.msrb.gmra.mxu3 %vm692_vm2, %v4513_v1 }
 0x4cb   : > { %v1708_v2 = vpop.permute.xlu0 %1707  ;;  %1819 = vmatpush.msrb.mxu3 %v1790_v55 }
 0x4cd   : > { %1820 = vmatpush.msrb.mxu3 %v1789_v61 }
 0x4ce   : > { %v1184_v3 = vpop.f32.mrf.mxu0 }
 0x4cf   : > { %3870 = vmatmul.msk.f32.vlgmr.msra.gmra.mxu0 %vm692_vm2, %v1708_v2  ;;  %v1187_v4 = vsel %vm692_vm2, %v1184_v3, -inf  ;;  %1821 = vmatpush.msrb.mxu3 %v1788_v0 }
 0x4d0   : > { %1188 = vmax.xlane.f32.xlu0 %v1187_v4  ;;  %v1787_v4 = vld [vmem:[%s5439_s6] sm:$0xff] }
 0x4d1   : > { %1822 = vmatpush.msrb.mxu3 %v1787_v4 }
 0x4d2   : > { %3867 = vmatmul.msk.f32.vlgmr.msra.gmra.mxu3 %vm692_vm2, %v1643_v58 }
 0x4d9   : > { %v4573_v8 = vpop.f32.mrf.mxu0 }
 0x4da   : > { %v1331_v11 = vsel %vm692_vm2, %v4573_v8, -inf }
 0x514   : > { %v994_v13 = vpop.xlane.xlu1 %993 }
 0x515   : > { %v995_v15 = vsub.f32 %v989_v44, %v994_v13 }
 0x517   : > { %v996_v19 = vmul.f32 1.442695, %v995_v15 }
 0x519   : > { %4089 = vpow2.f32 %v996_v19 }
 0x51d   : > { %v816_v27 = vpop.f32.mrf.mxu2 }
 0x51f   : > { %v4594_v25 = vpop.eup %4089 }
 0x520   : > { %v998_v30 = vsel %vm692_vm2, %v4594_v25, 0.0 }
 0x525   : > { %v881_v31 = vpop.f32.mrf.mxu2 }
 0x52d   : > { %v4570_v5 = vpop.f32.mrf.mxu3 }
 0x52e   : > { %v946_v32 = vpop.f32.mrf.mxu2 }
 0x535   : > { %v1119_v6 = vpop.f32.mrf.mxu3 }
 0x536   : > { %v1122_v7 = vsel %vm692_vm2, %v1119_v6, -inf }
 0x537   : > { %1123 = vmax.xlane.f32.xlu2 %v1122_v7 }
 0x539   : > { %v4578_v14 = vpop.f32.mrf.mxu0 }
 0x53a   : > { %v1461_v18 = vsel %vm692_vm2, %v4578_v14, -inf }
 0x53d   : > { %v1263_v9 = vpop.f32.mrf.mxu3 }
 0x53e   : > { %v1266_v10 = vsel %vm692_vm2, %v1263_v9, -inf }
 0x53f   : > { %1267 = vmax.xlane.f32.xlu1 %v1266_v10  ;;  %1332 = vmax.xlane.f32.xlu2 %v1331_v11 }
 0x543   : > { %v1189_v33 = vpop.xlane.xlu0 %1188 }
 0x544   : > { %v4586_v20 = vpop.f32.mrf.mxu0  ;;  %v1190_v34 = vsub.f32 %v1184_v3, %v1189_v33 }
 0x545   : > { %v4580_v16 = vpop.f32.mrf.mxu3  ;;  %v1605_v23 = vsel %vm692_vm2, %v4586_v20, -inf }
 0x546   : > { %v1396_v17 = vsel %vm692_vm2, %v4580_v16, -inf  ;;  %v1191_v36 = vmul.f32 1.442695, %v1190_v34 }
 0x547   : > { %1397 = vmax.xlane.f32.xlu0 %v1396_v17  ;;  %1462 = vmax.xlane.f32.xlu1 %v1461_v18 }
 0x548   : > { %4091 = vpow2.f32 %v1191_v36 }
 0x54c   : > { %v4605_v37 = vpop.f32.mrf.mxu0 }
 0x54d   : > { %v4588_v21 = vpop.f32.mrf.mxu3  ;;  %v1735_v38 = vsel %vm692_vm2, %v4605_v37, -inf }
 0x54e   : > { %v1540_v22 = vsel %vm692_vm2, %v4588_v21, -inf  ;;  %v4609_v39 = vpop.eup %4091 }
 0x54f   : > { %1541 = vmax.xlane.f32.xlu2 %v1540_v22  ;;  %1606 = vmax.xlane.f32.xlu0 %v1605_v23  ;;  %v1193_v40 = vsel %vm692_vm2, %v4609_v39, 0.0 }
 0x555   : > { %v4596_v26 = vpop.f32.mrf.mxu3 }
 0x556   : > { %v1670_v29 = vsel %vm692_vm2, %v4596_v26, -inf }
 0x557   : > { %1671 = vmax.xlane.f32.xlu1 %v1670_v29  ;;  %999 = vadd.xlane.f32.xlu0 %v998_v30 }
 0x567   : > { %954 = vrot.lane.b32.xlu2 %v881_v31, %s5472_s26  ;;  %s5493_s26 = smov 24  }
 0x56b   : > { %958 = vrot.lane.b32.xlu0 %v946_v32, %s5470_s24  ;;  %s5495_s24 = smov 72  }
 0x570   : > { %950 = vrot.lane.b32.xlu1 %v816_v27, %s5474_s23 }
 0x590   : > { %1736 = vmax.xlane.f32.xlu2 %v1735_v38 }
 0x595   : > { %1194 = vadd.xlane.f32.xlu0 %v1193_v40 }
 0x5a8   : > { %4010 = vrot.lane.b32.xlu2 %v4009_v41, %s5491_s2 }
 0x5a9   : > { %4015 = vrot.lane.b32.xlu0 %v4009_v41, %s5478_s1 }
 0x5aa   : > { %v1124_v42 = vpop.xlane.xlu2 %1123 }
 0x5ab   : > { %v1125_v43 = vsub.f32 %v1119_v6, %v1124_v42 }
 0x5ad   : > { %v1126_v44 = vmul.f32 1.442695, %v1125_v43 }
 0x5af   : > { %4093 = vpow2.f32 %v1126_v44 }
 0x5b2   : > { %v1268_v45 = vpop.xlane.xlu1 %1267  ;;  %v1333_v46 = vpop.xlane.xlu2 %1332 }
 0x5b3   : > { %v1269_v47 = vsub.f32 %v1263_v9, %v1268_v45  ;;  %v1334_v50 = vsub.f32 %v4573_v8, %v1333_v46 }
 0x5b5   : > { %v4617_v48 = vpop.eup %4093  ;;  %v1270_v49 = vmul.f32 1.442695, %v1269_v47  ;;  %v1335_v35 = vmul.f32 1.442695, %v1334_v50 }
 0x5b6   : > { %v1128_v51 = vsel %vm692_vm2, %v4617_v48, 0.0 }
 0x5b7   : > { %1129 = vadd.xlane.f32.xlu1 %v1128_v51  ;;  %4095 = vpow2.f32 %v1270_v49 }
 0x5b8   : > { %4097 = vpow2.f32 %v1335_v35 }
 0x5ba   : > { %v1398_v54 = vpop.xlane.xlu0 %1397  ;;  %v1463_v57 = vpop.xlane.xlu1 %1462 }
 0x5bb   : > { %v1399_v58 = vsub.f32 %v4580_v16, %v1398_v54  ;;  %v1464_v60 = vsub.f32 %v4578_v14, %v1463_v57 }
 0x5bd   : > { %v4625_v56 = vpop.eup %4095  ;;  %v1400_v62 = vmul.f32 1.442695, %v1399_v58  ;;  %v1465_v6 = vmul.f32 1.442695, %v1464_v60 }
 0x5be   : > { %v1272_v59 = vsel %vm692_vm2, %v4625_v56, 0.0  ;;  %v4637_v2 = vpop.eup %4097 }
 0x5bf   : > { %1273 = vadd.xlane.f32.xlu1 %v1272_v59  ;;  %4099 = vpow2.f32 %v1400_v62  ;;  %v1337_v8 = vsel %vm692_vm2, %v4637_v2, 0.0 }
 0x5c0   : > { %4101 = vpow2.f32 %v1465_v6 }
 0x5c2   : > { %v1607_v3 = vpop.xlane.xlu0 %1606 }
 0x5c3   : > { %v1608_v7 = vsub.f32 %v4586_v20, %v1607_v3  ;;  %v1542_v20 = vpop.xlane.xlu2 %1541 }
 0x5c4   : > { %v1543_v34 = vsub.f32 %v4588_v21, %v1542_v20 }
 0x5c5   : > { %v1609_v9 = vmul.f32 1.442695, %v1608_v7  ;;  %v4645_v11 = vpop.eup %4099 }
 0x5c6   : > { %v4647_v13 = vpop.eup %4101  ;;  %v1402_v15 = vsel %vm692_vm2, %v4645_v11, 0.0  ;;  %v1544_v38 = vmul.f32 1.442695, %v1543_v34 }
 0x5c7   : > { %1338 = vadd.xlane.f32.xlu1 %v1337_v8  ;;  %4103 = vpow2.f32 %v1609_v9  ;;  %v1467_v16 = vsel %vm692_vm2, %v4647_v13, 0.0 }
 0x5ca   : > { %v1672_v10 = vpop.xlane.xlu1 %1671  ;;  %v1000_v22 = vpop.xlane.xlu0 %999 }
 0x5cb   : > { %v1673_v14 = vsub.f32 %v4596_v26, %v1672_v10  ;;  %v955_v29 = vpop.permute.xlu2 %954 }
 0x5cd   : > { %v1674_v17 = vmul.f32 1.442695, %v1673_v14  ;;  %v4654_v18 = vpop.eup %4103 }
 0x5ce   : > { %v1611_v19 = vsel %vm692_vm2, %v4654_v18, 0.0 }
 0x5cf   : > { %4105 = vpow2.f32 %v1674_v17 }
 0x5d0   : > { %4107 = vrcp.f32 %v1000_v22 }
 0x5d1   : > { %1403 = vadd.xlane.f32.xlu2 %v1402_v15 }
 0x5d3   : > { %1468 = vadd.xlane.f32.xlu0 %v1467_v16 }
 0x5d5   : > { %v4658_v23 = vpop.eup %4105 }
 0x5d6   : > { %v1676_v26 = vsel %vm692_vm2, %v4658_v23, 0.0 }
 0x5d9   : > { %1612 = vadd.xlane.f32.xlu2 %v1611_v19 }
 0x5dd   : > { %v959_v31 = vpop.permute.xlu0 %958 }
 0x5e0   : > { %4020 = vrot.lane.b32.xlu1 %v4009_v41, %s5476_s30  ;;  %v4108_v41 = vpop.eup %4107 }
 0x5e1   : > { %1677 = vadd.xlane.f32.xlu2 %v1676_v26  ;;  %v1002_v44 = vmul.f32 %v4108_v41, %v4594_v25 }
 0x5e2   : > { %v951_v27 = vpop.permute.xlu1 %950 }
 0x5e3   : > { %v961_v30 = vsel %vm692_vm2, %v4477_v53, %v951_v27 }
 0x5e4   : > { %v963_v32 = vsel %vm962_vm3, %v961_v30, %v955_v29 }
 0x5e5   : > { %v964_v33 = vsel %vm589_vm0, %v963_v32, %v959_v31 }
 0x5e6   : > { %3872 = vmatmul.msk.f32.vlgmr.msrb.gmra.mxu3 %vm647_vm1, %v964_v33 }
 0x5e7   : > { %1551 = vrot.lane.b32.xlu0 %v4513_v1, %s5491_s2 }
 0x5e8   : > { %1342 = vrot.lane.b32.xlu1 %v4500_v63, %s5480_s19 }
 0x5ef   : > { %1681 = vrot.lane.b32.xlu0 %v4513_v1, %s5478_s1  ;;  %s5498_s1 = smov 120  }
 0x603   : > { %v1737_v36 = vpop.xlane.xlu2 %1736 }
 0x604   : > { %v1738_v53 = vsub.f32 %v4605_v37, %v1737_v36 }
 0x606   : > { %v1739_v40 = vmul.f32 1.442695, %v1738_v53  ;;  %v4253_v53 = vmov 32.0  }
 0x608   : > { %4109 = vpow2.f32 %v1739_v40  ;;  %v1195_v46 = vpop.xlane.xlu0 %1194 }
 0x609   : > { %4111 = vpow2.f32 %v1544_v38 }
 0x60b   : > { %v4011_v42 = vpop.permute.xlu2 %4010 }
 0x60c   : > { %v4012_v43 = vunpack.i.l.bf16 %v4011_v42  ;;  %v4013_v50 = vunpack.i.h.bf16 %v4011_v42 }
 0x60e   : > { %v4677_v45 = vpop.eup %4109  ;;  %1024 = vmatpush.msra.mxu2 %v4012_v43 }
 0x60f   : > { %v4679_v63 = vpop.eup %4111  ;;  %3838 = vmatmul.msk.f32.vlgmr.msra.gmra.mxu2 %vm692_vm2, %v1002_v44  ;;  %v1741_v21 = vsel %vm692_vm2, %v4677_v45, 0.0 }
 0x610   : > { %1742 = vadd.xlane.f32.xlu2 %v1741_v21  ;;  %v1546_v37 = vsel %vm692_vm2, %v4679_v63, 0.0 }
 0x612   : > { %1547 = vadd.xlane.f32.xlu1 %v1546_v37 }
 0x61b   : > { %v4016_v47 = vpop.permute.xlu0 %4015 }
 0x61c   : > { %v4017_v49 = vunpack.i.l.bf16 %v4016_v47  ;;  %v4018_v54 = vunpack.i.h.bf16 %v4016_v47 }
 0x61e   : > { %1154 = vmatpush.msrb.mxu2 %v4017_v49 }
 0x620   : > { %1298 = vmatpush.msra.mxu2 %v4013_v50 }
 0x628   : > { %1616 = vrot.lane.b32.xlu2 %v4513_v1, %s5480_s19  ;;  %s5497_s19 = smov 88  }
 0x62a   : > { %v1130_v25 = vpop.xlane.xlu1 %1129 }
 0x62b   : > { %4113 = vrcp.f32 %v1130_v25  ;;  %1746 = vrot.lane.b32.xlu1 %v4513_v1, %s5476_s30  ;;  %s5499_s30 = smov 80  }
 0x631   : > { %v4114_v51 = vpop.eup %4113 }
 0x632   : > { %v1132_v35 = vmul.f32 %v4114_v51, %v4617_v48  ;;  %v1274_v55 = vpop.xlane.xlu1 %1273 }
 0x633   : > { %4115 = vrcp.f32 %v1274_v55  ;;  %1225 = vrot.lane.b32.xlu1 %v4570_v5, %s5474_s23 }
 0x634   : > { %3844 = vmatmul.msk.f32.vlgmr.msrb.gmra.mxu2 %vm692_vm2, %v1132_v35 }
 0x635   : > { %1428 = vmatpush.msrb.mxu2 %v4018_v54 }
 0x639   : > { %v4116_v57 = vpop.eup %4115 }
 0x63a   : > { %v1276_v58 = vmul.f32 %v4116_v57, %v4625_v56  ;;  %v1339_v60 = vpop.xlane.xlu1 %1338 }
 0x63c   : > { %3850 = vmatmul.msk.f32.vlgmr.msra.gmra.mxu2 %vm692_vm2, %v1276_v58 }
 0x644   : > { %v1404_v59 = vpop.xlane.xlu2 %1403 }
 0x645   : > { %4117 = vrcp.f32 %v1404_v59 }
 0x646   : > { %4119 = vrcp.f32 %v1195_v46  ;;  %v1469_v61 = vpop.xlane.xlu0 %1468 }
 0x647   : > { %4121 = vrcp.f32 %v1339_v60 }
 0x648   : > { %4123 = vrcp.f32 %v1469_v61 }
 0x64b   : > { %v4118_v1 = vpop.eup %4117 }
 0x64c   : > { %v1406_v48 = vmul.f32 %v4118_v1, %v4645_v11  ;;  %v4120_v62 = vpop.eup %4119  ;;  %v4706_v11 = vld [vmem:[%s5440_s7] ss:$0 sm:$0xff]  ;;  %v1613_v17 = vpop.xlane.xlu2 %1612 }
 0x64d   : > { %v1197_v3 = vmul.f32 %v4120_v62, %v4609_v39  ;;  %v4122_v4 = vpop.eup %4121  ;;  %4125 = vrcp.f32 %v1613_v17 }
 0x64e   : > { %3856 = vmatmul.msk.f32.vlgmr.msrb.gmra.mxu2 %vm692_vm2, %v1406_v48  ;;  %v1341_v8 = vmul.f32 %v4122_v4, %v4637_v2  ;;  %v4124_v10 = vpop.eup %4123 }
 0x64f   : > { %v1471_v39 = vmul.f32 %v4124_v10, %v4647_v13 }
 0x652   : > { %v4021_v5 = vpop.permute.xlu1 %4020 }
 0x653   : > { %v4022_v0 = vunpack.i.l.bf16 %v4021_v5  ;;  %v4023_v6 = vunpack.i.h.bf16 %v4021_v5  ;;  %v4126_v22 = vpop.eup %4125  ;;  %v1954_v5 = vld [vmem:[%s5441_s8 + $0x18] sm:$0xff] }
 0x654   : > { %v1678_v19 = vpop.xlane.xlu2 %1677  ;;  %v1615_v26 = vmul.f32 %v4126_v22, %v4654_v18 }
 0x655   : > { %1219 = vmatpush.msrb.mxu1 %v4022_v0 }
 0x656   : > { %3847 = vmatmul.msk.f32.vlgmr.msrb.gmra.mxu1 %vm692_vm2, %v1197_v3  ;;  %v1953_v3 = vld [vmem:[%s5441_s8 + $0x10] sm:$0xff] }
 0x659   : > { %v1552_v56 = vpop.permute.xlu0 %1551 }
 0x65a   : > { %1572 = vmatpush.msra.mxu2 %v1552_v56  ;;  %v1343_v7 = vpop.permute.xlu1 %1342  ;;  %v1952_v56 = vld [vmem:[%s5441_s8 + $0x8] sm:$0xff] }
 0x65b   : > { %1363 = vmatpush.msra.mxu1 %v1343_v7  ;;  %v1951_v7 = vld [vmem:[%s5441_s8] sm:$0xff] }
 0x65d   : > { %1493 = vmatpush.msrb.mxu1 %v4023_v6 }
 0x65e   : > { %3853 = vmatmul.msk.f32.vlgmr.msra.gmra.mxu1 %vm692_vm2, %v1341_v8 }
 0x661   : > { %v1682_v9 = vpop.permute.xlu0 %1681 }
 0x662   : > { %1702 = vmatpush.msrb.mxu2 %v1682_v9 }
 0x666   : > { %3859 = vmatmul.msk.f32.vlgmr.msrb.gmra.mxu1 %vm692_vm2, %v1471_v39 }
 0x669   : > { %v1824_v14 = vpop.f32.mrf.mxu3 }
 0x66a   : > { %v1825_v15 = vadd.f32 %v4706_v11, %v1824_v14 }
 0x66c   : > { %v1836_v2 = vadd.f32 %v1825_v15, %v4398_v12 }
 0x66e   : > { %v1842_v16 = vsel %vm647_vm1, %v1836_v2, 0.0 }
 0x66f   : > { %1843 = vadd.xlane.f32.xlu0 %v1842_v16 }
 0x683   : > { %v1743_v20 = vpop.xlane.xlu2 %1742 }
 0x685   : > { %v1548_v13 = vpop.xlane.xlu1 %1547 }
 0x686   : > { %4127 = vrcp.f32 %v1548_v13 }
 0x687   : > { %4129 = vrcp.f32 %v1678_v19 }
 0x688   : > { %4131 = vrcp.f32 %v1743_v20  ;;  %v4756_v20 = vld [vmem:[%s5445_s12] ss:$0 sm:$0xff] }
 0x689   : > { %4133 = vrcp.f32 %v4253_v53  ;;  %v2009_v53 = vld [vmem:[%s5443_s10 + $0x28] sm:$0xff] }
 0x68b   : > { %v1617_v27 = vpop.permute.xlu2 %1616 }
 0x68c   : > { %1637 = vmatpush.msra.mxu1 %v1617_v27  ;;  %v4128_v29 = vpop.eup %4127 }
 0x68d   : > { %3865 = vmatmul.msk.f32.vlgmr.msra.gmra.mxu1 %vm692_vm2, %v1615_v26  ;;  %v1550_v12 = vmul.f32 %v4128_v29, %v4679_v63  ;;  %v4130_v30 = vpop.eup %4129  ;;  %v4761_v26 = vld [vmem:[%s5446_s13] ss:$0 sm:$0xff] }
 0x68e   : > { %v1680_v31 = vmul.f32 %v4130_v30, %v4658_v23  ;;  %v4132_v32 = vpop.eup %4131 }
 0x68f   : > { %3862 = vmatmul.msk.f32.vlgmr.msra.gmra.mxu2 %vm692_vm2, %v1550_v12  ;;  %v1745_v33 = vmul.f32 %v4132_v32, %v4677_v45  ;;  %v4134_v38 = vpop.eup %4133 }
 0x690   : > { %v1855_v40 = vmul.f32 32.0, %v4134_v38  ;;  %vm1859_vm4 = vweird.f32 %v4134_v38  ;;  %1983 = vmatpush.msra.mxu2 %v1954_v5 }
 0x692   : > { %v1026_v34 = vpop.f32.mrf.mxu2  ;;  %v1856_v23 = vsub.f32 1.0, %v1855_v40  ;;  %1984 = vmatpush.msra.mxu2 %v1953_v3  ;;  %v2007_v40 = vld [vmem:[%s5443_s10 + $0x18] sm:$0xff] }
 0x694   : > { %v1857_v43 = vmul.f32 %v4134_v38, %v1856_v23  ;;  %1985 = vmatpush.msra.mxu2 %v1952_v56 }
 0x696   : > { %v1858_v63 = vadd.f32 %v4134_v38, %v1857_v43  ;;  %1986 = vmatpush.msra.mxu2 %v1951_v7 }
 0x697   : > { %3868 = vmatmul.msk.f32.vlgmr.msrb.gmra.mxu2 %vm692_vm2, %v1680_v31 }
 0x698   : > { %v4724_v21 = vsel %vm1859_vm4, %v4134_v38, %v1858_v63  ;;  %v2008_v38 = vld [vmem:[%s5443_s10 + $0x20] sm:$0xff]  ;;  %v2006_v63 = vld [vmem:[%s5443_s10 + $0x10] sm:$0xff] }
 0x69d   : > { %v1747_v18 = vpop.permute.xlu1 %1746 }
 0x69e   : > { %1767 = vmatpush.msrb.mxu1 %v1747_v18 }
 0x69f   : > { %3871 = vmatmul.msk.f32.vlgmr.msrb.gmra.mxu1 %vm692_vm2, %v1745_v33 }
 0x6a5   : > { %v1226_v57 = vpop.permute.xlu1 %1225 }
 0x6a6   : > { %v1236_v59 = vsel %vm692_vm2, %v1026_v34, %v1226_v57  ;;  %v2011_v34 = vld [vmem:[%s5443_s10 + $0x38] sm:$0xff] }
 0x6a7   : > { %2037 = vmatpush.msrb.mxu0 %v2011_v34 }
 0x6b7   : > { %v1156_v36 = vpop.f32.mrf.mxu2 }
 0x6b8   : > { %1229 = vrot.lane.b32.xlu1 %v1156_v36, %s5492_s25  ;;  %v2010_v36 = vld [vmem:[%s5443_s10 + $0x30] sm:$0xff] }
 0x6b9   : > { %2038 = vmatpush.msrb.mxu0 %v2010_v36 }
 0x6bb   : > { %2039 = vmatpush.msrb.mxu0 %v2009_v53 }
 0x6bd   : > { %2040 = vmatpush.msrb.mxu0 %v2008_v38 }
 0x6bf   : > { %v1300_v41 = vpop.f32.mrf.mxu2  ;;  %2041 = vmatpush.msrb.mxu0 %v2007_v40 }
 0x6c1   : > { %2042 = vmatpush.msrb.mxu0 %v2006_v63 }
 0x6d1   : > { %v1430_v44 = vpop.f32.mrf.mxu2 }
 0x6d3   : > { %v1221_v42 = vpop.f32.mrf.mxu1 }
 0x6d4   : > { %1233 = vrot.lane.b32.xlu1 %v1221_v42, %s5493_s26 }
 0x6db   : > { %v1365_v45 = vpop.f32.mrf.mxu1 }
 0x6dc   : > { %1503 = vrot.lane.b32.xlu1 %v1430_v44, %s5492_s25  ;;  %1499 = vrot.lane.b32.xlu0 %v1365_v45, %s5474_s23 }
 0x6e2   : > { %v1844_v37 = vpop.xlane.xlu0 %1843 }
 0x6e3   : > { %v1861_v46 = vmul.f32 %v4724_v21, %v1844_v37  ;;  %v1495_v47 = vpop.f32.mrf.mxu1 }
 0x6e4   : > { %1507 = vrot.lane.b32.xlu1 %v1495_v47, %s5493_s26 }
 0x6e5   : > { %v1865_v49 = vsub.f32 %v1836_v2, %v1861_v46  ;;  %v2005_v46 = vld [vmem:[%s5443_s10 + $0x8] sm:$0xff] }
 0x6e6   : > { %2043 = vmatpush.msrb.mxu0 %v2005_v46 }
 0x6e7   : > { %v1869_v50 = vmul.f32 %v1865_v49, %v1865_v49 }
 0x6e9   : > { %v1873_v25 = vsel %vm647_vm1, %v1869_v50, 0.0 }
 0x6ea   : > { %1874 = vadd.xlane.f32.xlu2 %v1873_v25 }
 0x70a   : > { %v1639_v51 = vpop.f32.mrf.mxu1 }
 0x70b   : > { %1773 = vrot.lane.b32.xlu2 %v1639_v51, %s5474_s23  ;;  %s5496_s23 = smov 104  }
 0x712   : > { %v1574_v35 = vpop.f32.mrf.mxu2 }
 0x71a   : > { %v1704_v54 = vpop.f32.mrf.mxu2 }
 0x71b   : > { %1777 = vrot.lane.b32.xlu1 %v1704_v54, %s5492_s25 }
 0x71c   : > { %v1769_v55 = vpop.f32.mrf.mxu1 }
 0x71d   : > { %1781 = vrot.lane.b32.xlu0 %v1769_v55, %s5493_s26 }
 0x72a   : > { %v1230_v58 = vpop.permute.xlu1 %1229 }
 0x72b   : > { %v1237_v1 = vsel %vm962_vm3, %v1236_v59, %v1230_v58 }
 0x746   : > { %v1234_v60 = vpop.permute.xlu1 %1233 }
 0x747   : > { %v1238_v48 = vsel %vm589_vm0, %v1237_v1, %v1234_v60 }
 0x748   : > { %3873 = vmatmul.msk.f32.gmra.mxu3 %vm647_vm1, %v1238_v48 }
 0x74e   : > { %v1504_v61 = vpop.permute.xlu1 %1503  ;;  %v1500_v62 = vpop.permute.xlu0 %1499 }
 0x74f   : > { %v1510_v0 = vsel %vm692_vm2, %v1300_v41, %v1500_v62 }
 0x750   : > { %v1511_v6 = vsel %vm962_vm3, %v1510_v0, %v1504_v61 }
 0x756   : > { %v1508_v4 = vpop.permute.xlu1 %1507 }
 0x757   : > { %v1512_v8 = vsel %vm589_vm0, %v1511_v6, %v1508_v4 }
 0x758   : > { %3874 = vmatmul.msk.f32.gmra.mxu3 %vm647_vm1, %v1512_v8 }
 0x75d   : > { %v1875_v9 = vpop.xlane.xlu2 %1874 }
 0x75e   : > { %v1885_v10 = vmul.f32 %v1875_v9, %v4724_v21 }
 0x760   : > { %v1889_v39 = vadd.f32 1e-05, %v1885_v10 }
 0x762   : > { %4135 = vrsqrt.f32 %v1889_v39  ;;  %vm1899_vm6 = vweird.f32 %v1889_v39 }
 0x765   : > { %v1774_v12 = vpop.permute.xlu2 %1773 }
 0x766   : > { %v1784_v30 = vsel %vm692_vm2, %v1574_v35, %v1774_v12 }
 0x768   : > { %v4136_v14 = vpop.eup %4135 }
 0x769   : > { %v1894_v15 = vmul.f32 %v4136_v14, %v1889_v39  ;;  %vm1900_vm5 = vweird.f32 %v4136_v14 }
 0x76a   : > { %vm1901_vm7 = vmor %vm1899_vm6, %vm1900_vm5 }
 0x76b   : > { %v1895_v2 = vmul.f32 %v4136_v14, %v1894_v15 }
 0x76d   : > { %v1896_v16 = vmul.f32 0.5, %v1895_v2 }
 0x76f   : > { %v1897_v17 = vsub.f32 1.5, %v1896_v16 }
 0x771   : > { %v1898_v19 = vmul.f32 %v4136_v14, %v1897_v17 }
 0x773   : > { %v1902_v13 = vsel %vm1901_vm7, %v4136_v14, %v1898_v19 }
 0x774   : > { %v1933_v22 = vmul.f32 %v1902_v13, %v1865_v49  ;;  %v4803_v49 = vld [vmem:[%s5442_s9] ss:$0 sm:$0xff] }
 0x776   : > { %v1940_v27 = vmul.f32 %v4756_v20, %v1933_v22 }
 0x778   : > { %v1947_v29 = vadd.f32 %v4761_v26, %v1940_v27 }
 0x77a   : > { %3876 = vmatmul.msk.f32.vlgmr.msra.gmra.mxu2 %vm647_vm1, %v1947_v29 }
 0x78d   : > { %v1778_v31 = vpop.permute.xlu1 %1777 }
 0x78e   : > { %v1785_v32 = vsel %vm962_vm3, %v1784_v30, %v1778_v31 }
 0x78f   : > { %v1782_v33 = vpop.permute.xlu0 %1781 }
 0x790   : > { %v1786_v18 = vsel %vm589_vm0, %v1785_v32, %v1782_v33 }
 0x791   : > { %3875 = vmatmul.msk.f32.gmra.mxu3 %vm647_vm1, %v1786_v18 }
 0x7cb   : > { %v1827_v41 = vpop.f32.mrf.mxu3 }
 0x7cc   : > { %v1828_v42 = vadd.f32 %v4706_v11, %v1827_v41 }
 0x7ce   : > { %v1837_v23 = vadd.f32 %v1828_v42, %v4436_v24  ;;  %v2004_v24 = vld [vmem:[%s5443_s10] sm:$0xff] }
 0x7cf   : > { %2044 = vmatpush.msrb.mxu0 %v2004_v24 }
 0x7d0   : > { %v1845_v43 = vsel %vm647_vm1, %v1837_v23, 0.0 }
 0x7d1   : > { %1846 = vadd.xlane.f32.xlu1 %v1845_v43 }
 0x7db   : > { %v1830_v44 = vpop.f32.mrf.mxu3 }
 0x7dc   : > { %v1831_v45 = vadd.f32 %v4706_v11, %v1830_v44 }
 0x7de   : > { %v1838_v37 = vadd.f32 %v1831_v45, %v4444_v28 }
 0x7e0   : > { %v1848_v47 = vsel %vm647_vm1, %v1838_v37, 0.0 }
 0x7e1   : > { %1849 = vadd.xlane.f32.xlu0 %v1848_v47 }
 0x7fd   : > { %v1988_v50 = vpop.f32.mrf.mxu2 }
 0x7fe   : > { %v1989_v28 = vadd.f32 %v4803_v49, %v1988_v50 }
 0x800   : > { %v2000_v25 = vmax.f32 %v1989_v28, 0.0 }
 0x802   : > { %3880 = vmatmul.msk.f32.vlgmr.msrb.gmra.mxu0 %vm2016_vm8, %v2000_v25 }
 0x814   : > { %v1833_v51 = vpop.f32.mrf.mxu3 }
 0x815   : > { %v1834_v35 = vadd.f32 %v4706_v11, %v1833_v51 }
 0x817   : > { %v1839_v54 = vadd.f32 %v1834_v35, %v4473_v52  ;;  %v4817_v52 = vld [vmem:[%s5444_s11] ss:$0 sm:$0xff] }
 0x819   : > { %v1851_v55 = vsel %vm647_vm1, %v1839_v54, 0.0 }
 0x81a   : > { %1852 = vadd.xlane.f32.xlu2 %v1851_v55 }
 0x844   : > { %v1847_v57 = vpop.xlane.xlu1 %1846 }
 0x845   : > { %v1862_v58 = vmul.f32 %v4724_v21, %v1847_v57 }
 0x847   : > { %v1866_v59 = vsub.f32 %v1837_v23, %v1862_v58 }
 0x849   : > { %v1870_v1 = vmul.f32 %v1866_v59, %v1866_v59 }
 0x84b   : > { %v1876_v60 = vsel %vm647_vm1, %v1870_v1, 0.0 }
 0x84c   : > { %1877 = vadd.xlane.f32.xlu1 %v1876_v60 }
 0x854   : > { %v1850_v48 = vpop.xlane.xlu0 %1849 }
 0x855   : > { %v1863_v61 = vmul.f32 %v4724_v21, %v1850_v48 }
 0x857   : > { %v1867_v62 = vsub.f32 %v1838_v37, %v1863_v61 }
 0x859   : > { %v1871_v5 = vmul.f32 %v1867_v62, %v1867_v62 }
 0x85b   : > { %v1879_v11 = vsel %vm647_vm1, %v1871_v5, 0.0  ;;  %v3886_v5 = vld [vmem:[%s5437_s4 + $0x30] sm:$0xff] }
 0x85c   : > { %1880 = vadd.xlane.f32.xlu0 %v1879_v11 }
 0x87f   : > { %v2046_v0 = vpop.f32.mrf.mxu0 }
 0x880   : > { %v2047_v3 = vadd.f32 %v4817_v52, %v2046_v0 }
 0x882   : > { %v2058_v56 = vadd.f32 %v2047_v3, %v1947_v29 }
 0x884   : > { %v2064_v4 = vsel %vm647_vm1, %v2058_v56, 0.0 }
 0x885   : > { %2065 = vadd.xlane.f32.xlu2 %v2064_v4 }
 0x88d   : > { %v1853_v6 = vpop.xlane.xlu2 %1852 }
 0x88e   : > { %v1864_v7 = vmul.f32 %v4724_v21, %v1853_v6 }
 0x890   : > { %v1868_v8 = vsub.f32 %v1839_v54, %v1864_v7 }
 0x892   : > { %v1872_v9 = vmul.f32 %v1868_v8, %v1868_v8 }
 0x894   : > { %v1882_v10 = vsel %vm647_vm1, %v1872_v9, 0.0 }
 0x895   : > { %1883 = vadd.xlane.f32.xlu1 %v1882_v10 }
 0x8bf   : > { %v1878_v39 = vpop.xlane.xlu1 %1877 }
 0x8c0   : > { %v1886_v14 = vmul.f32 %v1878_v39, %v4724_v21 }
 0x8c2   : > { %v1890_v15 = vadd.f32 1e-05, %v1886_v14 }
 0x8c4   : > { %4137 = vrsqrt.f32 %v1890_v15  ;;  %vm1909_vm10 = vweird.f32 %v1890_v15 }
 0x8ca   : > { %v4138_v2 = vpop.eup %4137 }
 0x8cb   : > { %v1904_v16 = vmul.f32 %v4138_v2, %v1890_v15  ;;  %vm1910_vm9 = vweird.f32 %v4138_v2  ;;  %v4863_v15 = vld [vmem:[%s5447_s14] ss:$0 sm:$0xff] }
 0x8cc   : > { %vm1911_vm11 = vmor %vm1909_vm10, %vm1910_vm9 }
 0x8cd   : > { %v1905_v17 = vmul.f32 %v4138_v2, %v1904_v16 }
 0x8cf   : > { %v1906_v19 = vmul.f32 0.5, %v1905_v17  ;;  %v1881_v13 = vpop.xlane.xlu0 %1880  ;;  %v4868_v17 = vld [vmem:[%s5448_s15] ss:$0 sm:$0xff] }
 0x8d0   : > { %v1887_v22 = vmul.f32 %v1881_v13, %v4724_v21 }
 0x8d1   : > { %v1907_v27 = vsub.f32 1.5, %v1906_v19 }
 0x8d2   : > { %v1891_v29 = vadd.f32 1e-05, %v1887_v22 }
 0x8d3   : > { %v1908_v12 = vmul.f32 %v4138_v2, %v1907_v27 }
 0x8d4   : > { %4139 = vrsqrt.f32 %v1891_v29  ;;  %vm1919_vm13 = vweird.f32 %v1891_v29 }
 0x8d5   : > { %v1912_v30 = vsel %vm1911_vm11, %v4138_v2, %v1908_v12 }
 0x8d6   : > { %v1934_v31 = vmul.f32 %v1912_v30, %v1866_v59 }
 0x8d8   : > { %v1941_v32 = vmul.f32 %v4756_v20, %v1934_v31 }
 0x8da   : > { %v4140_v33 = vpop.eup %4139  ;;  %v4827_v18 = vadd.f32 %v4761_v26, %v1941_v32 }
 0x8db   : > { %v1914_v34 = vmul.f32 %v4140_v33, %v1891_v29  ;;  %vm1920_vm12 = vweird.f32 %v4140_v33 }
 0x8dc   : > { %3877 = vmatmul.msk.f32.gmra.mxu2 %vm647_vm1, %v4827_v18  ;;  %vm1921_vm14 = vmor %vm1919_vm13, %vm1920_vm12 }
 0x8dd   : > { %v1915_v36 = vmul.f32 %v4140_v33, %v1914_v34 }
 0x8df   : > { %v1916_v53 = vmul.f32 0.5, %v1915_v36 }
 0x8e1   : > { %v1917_v38 = vsub.f32 1.5, %v1916_v53 }
 0x8e3   : > { %v1918_v40 = vmul.f32 %v4140_v33, %v1917_v38 }
 0x8e5   : > { %v1922_v41 = vsel %vm1921_vm14, %v4140_v33, %v1918_v40 }
 0x8e6   : > { %v1935_v42 = vmul.f32 %v1922_v41, %v1867_v62  ;;  %v3887_v62 = vld [vmem:[%s5437_s4 + $0x38] sm:$0xff] }
 0x8e7   : > { %2200 = vmatpush.msra.mxu1 %v3887_v62 }
 0x8e8   : > { %v1942_v23 = vmul.f32 %v4756_v20, %v1935_v42 }
 0x8e9   : > { %2201 = vmatpush.msra.mxu1 %v3886_v5 }
 0x8ea   : > { %v4833_v43 = vadd.f32 %v4761_v26, %v1942_v23 }
 0x8ec   : > { %3878 = vmatmul.msk.f32.gmra.mxu2 %vm647_vm1, %v4833_v43 }
 0x8f8   : > { %v2066_v44 = vpop.xlane.xlu2 %2065 }
 0x8f9   : > { %v2076_v45 = vmul.f32 %v2066_v44, %v4724_v21 }
 0x8fb   : > { %v2080_v63 = vsub.f32 %v2058_v56, %v2076_v45 }
 0x8fd   : > { %v2084_v37 = vmul.f32 %v2080_v63, %v2080_v63 }
 0x8ff   : > { %v2088_v46 = vsel %vm647_vm1, %v2084_v37, 0.0 }
 0x900   : > { %2089 = vadd.xlane.f32.xlu0 %v2088_v46 }
 0x908   : > { %v1884_v24 = vpop.xlane.xlu1 %1883 }
 0x909   : > { %v1888_v47 = vmul.f32 %v1884_v24, %v4724_v21 }
 0x90b   : > { %v1892_v50 = vadd.f32 1e-05, %v1888_v47 }
 0x90d   : > { %4141 = vrsqrt.f32 %v1892_v50  ;;  %vm1929_vm4 = vweird.f32 %v1892_v50 }
 0x913   : > { %v4142_v28 = vpop.eup %4141 }
 0x914   : > { %v1924_v25 = vmul.f32 %v4142_v28, %v1892_v50  ;;  %vm1930_vm15 = vweird.f32 %v4142_v28 }
 0x915   : > { %vm1931_vm5 = vmor %vm1929_vm4, %vm1930_vm15 }
 0x916   : > { %v1925_v51 = vmul.f32 %v4142_v28, %v1924_v25 }
 0x918   : > { %v1926_v35 = vmul.f32 0.5, %v1925_v51 }
 0x91a   : > { %v1927_v54 = vsub.f32 1.5, %v1926_v35 }
 0x91c   : > { %v1928_v55 = vmul.f32 %v4142_v28, %v1927_v54 }
 0x91e   : > { %v1932_v57 = vsel %vm1931_vm5, %v4142_v28, %v1928_v55 }
 0x91f   : > { %v1936_v58 = vmul.f32 %v1932_v57, %v1868_v8 }
 0x921   : > { %v1943_v59 = vmul.f32 %v4756_v20, %v1936_v58  ;;  %v3885_v20 = vld [vmem:[%s5437_s4 + $0x28] sm:$0xff] }
 0x922   : > { %2202 = vmatpush.msra.mxu1 %v3885_v20 }
 0x923   : > { %v1950_v1 = vadd.f32 %v4761_v26, %v1943_v59  ;;  %v3884_v26 = vld [vmem:[%s5437_s4 + $0x20] sm:$0xff] }
 0x924   : > { %2203 = vmatpush.msra.mxu1 %v3884_v26 }
 0x925   : > { %3879 = vmatmul.msk.f32.gmra.mxu2 %vm647_vm1, %v1950_v1 }
 0x95f   : > { %v1991_v60 = vpop.f32.mrf.mxu2 }
 0x960   : > { %v1992_v48 = vadd.f32 %v4803_v49, %v1991_v60 }
 0x962   : > { %v2001_v61 = vmax.f32 %v1992_v48, 0.0 }
 0x964   : > { %3881 = vmatmul.msk.f32.gmra.mxu0 %vm2016_vm8, %v2001_v61 }
 0x96f   : > { %v1994_v11 = vpop.f32.mrf.mxu2 }
 0x970   : > { %v1995_v0 = vadd.f32 %v4803_v49, %v1994_v11 }
 0x972   : > { %v2002_v3 = vmax.f32 %v1995_v0, 0.0 }
 0x973   : > { %v2090_v56 = vpop.xlane.xlu0 %2089 }
 0x974   : > { %v2100_v4 = vmul.f32 %v2090_v56, %v4724_v21  ;;  %3882 = vmatmul.msk.f32.gmra.mxu0 %vm2016_vm8, %v2002_v3 }
 0x976   : > { %v2104_v6 = vadd.f32 1e-05, %v2100_v4 }
 0x978   : > { %4143 = vrsqrt.f32 %v2104_v6  ;;  %vm2114_vm7 = vweird.f32 %v2104_v6 }
 0x97e   : > { %v4144_v7 = vpop.eup %4143 }
 0x97f   : > { %v2109_v8 = vmul.f32 %v4144_v7, %v2104_v6  ;;  %vm2115_vm6 = vweird.f32 %v4144_v7 }
 0x980   : > { %vm2116_vm9 = vmor %vm2114_vm7, %vm2115_vm6 }
 0x981   : > { %v2110_v9 = vmul.f32 %v4144_v7, %v2109_v8 }
 0x983   : > { %v2111_v10 = vmul.f32 0.5, %v2110_v9 }
 0x985   : > { %v2112_v39 = vsub.f32 1.5, %v2111_v10 }
 0x987   : > { %v2113_v14 = vmul.f32 %v4144_v7, %v2112_v39 }
 0x989   : > { %v2117_v2 = vsel %vm2116_vm9, %v4144_v7, %v2113_v14 }
 0x98a   : > { %v2148_v16 = vmul.f32 %v2117_v2, %v2080_v63 }
 0x98c   : > { %v2155_v19 = vmul.f32 %v4863_v15, %v2148_v16 }
 0x98e   : > { %v4872_v13 = vadd.f32 %v4868_v17, %v2155_v19 }
 0x990   : > { %3889 = vmatmul.msk.f32.vlgmr.msra.gmra.mxu1 %vm647_vm1, %v4872_v13 }
 0x9a8   : > { %v1997_v22 = vpop.f32.mrf.mxu2 }
 0x9a9   : > { %v1998_v27 = vadd.f32 %v4803_v49, %v1997_v22  ;;  %v4887_v49 = vld [vmem:[%s5438_s5 + $0x1] ss:$0 sm:$0xff] }
 0x9ab   : > { %v2003_v29 = vmax.f32 %v1998_v27, 0.0 }
 0x9ad   : > { %3883 = vmatmul.msk.f32.gmra.mxu0 %vm2016_vm8, %v2003_v29 }
 0x9e1   : > { %v2049_v12 = vpop.f32.mrf.mxu0 }
 0x9e2   : > { %v2050_v30 = vadd.f32 %v4817_v52, %v2049_v12 }
 0x9e4   : > { %v2059_v31 = vadd.f32 %v2050_v30, %v4827_v18 }
 0x9e6   : > { %v2067_v32 = vsel %vm647_vm1, %v2059_v31, 0.0 }
 0x9e7   : > { %2068 = vadd.xlane.f32.xlu2 %v2067_v32 }
 0x9f1   : > { %v2052_v33 = vpop.f32.mrf.mxu0 }
 0x9f2   : > { %v2053_v34 = vadd.f32 %v4817_v52, %v2052_v33 }
 0x9f4   : > { %v2060_v36 = vadd.f32 %v2053_v34, %v4833_v43 }
 0x9f6   : > { %v2070_v53 = vsel %vm647_vm1, %v2060_v36, 0.0 }
 0x9f7   : > { %2071 = vadd.xlane.f32.xlu0 %v2070_v53 }
 0xa0d   : > { %v2205_v38 = vpop.f32.mrf.mxu1 }
 0xa0e   : > { %v4890_v40 = vadd.f32 %v4887_v49, %v2205_v38 }
 0xa10   : > { %2218 = vrot.lane.b32.xlu1 %v4890_v40, %s5494_s20 }
 0xa2a   : > { %v2055_v18 = vpop.f32.mrf.mxu0 }
 0xa2b   : > { %v2056_v41 = vadd.f32 %v4817_v52, %v2055_v18 }
 0xa2d   : > { %v2061_v42 = vadd.f32 %v2056_v41, %v1950_v1 }
 0xa2f   : > { %v2073_v23 = vsel %vm647_vm1, %v2061_v42, 0.0 }
 0xa30   : > { %2074 = vadd.xlane.f32.xlu2 %v2073_v23 }
 0xa5a   : > { %v2069_v43 = vpop.xlane.xlu2 %2068 }
 0xa5b   : > { %v2077_v44 = vmul.f32 %v2069_v43, %v4724_v21 }
 0xa5d   : > { %v2081_v45 = vsub.f32 %v2059_v31, %v2077_v44 }
 0xa5f   : > { %v2085_v63 = vmul.f32 %v2081_v45, %v2081_v45 }
 0xa61   : > { %v2091_v37 = vsel %vm647_vm1, %v2085_v63, 0.0 }
 0xa62   : > { %2092 = vadd.xlane.f32.xlu0 %v2091_v37 }
 0xa6a   : > { %v2072_v46 = vpop.xlane.xlu0 %2071 }
 0xa6b   : > { %v2078_v24 = vmul.f32 %v2072_v46, %v4724_v21 }
 0xa6d   : > { %v2082_v47 = vsub.f32 %v2060_v36, %v2078_v24 }
 0xa6f   : > { %v2086_v50 = vmul.f32 %v2082_v47, %v2082_v47 }
 0xa71   : > { %v2094_v28 = vsel %vm647_vm1, %v2086_v50, 0.0 }
 0xa72   : > { %2095 = vadd.xlane.f32.xlu2 %v2094_v28 }
 0xa82   : > { %v2219_v52 = vpop.permute.xlu1 %2218 }
 0xa83   : > { %3893 = vmatpush.xpose.msk.msra.mxu3 %vm692_vm2, %v2219_v52 }
 0xa86   : > { %3894 = vmatmul.msk.f32.vlgmr.msra.gmra.mxu3 %vm692_vm2, %v4890_v40 }
 0xa8a   : > { %2255 = vrot.lane.b32.xlu2 %v4890_v40, %s5491_s2 }
 0xa92   : > { %2413 = vrot.lane.b32.xlu2 %v4890_v40, %s5495_s24 }
 0xa9a   : > { %2411 = vrot.lane.b32.xlu2 %v4890_v40, %s5496_s23 }
 0xaa3   : > { %v2075_v25 = vpop.xlane.xlu2 %2074 }
 0xaa4   : > { %v2079_v51 = vmul.f32 %v2075_v25, %v4724_v21 }
 0xaa6   : > { %v4910_v35 = vsub.f32 %v2061_v42, %v2079_v51 }
 0xaa8   : > { %v2087_v54 = vmul.f32 %v4910_v35, %v4910_v35 }
 0xaaa   : > { %v2097_v55 = vsel %vm647_vm1, %v2087_v54, 0.0 }
 0xaab   : > { %2098 = vadd.xlane.f32.xlu0 %v2097_v55 }
 0xabf   : > { %2283 = vrot.lane.b32.xlu0 %v4890_v40, %s5497_s19 }
 0xac7   : > { %2281 = vrot.lane.b32.xlu0 %v4890_v40, %s5498_s1 }
 0xacf   : > { %2348 = vrot.lane.b32.xlu0 %v4890_v40, %s5499_s30 }
 0xad5   : > { %v2093_v57 = vpop.xlane.xlu0 %2092 }
 0xad6   : > { %v2101_v58 = vmul.f32 %v2093_v57, %v4724_v21 }
 0xad7   : > { %2346 = vrot.lane.b32.xlu0 %v4890_v40, %s5500_s21 }
 0xad8   : > { %v2105_v59 = vadd.f32 1e-05, %v2101_v58 }
 0xada   : > { %4145 = vrsqrt.f32 %v2105_v59  ;;  %vm2124_vm11 = vweird.f32 %v2105_v59 }
 0xae0   : > { %v4146_v1 = vpop.eup %4145 }
 0xae1   : > { %v2119_v60 = vmul.f32 %v4146_v1, %v2105_v59  ;;  %vm2125_vm10 = vweird.f32 %v4146_v1 }
 0xae2   : > { %vm2126_vm12 = vmor %vm2124_vm11, %vm2125_vm10 }
 0xae3   : > { %v2120_v48 = vmul.f32 %v4146_v1, %v2119_v60 }
 0xae5   : > { %v2121_v61 = vmul.f32 0.5, %v2120_v48  ;;  %v2096_v62 = vpop.xlane.xlu2 %2095 }
 0xae6   : > { %v2102_v5 = vmul.f32 %v2096_v62, %v4724_v21 }
 0xae7   : > { %v2122_v20 = vsub.f32 1.5, %v2121_v61 }
 0xae8   : > { %v2106_v26 = vadd.f32 1e-05, %v2102_v5 }
 0xae9   : > { %v2123_v11 = vmul.f32 %v4146_v1, %v2122_v20 }
 0xaea   : > { %4147 = vrsqrt.f32 %v2106_v26  ;;  %vm2134_vm14 = vweird.f32 %v2106_v26 }
 0xaeb   : > { %v2127_v0 = vsel %vm2126_vm12, %v4146_v1, %v2123_v11 }
 0xaec   : > { %v2149_v3 = vmul.f32 %v2127_v0, %v2081_v45 }
 0xaed   : > { %v2256_v56 = vpop.permute.xlu2 %2255 }
 0xaee   : > { %2276 = vmatpush.msrb.mxu2 %v2256_v56  ;;  %v2156_v4 = vmul.f32 %v4863_v15, %v2149_v3 }
 0xaf0   : > { %v4148_v6 = vpop.eup %4147  ;;  %v4927_v7 = vadd.f32 %v4868_v17, %v2156_v4 }
 0xaf1   : > { %v2129_v8 = vmul.f32 %v4148_v6, %v2106_v26  ;;  %vm2135_vm13 = vweird.f32 %v4148_v6 }
 0xaf2   : > { %3890 = vmatmul.msk.f32.gmra.mxu1 %vm647_vm1, %v4927_v7  ;;  %vm2136_vm15 = vmor %vm2134_vm14, %vm2135_vm13 }
 0xaf3   : > { %v2130_v9 = vmul.f32 %v4148_v6, %v2129_v8 }
 0xaf5   : > { %v2131_v10 = vmul.f32 0.5, %v2130_v9  ;;  %v2414_v18 = vpop.permute.xlu2 %2413 }
 0xaf7   : > { %v2132_v39 = vsub.f32 1.5, %v2131_v10 }
 0xaf9   : > { %v2133_v14 = vmul.f32 %v4148_v6, %v2132_v39 }
 0xafb   : > { %v2137_v2 = vsel %vm2136_vm15, %v4148_v6, %v2133_v14 }
 0xafc   : > { %v2150_v16 = vmul.f32 %v2137_v2, %v2082_v47 }
 0xafd   : > { %v2412_v37 = vpop.permute.xlu2 %2411 }
 0xafe   : > { %v2157_v19 = vmul.f32 %v4863_v15, %v2150_v16 }
 0xb00   : > { %v4933_v22 = vadd.f32 %v4868_v17, %v2157_v19 }
 0xb02   : > { %3891 = vmatmul.msk.f32.gmra.mxu1 %vm647_vm1, %v4933_v22 }
 0xb09   : > { %v2241_v27 = vpop.f32.mrf.mxu3 }
 0xb0a   : > { %v2244_v29 = vsel %vm692_vm2, %v2241_v27, -inf }
 0xb0b   : > { %2245 = vmax.xlane.f32.xlu1 %v2244_v29 }
 0xb1e   : > { %v2099_v12 = vpop.xlane.xlu0 %2098 }
 0xb1f   : > { %v2103_v30 = vmul.f32 %v2099_v12, %v4724_v21 }
 0xb21   : > { %v2107_v31 = vadd.f32 1e-05, %v2103_v30 }
 0xb23   : > { %4149 = vrsqrt.f32 %v2107_v31  ;;  %vm2144_vm5 = vweird.f32 %v2107_v31 }
 0xb29   : > { %v4150_v32 = vpop.eup %4149 }
 0xb2a   : > { %v2139_v33 = vmul.f32 %v4150_v32, %v2107_v31  ;;  %vm2145_vm4 = vweird.f32 %v4150_v32 }
 0xb2b   : > { %vm2146_vm6 = vmor %vm2144_vm5, %vm2145_vm4 }
 0xb2c   : > { %v2140_v34 = vmul.f32 %v4150_v32, %v2139_v33 }
 0xb2e   : > { %v2141_v36 = vmul.f32 0.5, %v2140_v34 }
 0xb30   : > { %v2142_v53 = vsub.f32 1.5, %v2141_v36 }
 0xb31   : > { %v2284_v38 = vpop.permute.xlu0 %2283 }
 0xb32   : > { %v2143_v41 = vmul.f32 %v4150_v32, %v2142_v53  ;;  %3896 = vmatpush.xpose.msk.msrb.mxu1 %vm692_vm2, %v2284_v38 }
 0xb34   : > { %v2147_v42 = vsel %vm2146_vm6, %v4150_v32, %v2143_v41 }
 0xb35   : > { %v2151_v23 = vmul.f32 %v2147_v42, %v4910_v35 }
 0xb36   : > { %3902 = vmatpush.xpose.msk.msra.mxu1 %vm692_vm2, %v2414_v18 }
 0xb37   : > { %v2158_v43 = vmul.f32 %v4863_v15, %v2151_v23 }
 0xb39   : > { %v2282_v44 = vpop.permute.xlu0 %2281  ;;  %v4944_v45 = vadd.f32 %v4868_v17, %v2158_v43 }
 0xb3b   : > { %3892 = vmatmul.msk.f32.gmra.mxu1 %vm647_vm1, %v4944_v45 }
 0xb41   : > { %v2349_v63 = vpop.permute.xlu0 %2348 }
 0xb42   : > { %3899 = vmatpush.xpose.msk.msra.mxu2 %vm692_vm2, %v2349_v63 }
 0xb43   : > { %3897 = vmatmul.msk.f32.vlgmr.msrb.gmra.mxu1 %vm692_vm2, %v2282_v44 }
 0xb49   : > { %v2347_v51 = vpop.permute.xlu0 %2346 }
 0xb4b   : > { %3903 = vmatmul.msk.f32.vlgmr.msra.gmra.mxu1 %vm692_vm2, %v2412_v37 }
 0xb6f   : > { %v2208_v46 = vpop.f32.mrf.mxu1 }
 0xb70   : > { %v4952_v24 = vadd.f32 %v4887_v49, %v2208_v46 }
 0xb72   : > { %2555 = vrot.lane.b32.xlu2 %v4952_v24, %s5498_s1  ;;  %2557 = vrot.lane.b32.xlu0 %v4952_v24, %s5497_s19  ;;  %v4024_v36 = vpack.i.bf16 %v4952_v24, %v4890_v40 }
 0xb73   : > { %2492 = vrot.lane.b32.xlu1 %v4952_v24, %s5494_s20 }
 0xb7a   : > { %2687 = vrot.lane.b32.xlu2 %v4952_v24, %s5495_s24  ;;  %2622 = vrot.lane.b32.xlu0 %v4952_v24, %s5499_s30 }
 0xb7f   : > { %v2211_v15 = vpop.f32.mrf.mxu1 }
 0xb80   : > { %v4965_v17 = vadd.f32 %v4887_v49, %v2211_v15 }
 0xb82   : > { %2685 = vrot.lane.b32.xlu2 %v4952_v24, %s5496_s23  ;;  %2620 = vrot.lane.b32.xlu0 %v4952_v24, %s5500_s21 }
 0xb83   : > { %2766 = vrot.lane.b32.xlu1 %v4965_v17, %s5494_s20 }
 0xb8a   : > { %2829 = vrot.lane.b32.xlu2 %v4965_v17, %s5498_s1  ;;  %2831 = vrot.lane.b32.xlu0 %v4965_v17, %s5497_s19 }
 0xb8b   : > { %2896 = vrot.lane.b32.xlu1 %v4965_v17, %s5499_s30 }
 0xb92   : > { %2894 = vrot.lane.b32.xlu2 %v4965_v17, %s5500_s21  ;;  %2961 = vrot.lane.b32.xlu0 %v4965_v17, %s5495_s24 }
 0xb93   : > { %2959 = vrot.lane.b32.xlu1 %v4965_v17, %s5496_s23 }
 0xbb8   : > { %v2214_v47 = vpop.f32.mrf.mxu1 }
 0xbb9   : > { %v4986_v50 = vadd.f32 %v4887_v49, %v2214_v47  ;;  %v2246_v49 = vpop.xlane.xlu1 %2245 }
 0xbba   : > { %v2247_v28 = vsub.f32 %v2241_v27, %v2246_v49 }
 0xbbb   : > { %3103 = vrot.lane.b32.xlu1 %v4986_v50, %s5498_s1  ;;  %3105 = vrot.lane.b32.xlu2 %v4986_v50, %s5497_s19 }
 0xbbc   : > { %3040 = vrot.lane.b32.xlu0 %v4986_v50, %s5494_s20  ;;  %v2248_v52 = vmul.f32 1.442695, %v2247_v28  ;;  %s5504_s20 = smov 8  }
 0xbbe   : > { %4151 = vpow2.f32 %v2248_v52 }
 0xbc0   : > { %v5000_v35 = vpop.f32.mrf.mxu1 }
 0xbc1   : > { %v2309_v6 = vsel %vm692_vm2, %v5000_v35, -inf }
 0xbc3   : > { %3168 = vrot.lane.b32.xlu1 %v4986_v50, %s5500_s21 }
 0xbc4   : > { %3170 = vrot.lane.b32.xlu0 %v4986_v50, %s5499_s30  ;;  %v4152_v54 = vpop.eup %4151 }
 0xbc5   : > { %v2250_v55 = vsel %vm692_vm2, %v4152_v54, 0.0 }
 0xbc8   : > { %v5006_v59 = vpop.f32.mrf.mxu1 }
 0xbc9   : > { %v2439_v60 = vsel %vm692_vm2, %v5006_v59, -inf }
 0xbcc   : > { %3233 = vrot.lane.b32.xlu0 %v4986_v50, %s5496_s23  ;;  %v2556_v25 = vpop.permute.xlu2 %2555  ;;  %s3984_s23 = sshll.u32 %s5510_s28, 4 }
 0xbcd   : > { %s577_s30 = scalar_lea.vmem %s5451_s18, %s3984_s23 }
 0xbd4   : > { %v2688_v58 = vpop.permute.xlu2 %2687 }
 0xbdc   : > { %v2686_v61 = vpop.permute.xlu2 %2685 }
 0xbe4   : > { %2251 = vadd.xlane.f32.xlu2 %v2250_v55  ;;  %v2558_v57 = vpop.permute.xlu0 %2557  ;;  %v2830_v11 = vpop.permute.xlu2 %2829 }
 0xbe5   : > { %3908 = vmatpush.xpose.msk.msrb.mxu1 %vm692_vm2, %v2558_v57  ;;  %v2493_v48 = vpop.permute.xlu1 %2492 }
 0xbe8   : > { %3909 = vmatmul.msk.f32.vlgmr.msrb.gmra.mxu1 %vm692_vm2, %v2556_v25 }
 0xbe9   : > { %3914 = vmatpush.xpose.msk.msra.mxu1 %vm692_vm2, %v2688_v58 }
 0xbec   : > { %v2623_v1 = vpop.permute.xlu0 %2622  ;;  %v2895_v56 = vpop.permute.xlu2 %2894 }
 0xbed   : > { %2440 = vmax.xlane.f32.xlu1 %v2439_v60 }
 0xbf0   : > { %3915 = vmatmul.msk.f32.vlgmr.msra.gmra.mxu1 %vm692_vm2, %v2686_v61 }
 0xbf4   : > { %v2621_v62 = vpop.permute.xlu0 %2620 }
 0xbf5   : > { %v2767_v5 = vpop.permute.xlu1 %2766 }
 0xbfc   : > { %3235 = vrot.lane.b32.xlu2 %v4986_v50, %s5495_s24  ;;  %v2832_v20 = vpop.permute.xlu0 %2831 }
 0xbfd   : > { %v2897_v26 = vpop.permute.xlu1 %2896  ;;  %3920 = vmatpush.xpose.msk.msrb.mxu1 %vm692_vm2, %v2832_v20 }
 0xc00   : > { %3921 = vmatmul.msk.f32.vlgmr.msrb.gmra.mxu1 %vm692_vm2, %v2830_v11 }
 0xc04   : > { %v2962_v0 = vpop.permute.xlu0 %2961 }
 0xc05   : > { %3926 = vmatpush.xpose.msk.msra.mxu1 %vm692_vm2, %v2962_v0  ;;  %v2960_v3 = vpop.permute.xlu1 %2959 }
 0xc08   : > { %3927 = vmatmul.msk.f32.vlgmr.msra.gmra.mxu1 %vm692_vm2, %v2960_v3 }
 0xc15   : > { %v3106_v4 = vpop.permute.xlu2 %3105 }
 0xc16   : > { %3932 = vmatpush.xpose.msk.msrb.mxu1 %vm692_vm2, %v3106_v4 }
 0xc25   : > { %2310 = vmax.xlane.f32.xlu2 %v2309_v6 }
 0xc2d   : > { %v3104_v8 = vpop.permute.xlu1 %3103 }
 0xc2e   : > { %3933 = vmatmul.msk.f32.vlgmr.msrb.gmra.mxu1 %vm692_vm2, %v3104_v8  ;;  %v3041_v9 = vpop.permute.xlu0 %3040 }
 0xc35   : > { %v3169_v53 = vpop.permute.xlu1 %3168 }
 0xc36   : > { %v3171_v39 = vpop.permute.xlu0 %3170 }
 0xc3e   : > { %v3234_v19 = vpop.permute.xlu0 %3233 }
 0xc57   : > { %v2252_v10 = vpop.xlane.xlu2 %2251 }
 0xc58   : > { %4153 = vrcp.f32 %v2252_v10 }
 0xc5e   : > { %v4154_v14 = vpop.eup %4153 }
 0xc5f   : > { %v2254_v2 = vmul.f32 %v4154_v14, %v4152_v54  ;;  %v3236_v16 = vpop.permute.xlu2 %3235  ;;  %v4039_v54 = vpack.i.bf16 %v4965_v17, %v4952_v24  ;;  %v4044_v14 = vpack.i.bf16 %v4986_v50, %v4965_v17 }
 0xc60   : > { %3938 = vmatpush.xpose.msk.msra.mxu1 %vm692_vm2, %v3236_v16  ;;  %v2441_v44 = vpop.xlane.xlu1 %2440 }
 0xc61   : > { %3895 = vmatmul.msk.f32.vlgmr.msrb.gmra.mxu2 %vm692_vm2, %v2254_v2  ;;  %v2442_v63 = vsub.f32 %v5006_v59, %v2441_v44 }
 0xc62   : > { %3905 = vmatpush.xpose.msk.msrb.mxu2 %vm692_vm2, %v2493_v48 }
 0xc63   : > { %3939 = vmatmul.msk.f32.vlgmr.msra.gmra.mxu1 %vm692_vm2, %v3234_v19  ;;  %v2443_v37 = vmul.f32 1.442695, %v2442_v63 }
 0xc65   : > { %v5025_v27 = vpop.f32.mrf.mxu1 }
 0xc66   : > { %v2583_v29 = vsel %vm692_vm2, %v5025_v27, -inf }
 0xc67   : > { %2584 = vmax.xlane.f32.xlu2 %v2583_v29 }
 0xc69   : > { %3900 = vmatmul.msk.f32.vlgmr.msra.gmra.mxu2 %vm692_vm2, %v2347_v51 }
 0xc6a   : > { %3911 = vmatpush.xpose.msk.msra.mxu2 %vm692_vm2, %v2623_v1 }
 0xc6d   : > { %v5031_v12 = vpop.f32.mrf.mxu1 }
 0xc6e   : > { %v2713_v30 = vsel %vm692_vm2, %v5031_v12, -inf }
 0xc6f   : > { %2714 = vmax.xlane.f32.xlu0 %v2713_v30 }
 0xc71   : > { %3906 = vmatmul.msk.f32.vlgmr.msrb.gmra.mxu2 %vm692_vm2, %v4952_v24 }
 0xc72   : > { %3917 = vmatpush.xpose.msk.msrb.mxu2 %vm692_vm2, %v2767_v5 }
 0xc79   : > { %3912 = vmatmul.msk.f32.vlgmr.msra.gmra.mxu2 %vm692_vm2, %v2621_v62 }
 0xc7a   : > { %3923 = vmatpush.xpose.msk.msra.mxu2 %vm692_vm2, %v2897_v26 }
 0xc7d   : > { %v2854_v31 = vpop.f32.mrf.mxu1 }
 0xc7e   : > { %v2857_v32 = vsel %vm692_vm2, %v2854_v31, -inf }
 0xc7f   : > { %2858 = vmax.xlane.f32.xlu1 %v2857_v32 }
 0xc81   : > { %3918 = vmatmul.msk.f32.vlgmr.msrb.gmra.mxu2 %vm692_vm2, %v4965_v17 }
 0xc82   : > { %3929 = vmatpush.xpose.msk.msrb.mxu2 %vm692_vm2, %v3041_v9 }
 0xc85   : > { %v2984_v33 = vpop.f32.mrf.mxu1 }
 0xc86   : > { %v2987_v34 = vsel %vm692_vm2, %v2984_v33, -inf }
 0xc87   : > { %2988 = vmax.xlane.f32.xlu2 %v2987_v34 }
 0xc89   : > { %3924 = vmatmul.msk.f32.vlgmr.msra.gmra.mxu2 %vm692_vm2, %v2895_v56 }
 0xc8a   : > { %3935 = vmatpush.xpose.msk.msra.mxu2 %vm692_vm2, %v3171_v39 }
 0xc91   : > { %3930 = vmatmul.msk.f32.vlgmr.msrb.gmra.mxu2 %vm692_vm2, %v4986_v50 }
 0xc98   : > { %v2311_v38 = vpop.xlane.xlu2 %2310  ;;  %4025 = vrot.lane.b32.xlu1 %v4024_v36, %s5501_s22 }
 0xc99   : > { %v2312_v18 = vsub.f32 %v5000_v35, %v2311_v38  ;;  %3936 = vmatmul.msk.f32.vlgmr.msra.gmra.mxu2 %vm692_vm2, %v3169_v53 }
 0xc9b   : > { %v2313_v41 = vmul.f32 1.442695, %v2312_v18 }
 0xc9d   : > { %4155 = vpow2.f32 %v2313_v41 }
 0xc9e   : > { %4157 = vpow2.f32 %v2443_v37 }
 0xca0   : > { %4035 = vrot.lane.b32.xlu1 %v4024_v36, %s5502_s3 }
 0xca3   : > { %v4156_v42 = vpop.eup %4155 }
 0xca4   : > { %v2315_v23 = vsel %vm692_vm2, %v4156_v42, 0.0  ;;  %v5066_v47 = vpop.eup %4157 }
 0xca5   : > { %2316 = vadd.xlane.f32.xlu2 %v2315_v23  ;;  %v2445_v28 = vsel %vm692_vm2, %v5066_v47, 0.0 }
 0xcab   : > { %v5056_v43 = vpop.f32.mrf.mxu1 }
 0xcac   : > { %v3131_v40 = vsel %vm692_vm2, %v5056_v43, -inf }
 0xcad   : > { %3132 = vmax.xlane.f32.xlu0 %v3131_v40 }
 0xcbd   : > { %4030 = vrot.lane.b32.xlu2 %v4024_v36, %s5503_s0 }
 0xcda   : > { %v2585_v25 = vpop.xlane.xlu2 %2584 }
 0xcdb   : > { %v2586_v11 = vsub.f32 %v5025_v27, %v2585_v25 }
 0xcdd   : > { %v2587_v3 = vmul.f32 1.442695, %v2586_v11 }
 0xce0   : > { %v5062_v46 = vpop.f32.mrf.mxu1 }
 0xce1   : > { %v3261_v15 = vsel %vm692_vm2, %v5062_v46, -inf }
 0xce2   : > { %3262 = vmax.xlane.f32.xlu0 %v3261_v15  ;;  %v2715_v4 = vpop.xlane.xlu0 %2714 }
 0xce3   : > { %v2716_v8 = vsub.f32 %v5031_v12, %v2715_v4 }
 0xce4   : > { %v5068_v49 = vpop.f32.mrf.mxu2 }
 0xce5   : > { %v2717_v10 = vmul.f32 1.442695, %v2716_v8 }
 0xce6   : > { %2446 = vadd.xlane.f32.xlu2 %v2445_v28 }
 0xcec   : > { %v5072_v52 = vpop.f32.mrf.mxu2 }
 0xced   : > { %v2374_v41 = vsel %vm692_vm2, %v5072_v52, -inf }
 0xcf2   : > { %v2859_v51 = vpop.xlane.xlu1 %2858 }
 0xcf3   : > { %v2860_v35 = vsub.f32 %v2854_v31, %v2859_v51 }
 0xcf4   : > { %v5077_v57 = vpop.f32.mrf.mxu2 }
 0xcf5   : > { %v2861_v55 = vmul.f32 1.442695, %v2860_v35  ;;  %v2518_v0 = vsel %vm692_vm2, %v5077_v57, -inf }
 0xcf6   : > { %4040 = vrot.lane.b32.xlu0 %v4039_v54, %s5491_s2 }
 0xcf7   : > { %4159 = vpow2.f32 %v2861_v55 }
 0xcfa   : > { %v2989_v58 = vpop.xlane.xlu2 %2988 }
 0xcfb   : > { %v2990_v59 = vsub.f32 %v2984_v33, %v2989_v58 }
 0xcfc   : > { %v5083_v61 = vpop.f32.mrf.mxu2 }
 0xcfd   : > { %v5079_v1 = vpop.eup %4159  ;;  %v2991_v60 = vmul.f32 1.442695, %v2990_v59  ;;  %v2648_v24 = vsel %vm692_vm2, %v5083_v61, -inf }
 0xcfe   : > { %v2863_v48 = vsel %vm692_vm2, %v5079_v1, 0.0 }
 0xcff   : > { %4161 = vpow2.f32 %v2991_v60  ;;  %2864 = vadd.xlane.f32.xlu2 %v2863_v48 }
 0xd00   : > { %4163 = vpow2.f32 %v2587_v3 }
 0xd04   : > { %v5109_v34 = vpop.f32.mrf.mxu2 }
 0xd05   : > { %v5085_v62 = vpop.eup %4161  ;;  %v2792_v23 = vsel %vm692_vm2, %v5109_v34, -inf }
 0xd06   : > { %v2993_v5 = vsel %vm692_vm2, %v5085_v62, 0.0  ;;  %v5098_v39 = vpop.eup %4163 }
 0xd07   : > { %2649 = vmax.xlane.f32.xlu2 %v2648_v24  ;;  %2994 = vadd.xlane.f32.xlu1 %v2993_v5  ;;  %v2589_v16 = vsel %vm692_vm2, %v5098_v39, 0.0 }
 0xd0a   : > { %v4026_v20 = vpop.permute.xlu1 %4025 }
 0xd0b   : > { %v4027_v26 = vunpack.i.l.bf16 %v4026_v20  ;;  %v4028_v31 = vunpack.i.h.bf16 %v4026_v20 }
 0xd0c   : > { %v5117_v18 = vpop.f32.mrf.mxu2 }
 0xd0d   : > { %2341 = vmatpush.msrb.mxu3 %v4027_v26 }
 0xd0f   : > { %2519 = vmax.xlane.f32.xlu1 %v2518_v0 }
 0xd12   : > { %v5094_v56 = vpop.permute.xlu1 %4035 }
 0xd13   : > { %v4037_v6 = vunpack.i.l.bf16 %v5094_v56 }
 0xd15   : > { %2406 = vmatpush.msra.mxu0 %v4037_v6 }
 0xd18   : > { %v2317_v9 = vpop.xlane.xlu2 %2316 }
 0xd19   : > { %4165 = vrcp.f32 %v2317_v9 }
 0xd1a   : > { %4167 = vpow2.f32 %v2717_v10 }
 0xd1f   : > { %v4166_v2 = vpop.eup %4165  ;;  %4045 = vrot.lane.b32.xlu2 %v4044_v14, %s5501_s22 }
 0xd20   : > { %v2319_v19 = vmul.f32 %v4166_v2, %v4156_v42  ;;  %v4031_v27 = vpop.permute.xlu2 %4030  ;;  %2590 = vadd.xlane.f32.xlu0 %v2589_v16  ;;  %v3133_v29 = vpop.xlane.xlu0 %3132  ;;  %v2922_v42 = vsel %vm692_vm2, %v5117_v18, -inf }
 0xd21   : > { %v4032_v12 = vunpack.i.l.bf16 %v4031_v27  ;;  %v3134_v30 = vsub.f32 %v5056_v43, %v3133_v29  ;;  %v5107_v33 = vpop.eup %4167  ;;  %v5125_v43 = vpop.f32.mrf.mxu2  ;;  %v4033_v54 = vunpack.i.h.bf16 %v4031_v27 }
 0xd22   : > { %3898 = vmatmul.msk.f32.vlgmr.msrb.gmra.mxu3 %vm692_vm2, %v2319_v19  ;;  %v2719_v36 = vsel %vm692_vm2, %v5107_v33, 0.0  ;;  %v3066_v40 = vsel %vm692_vm2, %v5125_v43, -inf }
 0xd23   : > { %v3135_v32 = vmul.f32 1.442695, %v3134_v30  ;;  %2471 = vmatpush.msra.mxu3 %v4032_v12 }
 0xd25   : > { %2615 = vmatpush.msrb.mxu3 %v4028_v31  ;;  %4169 = vpow2.f32 %v3135_v32 }
 0xd28   : > { %2720 = vadd.xlane.f32.xlu0 %v2719_v36 }
 0xd29   : > { %v5141_v58 = vpop.f32.mrf.mxu2 }
 0xd2a   : > { %v3196_v60 = vsel %vm692_vm2, %v5141_v58, -inf }
 0xd2b   : > { %v5113_v53 = vpop.eup %4169 }
 0xd2c   : > { %v3137_v38 = vsel %vm692_vm2, %v5113_v53, 0.0 }
 0xd2d   : > { %3138 = vadd.xlane.f32.xlu1 %v3137_v38 }
 0xd30   : > { %2375 = vmax.xlane.f32.xlu0 %v2374_v41 }
 0xd35   : > { %2923 = vmax.xlane.f32.xlu1 %v2922_v42 }
 0xd38   : > { %2793 = vmax.xlane.f32.xlu0 %v2792_v23 }
 0xd3d   : > { %3067 = vmax.xlane.f32.xlu1 %v3066_v40 }
 0xd4c   : > { %2998 = vrot.lane.b32.xlu0 %v4965_v17, %s5503_s0 }
 0xd55   : > { %v3263_v44 = vpop.xlane.xlu0 %3262 }
 0xd56   : > { %v3264_v63 = vsub.f32 %v5062_v46, %v3263_v44 }
 0xd58   : > { %v3265_v37 = vmul.f32 1.442695, %v3264_v63 }
 0xd59   : > { %v2447_v15 = vpop.xlane.xlu2 %2446 }
 0xd5a   : > { %4171 = vpow2.f32 %v3265_v37 }
 0xd5b   : > { %4173 = vrcp.f32 %v2447_v15 }
 0xd60   : > { %v5132_v28 = vpop.eup %4171 }
 0xd61   : > { %v4174_v25 = vpop.eup %4173  ;;  %v3267_v51 = vsel %vm692_vm2, %v5132_v28, 0.0 }
 0xd62   : > { %v2449_v35 = vmul.f32 %v4174_v25, %v5066_v47  ;;  %3268 = vadd.xlane.f32.xlu1 %v3267_v51 }
 0xd64   : > { %3904 = vmatmul.msk.f32.vlgmr.msra.gmra.mxu3 %vm692_vm2, %v2449_v35 }
 0xd65   : > { %2745 = vmatpush.msra.mxu3 %v4033_v54 }
 0xd68   : > { %v5138_v55 = vpop.permute.xlu0 %4040 }
 0xd69   : > { %v4042_v46 = vunpack.i.l.bf16 %v5138_v55 }
 0xd6b   : > { %2550 = vmatpush.msrb.mxu0 %v4042_v46 }
 0xd72   : > { %v2865_v59 = vpop.xlane.xlu2 %2864 }
 0xd76   : > { %3197 = vmax.xlane.f32.xlu0 %v3196_v60 }
 0xd7a   : > { %v2995_v48 = vpop.xlane.xlu1 %2994  ;;  %v2650_v24 = vpop.xlane.xlu2 %2649 }
 0xd7b   : > { %v2651_v47 = vsub.f32 %v5083_v61, %v2650_v24 }
 0xd7d   : > { %v2652_v5 = vmul.f32 1.442695, %v2651_v47 }
 0xd7f   : > { %4175 = vpow2.f32 %v2652_v5 }
 0xd82   : > { %v2520_v20 = vpop.xlane.xlu1 %2519  ;;  %v4046_v8 = vpop.permute.xlu2 %4045 }
 0xd83   : > { %v2521_v26 = vsub.f32 %v5077_v57, %v2520_v20  ;;  %v4047_v14 = vunpack.i.l.bf16 %v4046_v8  ;;  %v4048_v35 = vunpack.i.h.bf16 %v4046_v8 }
 0xd85   : > { %v5147_v11 = vpop.eup %4175  ;;  %v2522_v0 = vmul.f32 1.442695, %v2521_v26 }
 0xd86   : > { %v2654_v3 = vsel %vm692_vm2, %v5147_v11, 0.0 }
 0xd87   : > { %4177 = vpow2.f32 %v2522_v0  ;;  %2655 = vadd.xlane.f32.xlu1 %v2654_v3 }
 0xd8d   : > { %v5151_v4 = vpop.eup %4177 }
 0xd8e   : > { %v2524_v6 = vsel %vm692_vm2, %v5151_v4, 0.0 }
 0xd8f   : > { %2525 = vadd.xlane.f32.xlu0 %v2524_v6 }
 0xd93   : > { %v2591_v61 = vpop.xlane.xlu0 %2590 }
 0xd94   : > { %4179 = vrcp.f32 %v2591_v61 }
 0xd9a   : > { %v4180_v9 = vpop.eup %4179 }
 0xd9b   : > { %v2593_v57 = vmul.f32 %v4180_v9, %v5098_v39  ;;  %v2721_v10 = vpop.xlane.xlu0 %2720  ;;  %v4043_v9 = vunpack.i.h.bf16 %v5138_v55 }
 0xd9c   : > { %4181 = vrcp.f32 %v2721_v10 }
 0xd9d   : > { %3910 = vmatmul.msk.f32.vlgmr.msrb.gmra.mxu3 %vm692_vm2, %v2593_v57  ;;  %4183 = vrcp.f32 %v2865_v59 }
 0xd9e   : > { %2889 = vmatpush.msrb.mxu3 %v4047_v14 }
 0xda0   : > { %v3139_v2 = vpop.xlane.xlu1 %3138 }
 0xda2   : > { %v4182_v16 = vpop.eup %4181 }
 0xda3   : > { %v2723_v19 = vmul.f32 %v4182_v16, %v5107_v33  ;;  %v2376_v27 = vpop.xlane.xlu0 %2375  ;;  %v4184_v30 = vpop.eup %4183 }
 0xda4   : > { %v2377_v29 = vsub.f32 %v5072_v52, %v2376_v27  ;;  %v2867_v32 = vmul.f32 %v4184_v30, %v5079_v1 }
 0xda5   : > { %3916 = vmatmul.msk.f32.vlgmr.msra.gmra.mxu3 %vm692_vm2, %v2723_v19 }
 0xda6   : > { %v2378_v12 = vmul.f32 1.442695, %v2377_v29 }
 0xda8   : > { %4185 = vpow2.f32 %v2378_v12  ;;  %v2924_v39 = vpop.xlane.xlu1 %2923 }
 0xda9   : > { %v2925_v31 = vsub.f32 %v5117_v18, %v2924_v39 }
 0xdab   : > { %v2926_v36 = vmul.f32 1.442695, %v2925_v31  ;;  %v2794_v38 = vpop.xlane.xlu0 %2793 }
 0xdac   : > { %v2795_v41 = vsub.f32 %v5109_v34, %v2794_v38 }
 0xdad   : > { %4187 = vpow2.f32 %v2926_v36  ;;  %3922 = vmatmul.msk.f32.vlgmr.msrb.gmra.mxu3 %vm692_vm2, %v2867_v32 }
 0xdae   : > { %v4186_v33 = vpop.eup %4185  ;;  %v2796_v42 = vmul.f32 1.442695, %v2795_v41 }
 0xdaf   : > { %v2380_v52 = vsel %vm692_vm2, %v4186_v33, 0.0 }
 0xdb0   : > { %4189 = vpow2.f32 %v2796_v42  ;;  %v3068_v23 = vpop.xlane.xlu1 %3067  ;;  %2381 = vadd.xlane.f32.xlu2 %v2380_v52 }
 0xdb1   : > { %v3069_v40 = vsub.f32 %v5125_v43, %v3068_v23  ;;  %4191 = vrcp.f32 %v2995_v48 }
 0xdb3   : > { %v5166_v44 = vpop.eup %4187  ;;  %v3070_v18 = vmul.f32 1.442695, %v3069_v40 }
 0xdb4   : > { %v2928_v1 = vsel %vm692_vm2, %v5166_v44, 0.0 }
 0xdb5   : > { %4193 = vpow2.f32 %v3070_v18  ;;  %2929 = vadd.xlane.f32.xlu1 %v2928_v1  ;;  %v3944_v18 = vld [vmem:[%s5439_s6 + $0x38] sm:$0xff]  ;;  %v3943_v1 = vld [vmem:[%s5439_s6 + $0x30] sm:$0xff] }
 0xdb6   : > { %v5170_v34 = vpop.eup %4189  ;;  %4195 = vrcp.f32 %v3139_v2  ;;  %3347 = vmatpush.msrb.mxu2 %v3944_v18 }
 0xdb7   : > { %v2798_v63 = vsel %vm692_vm2, %v5170_v34, 0.0  ;;  %v4192_v37 = vpop.eup %4191 }
 0xdb8   : > { %2799 = vadd.xlane.f32.xlu0 %v2798_v63  ;;  %v2997_v25 = vmul.f32 %v4192_v37, %v5085_v62  ;;  %v2343_v62 = vpop.f32.mrf.mxu3  ;;  %v3942_v63 = vld [vmem:[%s5439_s6 + $0x28] sm:$0xff]  ;;  %3348 = vmatpush.msrb.mxu2 %v3943_v1 }
 0xdba   : > { %3349 = vmatpush.msrb.mxu2 %v3942_v63 }
 0xdbb   : > { %v5174_v15 = vpop.eup %4193 }
 0xdbc   : > { %v3072_v43 = vsel %vm692_vm2, %v5174_v15, 0.0  ;;  %v4196_v54 = vpop.eup %4195 }
 0xdbd   : > { %3073 = vadd.xlane.f32.xlu1 %v3072_v43  ;;  %v3141_v46 = vmul.f32 %v4196_v54, %v5113_v53 }
 0xdbe   : > { %v2999_v51 = vpop.permute.xlu0 %2998 }
 0xdbf   : > { %3019 = vmatpush.msra.mxu3 %v2999_v51 }
 0xdc0   : > { %3928 = vmatmul.msk.f32.vlgmr.msra.gmra.mxu3 %vm692_vm2, %v2997_v25  ;;  %v3941_v25 = vld [vmem:[%s5439_s6 + $0x20] sm:$0xff] }
 0xdc1   : > { %3163 = vmatpush.msrb.mxu3 %v4048_v35  ;;  %3350 = vmatpush.msrb.mxu2 %v3941_v25  ;;  %v3954_v25 = vld [vmem:[%s5441_s8 + $0x30] sm:$0xff] }
 0xdc8   : > { %2933 = vrot.lane.b32.xlu2 %v4965_v17, %s5502_s3  ;;  %3934 = vmatmul.msk.f32.vlgmr.msrb.gmra.mxu3 %vm692_vm2, %v3141_v46 }
 0xdcc   : > { %3272 = vrot.lane.b32.xlu0 %v4986_v50, %s5503_s0 }
 0xdd4   : > { %3207 = vrot.lane.b32.xlu0 %v4986_v50, %s5502_s3 }
 0xdd6   : > { %3077 = vrot.lane.b32.xlu1 %v4986_v50, %s5491_s2  ;;  %v3269_v50 = vpop.xlane.xlu1 %3268 }
 0xddc   : > { %2477 = vrot.lane.b32.xlu0 %v2343_v62, %s5504_s20 }
 0xde7   : > { %v2473_v59 = vpop.f32.mrf.mxu3 }
 0xde8   : > { %2485 = vrot.lane.b32.xlu0 %v2473_v59, %s5493_s26 }
 0xde9   : > { %v3198_v53 = vpop.xlane.xlu0 %3197 }
 0xdea   : > { %v3199_v17 = vsub.f32 %v5141_v58, %v3198_v53  ;;  %v4038_v58 = vunpack.i.h.bf16 %v5094_v56 }
 0xdec   : > { %v3200_v60 = vmul.f32 1.442695, %v3199_v17 }
 0xdee   : > { %4197 = vpow2.f32 %v3200_v60 }
 0xdf4   : > { %v4198_v48 = vpop.eup %4197 }
 0xdf5   : > { %v3202_v24 = vsel %vm692_vm2, %v4198_v48, 0.0 }
 0xdf6   : > { %3203 = vadd.xlane.f32.xlu2 %v3202_v24 }
 0xdfa   : > { %v2656_v6 = vpop.xlane.xlu1 %2655 }
 0xe02   : > { %v2526_v20 = vpop.xlane.xlu0 %2525 }
 0xe20   : > { %v2617_v47 = vpop.f32.mrf.mxu3 }
 0xe21   : > { %2751 = vrot.lane.b32.xlu1 %v2617_v47, %s5504_s20 }
 0xe23   : > { %v2382_v5 = vpop.xlane.xlu2 %2381 }
 0xe24   : > { %4199 = vrcp.f32 %v2382_v5 }
 0xe25   : > { %4201 = vrcp.f32 %v2526_v20 }
 0xe26   : > { %4203 = vrcp.f32 %v2656_v6 }
 0xe27   : > { %4205 = vrcp.f32 %v3269_v50 }
 0xe28   : > { %v2747_v26 = vpop.f32.mrf.mxu3  ;;  %v2930_v57 = vpop.xlane.xlu1 %2929 }
 0xe29   : > { %2759 = vrot.lane.b32.xlu2 %v2747_v26, %s5493_s26 }
 0xe2a   : > { %v4200_v0 = vpop.eup %4199 }
 0xe2b   : > { %v2384_v3 = vmul.f32 %v4200_v0, %v4186_v33  ;;  %v4202_v61 = vpop.eup %4201  ;;  %v2800_v10 = vpop.xlane.xlu0 %2799 }
 0xe2c   : > { %v2528_v8 = vmul.f32 %v4202_v61, %v5151_v4  ;;  %v4204_v14 = vpop.eup %4203  ;;  %4207 = vrcp.f32 %v2800_v10  ;;  %v2934_v16 = vpop.permute.xlu2 %2933 }
 0xe2d   : > { %3901 = vmatmul.msk.f32.vlgmr.msra.gmra.mxu0 %vm692_vm2, %v2384_v3  ;;  %v4206_v2 = vpop.eup %4205  ;;  %v2658_v56 = vmul.f32 %v4204_v14, %v5147_v11  ;;  %4209 = vrcp.f32 %v2930_v57  ;;  %v4062_v57 = vld [vmem:[%s5440_s7 + $0x1] ss:$0 sm:$0xff] }
 0xe2e   : > { %2680 = vmatpush.msra.mxu0 %v4038_v58  ;;  %v3271_v19 = vmul.f32 %v4206_v2, %v5132_v28 }
 0xe30   : > { %v3074_v27 = vpop.xlane.xlu1 %3073  ;;  %v2891_v33 = vpop.f32.mrf.mxu3 }
 0xe31   : > { %4211 = vrcp.f32 %v3074_v27 }
 0xe32   : > { %v4208_v55 = vpop.eup %4207 }
 0xe33   : > { %v2802_v29 = vmul.f32 %v4208_v55, %v5170_v34  ;;  %v4210_v12 = vpop.eup %4209 }
 0xe34   : > { %v2932_v11 = vmul.f32 %v4210_v12, %v5166_v44 }
 0xe35   : > { %3907 = vmatmul.msk.f32.vlgmr.msrb.gmra.mxu0 %vm692_vm2, %v2528_v8 }
 0xe36   : > { %2824 = vmatpush.msrb.mxu0 %v4043_v9 }
 0xe37   : > { %v4212_v28 = vpop.eup %4211 }
 0xe38   : > { %v3076_v31 = vmul.f32 %v4212_v28, %v5174_v15 }
 0xe3d   : > { %3913 = vmatmul.msk.f32.vlgmr.msra.gmra.mxu0 %vm692_vm2, %v2658_v56 }
 0xe3e   : > { %2954 = vmatpush.msra.mxu0 %v2934_v16  ;;  %v3273_v4 = vpop.permute.xlu0 %3272 }
 0xe3f   : > { %3293 = vmatpush.msra.mxu3 %v3273_v4 }
 0xe40   : > { %3940 = vmatmul.msk.f32.vlgmr.msra.gmra.mxu3 %vm692_vm2, %v3271_v19 }
 0xe43   : > { %v3021_v52 = vpop.f32.mrf.mxu3 }
 0xe45   : > { %3919 = vmatmul.msk.f32.vlgmr.msrb.gmra.mxu0 %vm692_vm2, %v2802_v29 }
 0xe46   : > { %v3208_v39 = vpop.permute.xlu0 %3207 }
 0xe48   : > { %v3078_v30 = vpop.permute.xlu1 %3077 }
 0xe49   : > { %3098 = vmatpush.msrb.mxu0 %v3078_v30 }
 0xe4b   : > { %v3165_v34 = vpop.f32.mrf.mxu3 }
 0xe4d   : > { %3925 = vmatmul.msk.f32.vlgmr.msra.gmra.mxu0 %vm692_vm2, %v2932_v11 }
 0xe4e   : > { %3228 = vmatpush.msra.mxu0 %v3208_v39  ;;  %v2478_v35 = vpop.permute.xlu0 %2477 }
 0xe4f   : > { %v2488_v54 = vsel %vm692_vm2, %v5068_v49, %v2478_v35  ;;  %v3952_v35 = vld [vmem:[%s5441_s8 + $0x20] sm:$0xff] }
 0xe55   : > { %3931 = vmatmul.msk.f32.vlgmr.msrb.gmra.mxu0 %vm692_vm2, %v3076_v31 }
 0xe5a   : > { %v2486_v62 = vpop.permute.xlu0 %2485 }
 0xe69   : > { %v3204_v32 = vpop.xlane.xlu2 %3203 }
 0xe6a   : > { %4213 = vrcp.f32 %v3204_v32 }
 0xe70   : > { %v4214_v36 = vpop.eup %4213 }
 0xe71   : > { %v3206_v38 = vmul.f32 %v4214_v36, %v4198_v48 }
 0xe73   : > { %3937 = vmatmul.msk.f32.vlgmr.msra.gmra.mxu0 %vm692_vm2, %v3206_v38 }
 0xe83   : > { %v2760_v48 = vpop.permute.xlu2 %2759 }
 0xe93   : > { %v2752_v51 = vpop.permute.xlu1 %2751 }
 0xeaa   : > { %v2408_v41 = vpop.f32.mrf.mxu0 }
 0xeab   : > { %2481 = vrot.lane.b32.xlu1 %v2408_v41, %s5492_s25 }
 0xeb2   : > { %v2552_v42 = vpop.f32.mrf.mxu0 }
 0xeb3   : > { %3025 = vrot.lane.b32.xlu1 %v2891_v33, %s5504_s20  ;;  %v2762_v17 = vsel %vm692_vm2, %v2552_v42, %v2752_v51  ;;  %v3953_v51 = vld [vmem:[%s5441_s8 + $0x28] sm:$0xff] }
 0xeba   : > { %v2682_v23 = vpop.f32.mrf.mxu0 }
 0xebb   : > { %3033 = vrot.lane.b32.xlu1 %v3021_v52, %s5493_s26  ;;  %2755 = vrot.lane.b32.xlu0 %v2682_v23, %s5492_s25 }
 0xec2   : > { %v2826_v40 = vpop.f32.mrf.mxu0 }
 0xec3   : > { %v3295_v37 = vpop.f32.mrf.mxu3 }
 0xeca   : > { %v2956_v44 = vpop.f32.mrf.mxu0 }
 0xecb   : > { %3029 = vrot.lane.b32.xlu0 %v2956_v44, %s5492_s25 }
 0xed2   : > { %v3100_v15 = vpop.f32.mrf.mxu0 }
 0xed3   : > { %3299 = vrot.lane.b32.xlu0 %v3165_v34, %s5504_s20 }
 0xedb   : > { %3307 = vrot.lane.b32.xlu0 %v3295_v37, %s5493_s26 }
 0xef0   : > { %v3230_v43 = vpop.f32.mrf.mxu0 }
 0xef1   : > { %3303 = vrot.lane.b32.xlu1 %v3230_v43, %s5492_s25  ;;  %v3955_v43 = vld [vmem:[%s5441_s8 + $0x38] sm:$0xff] }
 0xef2   : > { %3508 = vmatpush.msrb.mxu0 %v3955_v43 }
 0xef4   : > { %3509 = vmatpush.msrb.mxu0 %v3954_v25  ;;  %v3963_v25 = vld [vmem:[%s5443_s10 + $0x50] sm:$0xff] }
 0xef6   : > { %3510 = vmatpush.msrb.mxu0 %v3953_v51  ;;  %v3962_v51 = vld [vmem:[%s5443_s10 + $0x48] sm:$0xff] }
 0xef8   : > { %3511 = vmatpush.msrb.mxu0 %v3952_v35  ;;  %v3961_v35 = vld [vmem:[%s5443_s10 + $0x40] sm:$0xff] }
 0xf1d   : > { %v2482_v46 = vpop.permute.xlu1 %2481 }
 0xf1e   : > { %v2489_v59 = vsel %vm962_vm3, %v2488_v54, %v2482_v46 }
 0xf1f   : > { %v2490_v53 = vsel %vm589_vm0, %v2489_v59, %v2486_v62 }
 0xf20   : > { %3946 = vmatmul.msk.f32.vlgmr.msrb.gmra.mxu2 %vm647_vm1, %v2490_v53 }
 0xf25   : > { %v3026_v5 = vpop.permute.xlu1 %3025 }
 0xf26   : > { %v3036_v49 = vsel %vm692_vm2, %v2826_v40, %v3026_v5 }
 0xf2d   : > { %v2756_v60 = vpop.permute.xlu0 %2755  ;;  %v3034_v20 = vpop.permute.xlu1 %3033 }
 0xf2e   : > { %v2763_v24 = vsel %vm962_vm3, %v2762_v17, %v2756_v60 }
 0xf2f   : > { %v2764_v47 = vsel %vm589_vm0, %v2763_v24, %v2760_v48 }
 0xf30   : > { %3947 = vmatmul.msk.f32.gmra.mxu2 %vm647_vm1, %v2764_v47 }
 0xf3d   : > { %v3030_v50 = vpop.permute.xlu0 %3029 }
 0xf3e   : > { %v3037_v26 = vsel %vm962_vm3, %v3036_v49, %v3030_v50  ;;  %v5297_v50 = vld [vmem:[%s5445_s12 + $0x1] ss:$0 sm:$0xff] }
 0xf3f   : > { %v3038_v0 = vsel %vm589_vm0, %v3037_v26, %v3034_v20 }
 0xf40   : > { %3948 = vmatmul.msk.f32.gmra.mxu2 %vm647_vm1, %v3038_v0  ;;  %v4064_v0 = vld [vmem:[%s5446_s13 + $0x1] ss:$0 sm:$0xff] }
 0xf45   : > { %v3300_v3 = vpop.permute.xlu0 %3299 }
 0xf46   : > { %v3310_v58 = vsel %vm692_vm2, %v3100_v15, %v3300_v3 }
 0xf4d   : > { %v3308_v61 = vpop.permute.xlu0 %3307 }
 0xf63   : > { %v3304_v6 = vpop.permute.xlu1 %3303 }
 0xf64   : > { %v3311_v8 = vsel %vm962_vm3, %v3310_v58, %v3304_v6 }
 0xf65   : > { %v3312_v9 = vsel %vm589_vm0, %v3311_v8, %v3308_v61 }
 0xf66   : > { %3949 = vmatmul.msk.f32.gmra.mxu2 %vm647_vm1, %v3312_v9 }
 0xfa3   : > { %v3352_v10 = vpop.f32.mrf.mxu2 }
 0xfa4   : > { %v3353_v14 = vadd.f32 %v4062_v57, %v3352_v10 }
 0xfa6   : > { %v3364_v2 = vadd.f32 %v3353_v14, %v4872_v13 }
 0xfa8   : > { %v3372_v56 = vsel %vm647_vm1, %v3364_v2, 0.0 }
 0xfa9   : > { %3373 = vadd.xlane.f32.xlu2 %v3372_v56 }
 0xfb3   : > { %v3355_v16 = vpop.f32.mrf.mxu2 }
 0xfb4   : > { %v3356_v19 = vadd.f32 %v4062_v57, %v3355_v16 }
 0xfb6   : > { %v3365_v4 = vadd.f32 %v3356_v19, %v4927_v7 }
 0xfb8   : > { %v3375_v55 = vsel %vm647_vm1, %v3365_v4, 0.0 }
 0xfb9   : > { %3376 = vadd.xlane.f32.xlu1 %v3375_v55 }
 0xfc3   : > { %v3358_v27 = vpop.f32.mrf.mxu2 }
 0xfc4   : > { %v3359_v29 = vadd.f32 %v4062_v57, %v3358_v27 }
 0xfc6   : > { %v3366_v12 = vadd.f32 %v3359_v29, %v4933_v22 }
 0xfc8   : > { %v3378_v30 = vsel %vm647_vm1, %v3366_v12, 0.0 }
 0xfc9   : > { %3379 = vadd.xlane.f32.xlu0 %v3378_v30 }
 0xfe9   : > { %v3361_v11 = vpop.f32.mrf.mxu2 }
 0xfea   : > { %v3362_v39 = vadd.f32 %v4062_v57, %v3361_v11 }
 0xfec   : > { %v3367_v13 = vadd.f32 %v3362_v39, %v4944_v45 }
 0xfee   : > { %v3381_v28 = vsel %vm647_vm1, %v3367_v13, 0.0 }
 0xfef   : > { %3382 = vadd.xlane.f32.xlu2 %v3381_v28 }
0x101c   : > { %v3374_v31 = vpop.xlane.xlu2 %3373 }
0x101d   : > { %v3384_v7 = vmul.f32 %v3374_v31, %v4724_v21 }
0x101f   : > { %v3388_v32 = vsub.f32 %v3364_v2, %v3384_v7 }
0x1021   : > { %v3392_v36 = vmul.f32 %v3388_v32, %v3388_v32 }
0x1023   : > { %v3396_v38 = vsel %vm647_vm1, %v3392_v36, 0.0  ;;  %v3967_v36 = vld [vmem:[%s5443_s10 + $0x70] sm:$0xff] }
0x1024   : > { %3397 = vadd.xlane.f32.xlu1 %v3396_v38  ;;  %v3966_v38 = vld [vmem:[%s5443_s10 + $0x68] sm:$0xff] }
0x102c   : > { %v3377_v41 = vpop.xlane.xlu1 %3376 }
0x102d   : > { %v3385_v22 = vmul.f32 %v3377_v41, %v4724_v21 }
0x102f   : > { %v5263_v33 = vsub.f32 %v3365_v4, %v3385_v22 }
0x1031   : > { %v3393_v42 = vmul.f32 %v5263_v33, %v5263_v33 }
0x1033   : > { %v3399_v45 = vsel %vm647_vm1, %v3393_v42, 0.0 }
0x1034   : > { %3400 = vadd.xlane.f32.xlu2 %v3399_v45  ;;  %v3964_v45 = vld [vmem:[%s5443_s10 + $0x58] sm:$0xff] }
0x103c   : > { %v3380_v52 = vpop.xlane.xlu0 %3379 }
0x103d   : > { %v3386_v23 = vmul.f32 %v3380_v52, %v4724_v21 }
0x103f   : > { %v5269_v40 = vsub.f32 %v3366_v12, %v3386_v23 }
0x1041   : > { %v3394_v44 = vmul.f32 %v5269_v40, %v5269_v40 }
0x1043   : > { %v3402_v18 = vsel %vm647_vm1, %v3394_v44, 0.0 }
0x1044   : > { %3403 = vadd.xlane.f32.xlu0 %v3402_v18 }
0x1062   : > { %v3383_v1 = vpop.xlane.xlu2 %3382 }
0x1063   : > { %v3387_v34 = vmul.f32 %v3383_v1, %v4724_v21 }
0x1065   : > { %v5275_v63 = vsub.f32 %v3367_v13, %v3387_v34 }
0x1067   : > { %v3395_v37 = vmul.f32 %v5275_v63, %v5275_v63 }
0x1069   : > { %v3405_v15 = vsel %vm647_vm1, %v3395_v37, 0.0 }
0x106a   : > { %3406 = vadd.xlane.f32.xlu1 %v3405_v15 }
0x1097   : > { %v3398_v54 = vpop.xlane.xlu1 %3397 }
0x1098   : > { %v3408_v46 = vmul.f32 %v3398_v54, %v4724_v21 }
0x109a   : > { %v3412_v62 = vadd.f32 1e-05, %v3408_v46 }
0x109c   : > { %4215 = vrsqrt.f32 %v3412_v62  ;;  %vm3422_vm2 = vweird.f32 %v3412_v62 }
0x10a2   : > { %v4216_v59 = vpop.eup %4215 }
0x10a3   : > { %v3417_v53 = vmul.f32 %v4216_v59, %v3412_v62  ;;  %vm3423_vm0 = vweird.f32 %v4216_v59 }
0x10a4   : > { %vm3424_vm3 = vmor %vm3422_vm2, %vm3423_vm0 }
0x10a5   : > { %v3418_v17 = vmul.f32 %v4216_v59, %v3417_v53 }
0x10a7   : > { %v3419_v60 = vmul.f32 0.5, %v3418_v17  ;;  %v3401_v48 = vpop.xlane.xlu2 %3400 }
0x10a8   : > { %v3409_v24 = vmul.f32 %v3401_v48, %v4724_v21 }
0x10a9   : > { %v3420_v47 = vsub.f32 1.5, %v3419_v60 }
0x10aa   : > { %v3413_v5 = vadd.f32 1e-05, %v3409_v24 }
0x10ab   : > { %v3421_v49 = vmul.f32 %v4216_v59, %v3420_v47 }
0x10ac   : > { %4217 = vrsqrt.f32 %v3413_v5  ;;  %vm3432_vm9 = vweird.f32 %v3413_v5 }
0x10ad   : > { %v3425_v20 = vsel %vm3424_vm3, %v4216_v59, %v3421_v49 }
0x10ae   : > { %v3456_v26 = vmul.f32 %v3425_v20, %v3388_v32  ;;  %v3968_v32 = vld [vmem:[%s5443_s10 + $0x78] sm:$0xff]  ;;  %v4066_v20 = vld [vmem:[%s5444_s11 + $0x1] ss:$0 sm:$0xff] }
0x10af   : > { %3563 = vmatpush.msrb.mxu1 %v3968_v32 }
0x10b0   : > { %v3463_v3 = vmul.f32 %v5297_v50, %v3456_v26 }
0x10b1   : > { %3564 = vmatpush.msrb.mxu1 %v3967_v36 }
0x10b2   : > { %v4218_v58 = vpop.eup %4217  ;;  %v5303_v6 = vadd.f32 %v4064_v0, %v3463_v3 }
0x10b3   : > { %v3427_v61 = vmul.f32 %v4218_v58, %v3413_v5  ;;  %vm3433_vm7 = vweird.f32 %v4218_v58  ;;  %3565 = vmatpush.msrb.mxu1 %v3966_v38 }
0x10b4   : > { %3957 = vmatmul.msk.f32.vlgmr.msrb.gmra.mxu0 %vm647_vm1, %v5303_v6  ;;  %vm3434_vm10 = vmor %vm3432_vm9, %vm3433_vm7 }
0x10b5   : > { %v3428_v8 = vmul.f32 %v4218_v58, %v3427_v61 }
0x10b7   : > { %v3429_v9 = vmul.f32 0.5, %v3428_v8  ;;  %v3404_v57 = vpop.xlane.xlu0 %3403 }
0x10b8   : > { %v3410_v10 = vmul.f32 %v3404_v57, %v4724_v21 }
0x10b9   : > { %v3430_v14 = vsub.f32 1.5, %v3429_v9 }
0x10ba   : > { %v3414_v2 = vadd.f32 1e-05, %v3410_v10 }
0x10bb   : > { %v3431_v56 = vmul.f32 %v4218_v58, %v3430_v14 }
0x10bc   : > { %4219 = vrsqrt.f32 %v3414_v2  ;;  %vm3442_vm12 = vweird.f32 %v3414_v2 }
0x10bd   : > { %v3435_v16 = vsel %vm3434_vm10, %v4218_v58, %v3431_v56 }
0x10be   : > { %v3457_v19 = vmul.f32 %v3435_v16, %v5263_v33  ;;  %v3965_v33 = vld [vmem:[%s5443_s10 + $0x60] sm:$0xff] }
0x10bf   : > { %3566 = vmatpush.msrb.mxu1 %v3965_v33 }
0x10c0   : > { %v3464_v4 = vmul.f32 %v5297_v50, %v3457_v19 }
0x10c1   : > { %3567 = vmatpush.msrb.mxu1 %v3964_v45 }
0x10c2   : > { %v4220_v55 = vpop.eup %4219  ;;  %v5310_v27 = vadd.f32 %v4064_v0, %v3464_v4 }
0x10c3   : > { %v3437_v29 = vmul.f32 %v4220_v55, %v3414_v2  ;;  %vm3443_vm11 = vweird.f32 %v4220_v55  ;;  %3568 = vmatpush.msrb.mxu1 %v3963_v25 }
0x10c4   : > { %3958 = vmatmul.msk.f32.gmra.mxu0 %vm647_vm1, %v5310_v27  ;;  %vm3444_vm13 = vmor %vm3442_vm12, %vm3443_vm11 }
0x10c5   : > { %v3438_v12 = vmul.f32 %v4220_v55, %v3437_v29  ;;  %3569 = vmatpush.msrb.mxu1 %v3962_v51 }
0x10c7   : > { %v3439_v30 = vmul.f32 0.5, %v3438_v12  ;;  %3570 = vmatpush.msrb.mxu1 %v3961_v35 }
0x10c9   : > { %v3440_v11 = vsub.f32 1.5, %v3439_v30 }
0x10cb   : > { %v3441_v39 = vmul.f32 %v4220_v55, %v3440_v11 }
0x10cd   : > { %v3445_v13 = vsel %vm3444_vm13, %v4220_v55, %v3441_v39 }
0x10ce   : > { %v3458_v28 = vmul.f32 %v3445_v13, %v5269_v40 }
0x10d0   : > { %v3465_v31 = vmul.f32 %v5297_v50, %v3458_v28 }
0x10d2   : > { %v3472_v7 = vadd.f32 %v4064_v0, %v3465_v31 }
0x10d4   : > { %3959 = vmatmul.msk.f32.gmra.mxu0 %vm647_vm1, %v3472_v7 }
0x10dd   : > { %v3407_v41 = vpop.xlane.xlu1 %3406 }
0x10de   : > { %v3411_v22 = vmul.f32 %v3407_v41, %v4724_v21 }
0x10e0   : > { %v3415_v42 = vadd.f32 1e-05, %v3411_v22 }
0x10e2   : > { %4221 = vrsqrt.f32 %v3415_v42  ;;  %vm3452_vm15 = vweird.f32 %v3415_v42 }
0x10e8   : > { %v4222_v52 = vpop.eup %4221 }
0x10e9   : > { %v3447_v23 = vmul.f32 %v4222_v52, %v3415_v42  ;;  %vm3453_vm14 = vweird.f32 %v4222_v52 }
0x10ea   : > { %vm3454_vm4 = vmor %vm3452_vm15, %vm3453_vm14  ;;  %vm3750_vm14 = vcmask 254976  }
0x10eb   : > { %v3448_v40 = vmul.f32 %v4222_v52, %v3447_v23 }
0x10ed   : > { %v3449_v44 = vmul.f32 0.5, %v3448_v40 }
0x10ef   : > { %v3450_v18 = vsub.f32 1.5, %v3449_v44 }
0x10f1   : > { %v3451_v1 = vmul.f32 %v4222_v52, %v3450_v18 }
0x10f3   : > { %v3455_v34 = vsel %vm3454_vm4, %v4222_v52, %v3451_v1 }
0x10f4   : > { %v3459_v37 = vmul.f32 %v3455_v34, %v5275_v63  ;;  %v4065_v63 = vld [vmem:[%s5442_s9 + $0x1] ss:$0 sm:$0xff] }
0x10f6   : > { %v3466_v15 = vmul.f32 %v5297_v50, %v3459_v37 }
0x10f8   : > { %v3473_v43 = vadd.f32 %v4064_v0, %v3466_v15 }
0x10fa   : > { %3960 = vmatmul.msk.f32.gmra.mxu0 %vm647_vm1, %v3473_v43 }
0x1131   : > { %v3513_v54 = vpop.f32.mrf.mxu0 }
0x1132   : > { %v3514_v46 = vadd.f32 %v4065_v63, %v3513_v54 }
0x1134   : > { %v3525_v62 = vmax.f32 %v3514_v46, 0.0 }
0x1136   : > { %3970 = vmatmul.msk.f32.vlgmr.msrb.gmra.mxu1 %vm2016_vm8, %v3525_v62 }
0x1141   : > { %v3516_v59 = vpop.f32.mrf.mxu0 }
0x1142   : > { %v3517_v53 = vadd.f32 %v4065_v63, %v3516_v59 }
0x1144   : > { %v3526_v17 = vmax.f32 %v3517_v53, 0.0 }
0x1146   : > { %3971 = vmatmul.msk.f32.gmra.mxu1 %vm2016_vm8, %v3526_v17 }
0x1151   : > { %v3519_v60 = vpop.f32.mrf.mxu0 }
0x1152   : > { %v3520_v48 = vadd.f32 %v4065_v63, %v3519_v60 }
0x1154   : > { %v3527_v24 = vmax.f32 %v3520_v48, 0.0 }
0x1156   : > { %3972 = vmatmul.msk.f32.gmra.mxu1 %vm2016_vm8, %v3527_v24 }
0x1177   : > { %v3522_v47 = vpop.f32.mrf.mxu0 }
0x1178   : > { %v3523_v5 = vadd.f32 %v4065_v63, %v3522_v47 }
0x117a   : > { %v3528_v49 = vmax.f32 %v3523_v5, 0.0 }
0x117c   : > { %3973 = vmatmul.msk.f32.gmra.mxu1 %vm2016_vm8, %v3528_v49 }
0x11b3   : > { %v3572_v50 = vpop.f32.mrf.mxu1 }
0x11b4   : > { %v3573_v56 = vadd.f32 %v4066_v20, %v3572_v50 }
0x11b6   : > { %v3584_v19 = vadd.f32 %v3573_v56, %v5303_v6  ;;  %v4067_v56 = vld [vmem:[%s5447_s14 + $0x1] ss:$0 sm:$0xff] }
0x11b8   : > { %v3592_v4 = vsel %vm647_vm1, %v3584_v19, 0.0 }
0x11c3   : > { %v3575_v26 = vpop.f32.mrf.mxu1 }
0x11c4   : > { %v3576_v0 = vadd.f32 %v4066_v20, %v3575_v26 }
0x11c6   : > { %v3585_v3 = vadd.f32 %v3576_v0, %v5310_v27 }
0x11c8   : > { %v3595_v58 = vsel %vm647_vm1, %v3585_v3, 0.0 }
0x11c9   : > { %3596 = vadd.xlane.f32.xlu1 %v3595_v58 }
0x11d3   : > { %v3578_v61 = vpop.f32.mrf.mxu1 }
0x11d4   : > { %v3579_v8 = vadd.f32 %v4066_v20, %v3578_v61 }
0x11d6   : > { %v3586_v9 = vadd.f32 %v3579_v8, %v3472_v7  ;;  %v3696_v8 = vld [vmem:[%s5450_s17] sm:$0xff] }
0x11d8   : > { %v3598_v57 = vsel %vm647_vm1, %v3586_v9, 0.0 }
0x11d9   : > { %3599 = vadd.xlane.f32.xlu0 %v3598_v57  ;;  %v4254_v57 = vmov 0  }
0x11da   : > { %4049 = vset.pattern.permute.xlu1 %v4254_v57  ;;  %4050 = vset.pattern.permute.xlu2 %v4254_v57 }
0x11db   : > { %4051 = vset.pattern.permute.xlu0 %v4254_v57 }
0x11f9   : > { %v3581_v10 = vpop.f32.mrf.mxu1 }
0x11fa   : > { %v3582_v14 = vadd.f32 %v4066_v20, %v3581_v10 }
0x11fc   : > { %v3587_v2 = vadd.f32 %v3582_v14, %v3473_v43 }
0x11fe   : > { %v3601_v16 = vsel %vm647_vm1, %v3587_v2, 0.0 }
0x11ff   : > { %3602 = vadd.xlane.f32.xlu2 %v3601_v16 }
0x1207   : > { %3593 = vadd.xlane.f32.xlu2 %v3592_v4 }
0x123c   : > { %v3597_v55 = vpop.xlane.xlu1 %3596 }
0x123d   : > { %v3605_v27 = vmul.f32 %v3597_v55, %v4724_v21 }
0x123f   : > { %v5362_v29 = vsub.f32 %v3585_v3, %v3605_v27  ;;  %v4068_v27 = vld [vmem:[%s5448_s15 + $0x1] ss:$0 sm:$0xff] }
0x1241   : > { %v3613_v12 = vmul.f32 %v5362_v29, %v5362_v29 }
0x1243   : > { %v3619_v30 = vsel %vm647_vm1, %v3613_v12, 0.0 }
0x1244   : > { %3620 = vadd.xlane.f32.xlu2 %v3619_v30 }
0x124c   : > { %v3600_v11 = vpop.xlane.xlu0 %3599 }
0x124d   : > { %v3606_v39 = vmul.f32 %v3600_v11, %v4724_v21 }
0x124f   : > { %v5368_v13 = vsub.f32 %v3586_v9, %v3606_v39  ;;  %v3697_v9 = vld [vmem:[%s5450_s17 + $0x8] sm:$0x3] }
0x1251   : > { %v3614_v6 = vmul.f32 %v5368_v13, %v5368_v13 }
0x1253   : > { %v3622_v28 = vsel %vm647_vm1, %v3614_v6, 0.0 }
0x1254   : > { %3623 = vadd.xlane.f32.xlu1 %v3622_v28 }
0x125c   : > { %3705 = vperm.xlu2 %4050, %v3697_v9  }
0x126d   : > { %3700 = vperm.xlu1 %4049, %v3696_v8  }
0x1272   : > { %v3603_v31 = vpop.xlane.xlu2 %3602 }
0x1273   : > { %v3607_v7 = vmul.f32 %v3603_v31, %v4724_v21 }
0x1275   : > { %v5374_v32 = vsub.f32 %v3587_v2, %v3607_v7 }
0x1277   : > { %v3615_v36 = vmul.f32 %v5374_v32, %v5374_v32 }
0x1279   : > { %v3625_v38 = vsel %vm647_vm1, %v3615_v36, 0.0 }
0x127a   : > { %3626 = vadd.xlane.f32.xlu0 %v3625_v38  ;;  %v3594_v41 = vpop.xlane.xlu2 %3593  ;;  %v3694_v38 = vld [vmem:[%s5449_s16] sm:$0xff] }
0x127b   : > { %v3604_v22 = vmul.f32 %v3594_v41, %v4724_v21  ;;  %v3695_v41 = vld [vmem:[%s5449_s16 + $0x8] sm:$0x3] }
0x127d   : > { %v5380_v33 = vsub.f32 %v3584_v19, %v3604_v22 }
0x127f   : > { %v3612_v42 = vmul.f32 %v5380_v33, %v5380_v33 }
0x1281   : > { %v3616_v45 = vsel %vm647_vm1, %v3612_v42, 0.0 }
0x1282   : > { %3617 = vadd.xlane.f32.xlu0 %v3616_v45 }
0x12b7   : > { %v3621_v40 = vpop.xlane.xlu2 %3620 }
0x12b8   : > { %v3629_v44 = vmul.f32 %v3621_v40, %v4724_v21 }
0x12ba   : > { %v3633_v1 = vadd.f32 1e-05, %v3629_v44 }
0x12bc   : > { %vm3652_vm9 = vweird.f32 %v3633_v1 }
0x12bf   : > { %v3706_v45 = vpop.permute.xlu2 %3705 }
0x12c7   : > { %v3624_v52 = vpop.xlane.xlu1 %3623 }
0x12c8   : > { %v3630_v23 = vmul.f32 %v3624_v52, %v4724_v21 }
0x12ca   : > { %v3634_v18 = vadd.f32 1e-05, %v3630_v23 }
0x12cc   : > { %4223 = vrsqrt.f32 %v3634_v18  ;;  %vm3662_vm5 = vweird.f32 %v3634_v18 }
0x12cd   : > { %4225 = vrsqrt.f32 %v3633_v1 }
0x12d2   : > { %v4224_v34 = vpop.eup %4223 }
0x12d3   : > { %v3657_v37 = vmul.f32 %v4224_v34, %v3634_v18  ;;  %v4226_v15 = vpop.eup %4225  ;;  %vm3663_vm8 = vweird.f32 %v4224_v34 }
0x12d4   : > { %v3647_v51 = vmul.f32 %v4226_v15, %v3633_v1  ;;  %vm5389_vm6 = vmor %vm3662_vm5, %vm3663_vm8  ;;  %vm3653_vm2 = vweird.f32 %v4226_v15 }
0x12d5   : > { %v3658_v35 = vmul.f32 %v4224_v34, %v3657_v37  ;;  %vm3654_vm10 = vmor %vm3652_vm9, %vm3653_vm2 }
0x12d6   : > { %v3648_v54 = vmul.f32 %v4226_v15, %v3647_v51 }
0x12d7   : > { %v3659_v46 = vmul.f32 0.5, %v3658_v35 }
0x12d8   : > { %v3649_v17 = vmul.f32 0.5, %v3648_v54 }
0x12d9   : > { %v3660_v60 = vsub.f32 1.5, %v3659_v46 }
0x12da   : > { %v3650_v5 = vsub.f32 1.5, %v3649_v17 }
0x12db   : > { %v3661_v49 = vmul.f32 %v4224_v34, %v3660_v60 }
0x12dd   : > { %v3665_v3 = vsel %vm5389_vm6, %v4224_v34, %v3661_v49 }
0x12de   : > { %v3678_v2 = vmul.f32 %v3665_v3, %v5368_v13 }
0x12df   : > { %v3701_v22 = vpop.permute.xlu1 %3700 }
0x12e0   : > { %v3685_v39 = vmul.f32 %v4067_v56, %v3678_v2 }
0x12e2   : > { %v3692_v31 = vadd.f32 %v4068_v27, %v3685_v39 }
0x12ed   : > { %v3627_v43 = vpop.xlane.xlu0 %3626 }
0x12ee   : > { %v3631_v25 = vmul.f32 %v3627_v43, %v4724_v21 }
0x12f0   : > { %v3635_v63 = vadd.f32 1e-05, %v3631_v25 }
0x12f2   : > { %4227 = vrsqrt.f32 %v3635_v63  ;;  %vm3672_vm3 = vweird.f32 %v3635_v63 }
0x12f5   : > { %v3618_v62 = vpop.xlane.xlu0 %3617 }
0x12f6   : > { %v3628_v59 = vmul.f32 %v3618_v62, %v4724_v21  ;;  %v3651_v21 = vmul.f32 %v4226_v15, %v3650_v5 }
0x12f8   : > { %v4228_v53 = vpop.eup %4227  ;;  %v3632_v48 = vadd.f32 1e-05, %v3628_v59  ;;  %v3655_v19 = vsel %vm3654_vm10, %v4226_v15, %v3651_v21 }
0x12f9   : > { %v3667_v24 = vmul.f32 %v4228_v53, %v3635_v63  ;;  %vm3673_vm0 = vweird.f32 %v4228_v53  ;;  %v3677_v30 = vmul.f32 %v3655_v19, %v5362_v29 }
0x12fa   : > { %4229 = vrsqrt.f32 %v3632_v48  ;;  %vm3674_vm7 = vmor %vm3672_vm3, %vm3673_vm0  ;;  %vm3642_vm12 = vweird.f32 %v3632_v48 }
0x12fb   : > { %v3668_v47 = vmul.f32 %v4228_v53, %v3667_v24  ;;  %v3684_v7 = vmul.f32 %v4067_v56, %v3677_v30 }
0x12fd   : > { %v3669_v50 = vmul.f32 0.5, %v3668_v47 }
0x12ff   : > { %v3670_v26 = vsub.f32 1.5, %v3669_v50 }
0x1300   : > { %v4230_v0 = vpop.eup %4229 }
0x1301   : > { %v3671_v58 = vmul.f32 %v4228_v53, %v3670_v26  ;;  %v3637_v61 = vmul.f32 %v4230_v0, %v3632_v48  ;;  %vm3643_vm11 = vweird.f32 %v4230_v0 }
0x1302   : > { %vm3644_vm13 = vmor %vm3642_vm12, %vm3643_vm11 }
0x1303   : > { %v3675_v10 = vsel %vm3674_vm7, %v4228_v53, %v3671_v58  ;;  %v3638_v14 = vmul.f32 %v4230_v0, %v3637_v61 }
0x1304   : > { %v3679_v16 = vmul.f32 %v3675_v10, %v5374_v32  ;;  %v3691_v32 = vadd.f32 %v4068_v27, %v3684_v7 }
0x1305   : > { %v3639_v4 = vmul.f32 0.5, %v3638_v14 }
0x1306   : > { %v3686_v55 = vmul.f32 %v4067_v56, %v3679_v16 }
0x1307   : > { %v3640_v12 = vsub.f32 1.5, %v3639_v4 }
0x1308   : > { %v3693_v11 = vadd.f32 %v4068_v27, %v3686_v55 }
0x1309   : > { %v3641_v13 = vmul.f32 %v4230_v0, %v3640_v12 }
0x130a   : > { %3976 = vmatpush.xpose.msk.msrb.mxu3 %vm647_vm1, %v3693_v11 }
0x130b   : > { %v3645_v6 = vsel %vm3644_vm13, %v4230_v0, %v3641_v13 }
0x130c   : > { %v3676_v28 = vmul.f32 %v3645_v6, %v5380_v33 }
0x130e   : > { %3977 = vmatpush.xpose.msk.msrb.mxu3 %vm647_vm1, %v3692_v31  ;;  %v3683_v36 = vmul.f32 %v4067_v56, %v3676_v28 }
0x1310   : > { %v3690_v29 = vadd.f32 %v4068_v27, %v3683_v36 }
0x1312   : > { %3978 = vmatpush.xpose.msk.msrb.mxu3 %vm647_vm1, %v3691_v32 }
0x1316   : > { %3979 = vmatpush.xpose.msk.msrb.mxu3 %vm647_vm1, %v3690_v29 }
0x1319   : > { %3980 = vmatmul.msk.f32.vlgmr.msrb.gmra.mxu3 %vm647_vm1, %v3694_v38 }
0x1321   : > { %3981 = vmatmul.msk.f32.gmra.mxu3 %vm647_vm1, %v3695_v41 }
0x139c   : > { %v3743_v33 = vpop.f32.mrf.mxu3 }
0x139d   : > { %v3744_v42 = vadd.f32 %v3743_v33, %v3701_v22 }
0x139f   : > { %3749 = vst.msk [vmem:[%s577_s30] sm:$0xff] %vm647_vm1, %v3744_v42 }
0x13a4   : > { %v3746_v52 = vpop.f32.mrf.mxu3 }
0x13a5   : > { %v3747_v23 = vadd.f32 %v3746_v52, %v3706_v45 }
0x13a7   : > { %3751 = vst.msk [vmem:[%s577_s30 + $0x8] sm:$0x3] %vm3750_vm14, %v3747_v23 }
0x13a8 PF: > { %s28_s27 = sadd.s32 1, %s4237_s27  }
0x13a9   : > { %p25_p5 = scmp.ge.s32.totalorder %s28_s27, 4  }
0x13ab   :  { %27 = sbr.rel (!%p25_p5) target bundleno = 5 (0x5), region = 134 }

</bundles_post_ra>
